<compile_context>
chip_gen: v5e
topology: v5e:2x2
jax: 0.10.0
libtpu: 0.0.40
codegen_flags: <defaults>
</compile_context>

<pallas_src>
import functools
import re

import jax
import jax.numpy as jnp
from jax import lax
from jax.experimental import pallas as pl
from jax.experimental.pallas import tpu as pltpu


def _round_up(x, m):
    return ((x + m - 1) // m) * m


def _tpu_generation():
    """Best-effort TPU generation number (5, 6, 7, ...); defaults to 6."""
    try:
        kind = jax.devices()[0].device_kind.lower()
    except Exception:
        return 6
    m = re.search(r"v(\d+)", kind)
    if m:
        return int(m.group(1))
    if "trillium" in kind:
        return 6
    return 6


def _vmem_budget_bytes(gen):
    """Scoped-VMEM budget: physical capacity minus headroom for Mosaic internals."""
    cap = None
    try:
        cap = int(pltpu.get_tpu_info().vmem_capacity_bytes)
    except Exception:
        cap = None
    if not cap or cap <= 0:
        cap = (64 << 20) if gen >= 7 else (128 << 20)
    # v7x: 64 MiB -> 52 MiB usable; v5e/v6e: 128 MiB -> 112 MiB usable.
    return cap - max(12 << 20, cap // 8)


def _default_tiles(gen):
    """(tm, tv) defaults per generation (see module docstring for the roofline math)."""
    if gen <= 5:
        return 256, 256      # v5e: MXU-bound already at tm=256; keep tiles/VMEM small
    if gen >= 7:
        return 512, 1024     # v7x: 2 TCs, 64 MiB VMEM; amortize grid overhead with tv
    return 1024, 1024        # v6e: needs tm >= ~768 to escape the weight-BW bound


def _pick_tm(tm_req, n_tokens, min_token_tiles=1):
    """Token-tile size: multiple of 128 (lane-dense label/loss blocks) when possible,
    whole padded token count for tiny problems.  min_token_tiles>1 (v7x) guarantees the
    parallel grid axis has work for every TensorCore."""
    n8 = _round_up(n_tokens, 8)
    if n8 <= 128:
        return n8            # tiny problem: single tile (masked stores; not a perf path)
    n128 = _round_up(n_tokens, 128)
    tm = max(128, (min(int(tm_req), n128) // 128) * 128)
    if min_token_tiles > 1:
        cap = (n128 // min_token_tiles // 128) * 128
        if cap >= 128:
            tm = min(tm, cap)
    return tm


def _pick_tv(tv_max, vocab):
    """Vocab-tile size: largest multiple of 128 <= tv_max that divides the 128-rounded
    vocab (so no weight padding / masking is needed for real vocab sizes).  Falls back
    to padding up to a multiple of tv_max only when the best divisor is much smaller.
    Returns (tv, padded_vocab)."""
    v128 = _round_up(vocab, 128)
    units = v128 // 128
    max_units = max(1, min(int(tv_max), v128) // 128)
    d = 1
    for cand in range(max_units, 0, -1):
        if units % cand == 0:
            d = cand
            break
    if d * 2 <= max_units and max_units >= 2:
        tv = max_units * 128
        return tv, _round_up(v128, tv)
    return d * 128, v128


def _cls_loss_kernel(h_ref, w_ref, lab_ref, loss_ref, m_sc, s_sc, t_sc,
                     *, v_actual, v_padded, ignore_index):
    """One (token-tile i, vocab-tile j) grid step.

    h_ref   : (tm, H)   hidden tile (compute dtype, e.g. bf16)
    w_ref   : (tv, H)   vocab slice of the lm_head weight
    lab_ref : (1, tm)   int32 labels for this token tile (lane-dense)
    loss_ref: (1, tm)   per-token loss output (lane-dense -> unmasked full-lane stores)
    m_sc/s_sc/t_sc : (1, tm) f32 running max / sum-exp / target-logit
    """
    j = pl.program_id(1)
    tv = w_ref.shape[0]

    @pl.when(j == 0)
    def _init():
        m_sc[...] = jnp.full_like(m_sc, -jnp.inf)
        s_sc[...] = jnp.zeros_like(s_sc)
        t_sc[...] = jnp.zeros_like(t_sc)

    # (tv, tm) logits tile = W_tile . H_tile^T.  dot_general contracts dim 1 of both
    # operands, so no explicit transpose is materialized; f32 accumulation on the MXU.
    logits = lax.dot_general(
        w_ref[...], h_ref[...],
        dimension_numbers=(((1,), (1,)), ((), ())),
        preferred_element_type=jnp.float32,
    )

    # (tv, 1) row index within this tile; the broadcast against the (1, tm) labels
    # happens inside the compare, so no (tv, tm) iota / full-tile i32 add is built.
    row = lax.broadcasted_iota(jnp.int32, (tv, 1), 0)
    lab_local = lab_ref[...] - j * tv           # (1, tm) int32

    # Target logit, taken from the raw logits: zero-padded vocab rows contribute 0 and
    # out-of-range labels never match, matching Megatron's vocab_parallel_cross_entropy
    # semantics (target logit 0 -> loss = logsumexp).
    t_sc[...] += jnp.sum(jnp.where(row == lab_local, logits, 0.0),
                         axis=0, keepdims=True)

    # Mask padded vocab rows out of the logsumexp.  Only emitted when V % 128 != 0
    # (never for real vocab sizes); the (tv, 1) mask keeps the extra VPU work to a
    # single broadcast-select per step.
    if v_padded != v_actual:
        logits = jnp.where(row + j * tv < v_actual, logits, -jnp.inf)

    # Online logsumexp along the vocab grid axis.
    m_prev = m_sc[...]
    m_new = jnp.maximum(m_prev, jnp.max(logits, axis=0, keepdims=True))
    s_sc[...] = s_sc[...] * jnp.exp(m_prev - m_new) + jnp.sum(
        jnp.exp(logits - m_new), axis=0, keepdims=True)
    m_sc[...] = m_new

    @pl.when(j == pl.num_programs(1) - 1)
    def _finalize():
        loss = m_sc[...] + jnp.log(s_sc[...]) - t_sc[...]
        if ignore_index is not None:
            loss = jnp.where(lab_ref[...] == ignore_index, 0.0, loss)
        loss_ref[...] = loss.astype(loss_ref.dtype)


def llama_cls_loss(hidden_states, weight, labels, *, tm=None, tv=None,
                   compute_dtype=jnp.bfloat16, ignore_index=None):
    """Fused lm_head projection + per-token cross-entropy.

    hidden_states: [S, B, H]; weight: [V, H]; labels: [B, S] integer.
    Returns per-token loss [B, S] (float32), matching LlamaCls_ (parallel_loss=True) on a
    single device.

    tm / tv default to generation-aware values (v5e 256/256, v6e 1024/1024, v7x 512/1024)
    and are shrunk automatically to fit the per-generation VMEM budget.  compute_dtype
    bf16 matches half_entropy=True; pass jnp.float32 for entropy_in_fp32.  For fp32
    weights, hoist the bf16 cast out of the hot path by passing a persistent bf16 copy
    (astype here is a no-op when dtypes already match).
    """
    S, B, H = hidden_states.shape
    V, Hw = weight.shape
    if H != Hw:
        raise ValueError(f"hidden dim mismatch: {H} vs {Hw}")
    N = S * B

    gen = _tpu_generation()
    budget = _vmem_budget_bytes(gen)
    tm_def, tv_def = _default_tiles(gen)
    tm_req = tm if tm is not None else tm_def
    tv_req = tv if tv is not None else tv_def
    min_token_tiles = 2 if gen >= 7 else 1     # v7x: 2 TensorCores on the parallel axis

    cbytes = jnp.dtype(compute_dtype).itemsize
    tm_eff = _pick_tm(tm_req, N, min_token_tiles)
    tv_eff, V_pad = _pick_tv(tv_req, V)

    def _vmem_need(tm_, tv_):
        return (2 * (tm_ + tv_) * H * cbytes   # double-buffered hidden + weight tiles
                + 6 * tm_ * tv_ * 4            # logits + exp/select temporaries
                + 32 * tm_ * 4                 # labels/loss blocks + (1, tm) scratch
                + (2 << 20))                   # compiler slack

    # Shrink tv first (keeps the big token tile that sets arithmetic intensity), then tm.
    while _vmem_need(tm_eff, tv_eff) > budget:
        if tv_eff > 256:
            tv_eff, V_pad = _pick_tv(tv_eff // 2, V)
        elif tm_eff > 128:
            tm_eff = max(128, ((tm_eff // 2) // 128) * 128)
        else:
            break

    N_pad = _round_up(N, tm_eff)

    # Cast in the wrapper so the HBM copies themselves are in the compute dtype
    # (no-op if the caller already holds bf16 operands).
    h_flat = hidden_states.reshape(N, H).astype(compute_dtype)
    w = weight.astype(compute_dtype)
    # Token order matches labels.transpose(0, 1): row-major over (S, B).
    lab = labels.T.reshape(N).astype(jnp.int32)

    if N_pad != N:
        h_flat = jnp.pad(h_flat, ((0, N_pad - N), (0, 0)))
        lab = jnp.pad(lab, (0, N_pad - N))
    if V_pad != V:
        # Only reachable when V % 128 != 0 (or no usable tv divisor exists).
        w = jnp.pad(w, ((0, V_pad - V), (0, 0)))
    lab = lab.reshape(1, N_pad)

    grid = (N_pad // tm_eff, V_pad // tv_eff)

    need = _vmem_need(tm_eff, tv_eff)
    vmem_limit = int(max(16 << 20, min(budget, max(need + (4 << 20), 32 << 20))))

    cost = pl.CostEstimate(
        flops=int(2 * N_pad * V_pad * H),
        transcendentals=int(N_pad * V_pad),
        bytes_accessed=int(
            grid[0] * V_pad * H * cbytes       # weight re-streamed once per token tile
            + N_pad * H * cbytes               # hidden
            + N_pad * 4 * 2                    # labels in + loss out
        ),
    )

    loss_row = pl.pallas_call(
        functools.partial(
            _cls_loss_kernel,
            v_actual=V, v_padded=V_pad, ignore_index=ignore_index,
        ),
        out_shape=jax.ShapeDtypeStruct((1, N_pad), jnp.float32),
        grid_spec=pltpu.PrefetchScalarGridSpec(
            num_scalar_prefetch=0,
            grid=grid,
            in_specs=[
                pl.BlockSpec((tm_eff, H), lambda i, j: (i, 0)),   # hidden: per token tile
                pl.BlockSpec((tv_eff, H), lambda i, j: (j, 0)),   # weight: per vocab tile
                pl.BlockSpec((1, tm_eff), lambda i, j: (0, i)),   # labels (lane-dense)
            ],
            out_specs=pl.BlockSpec((1, tm_eff), lambda i, j: (0, i)),
            scratch_shapes=[pltpu.VMEM((1, tm_eff), jnp.float32)] * 3,
        ),
        compiler_params=pltpu.CompilerParams(
            dimension_semantics=("parallel", "arbitrary"),
            vmem_limit_bytes=vmem_limit,
        ),
        cost_estimate=cost,
    )(h_flat, w, lab)

    loss_sb = loss_row[0, :N].reshape(S, B)    # [S, B] per-token loss
    return loss_sb.T                           # final .transpose(0, 1) -> [B, S]


def _reference_loss(hidden_states, weight, labels, compute_dtype=jnp.float32):
    """Pure-JAX reference: lm_head matmul + Megatron-style vocab-parallel CE (tp=1)."""
    h = hidden_states.astype(compute_dtype)
    w = weight.astype(compute_dtype)
    V = weight.shape[0]
    logits = jnp.einsum("sbh,vh->sbv", h, w,
                        preferred_element_type=jnp.float32)       # [S, B, V] f32
    lab_sb = labels.T                                             # [S, B]
    lse = jax.nn.logsumexp(logits, axis=-1)
    valid = (lab_sb >= 0) & (lab_sb < V)
    safe = jnp.where(valid, lab_sb, 0)
    tgt = jnp.take_along_axis(logits, safe[..., None], axis=-1)[..., 0]
    tgt = jnp.where(valid, tgt, 0.0)           # out-of-range label -> target logit 0
    return (lse - tgt).T                       # [B, S]


if __name__ == "__main__":
    root = jax.random.PRNGKey(0)
    k1h, k1w, k1l, k2h, k2w, k2l = jax.random.split(root, 6)

    # --- Case 1: aligned shapes; exercises the generation-aware defaults and (second
    # call) multiple token tiles AND multiple vocab tiles on the online reduction. ---
    S, B, H, V = 16, 16, 32, 1024
    hidden = jax.random.normal(k1h, (S, B, H), dtype=jnp.float32)
    weight = jax.random.normal(k1w, (V, H), dtype=jnp.float32) * 0.02
    labels = jax.random.randint(k1l, (B, S), 0, V, dtype=jnp.int32)

    ref = _reference_loss(hidden, weight, labels, compute_dtype=jnp.bfloat16)

    loss = jax.block_until_ready(llama_cls_loss(hidden, weight, labels))  # bf16 default
    assert loss.shape == (B, S)
    assert jnp.allclose(loss, ref, atol=1e-2, rtol=1e-2), (loss, ref)

    loss_mt = jax.block_until_ready(
        llama_cls_loss(hidden, weight, labels, tm=128, tv=256))
    assert jnp.allclose(loss_mt, ref, atol=1e-2, rtol=1e-2), (loss_mt, ref)

    # f32 compute path (entropy_in_fp32 analogue; slightly looser tolerance vs XLA ref).
    loss_f32 = jax.block_until_ready(
        llama_cls_loss(hidden, weight, labels, compute_dtype=jnp.float32))
    ref_f32 = _reference_loss(hidden, weight, labels, compute_dtype=jnp.float32)
    assert jnp.allclose(loss_f32, ref_f32, atol=2e-2, rtol=2e-2), (loss_f32, ref_f32)

    # --- Case 2: ragged vocab (700 -> padded/masked to 768) + ragged token count
    # (14 -> padded) + out-of-range labels (Megatron semantics). ---
    S2, B2, H2, V2 = 7, 2, 32, 700
    hidden2 = jax.random.normal(k2h, (S2, B2, H2), dtype=jnp.float32)
    weight2 = jax.random.normal(k2w, (V2, H2), dtype=jnp.float32) * 0.02
    labels2 = jax.random.randint(k2l, (B2, S2), 0, V2, dtype=jnp.int32)
    labels2 = labels2.at[0, 0].set(-100).at[1, 3].set(-100)

    ref2 = _reference_loss(hidden2, weight2, labels2, compute_dtype=jnp.bfloat16)

    loss2 = jax.block_until_ready(llama_cls_loss(hidden2, weight2, labels2))
    assert loss2.shape == (B2, S2)
    assert jnp.allclose(loss2, ref2, atol=1e-2, rtol=1e-2), (loss2, ref2)

    # Optional ignore_index handling: ignored positions produce zero loss.
    loss2_ig = jax.block_until_ready(
        llama_cls_loss(hidden2, weight2, labels2, ignore_index=-100))
    ref2_ig = jnp.where(labels2 == -100, 0.0, ref2)
    assert jnp.allclose(loss2_ig, ref2_ig, atol=1e-2, rtol=1e-2), (loss2_ig, ref2_ig)

    print("KERNEL_OK")
</pallas_src>

<mosaic_0001>
module attributes {stable_mosaic.version = 11 : i64} {
  func.func @_cls_loss_kernel(%arg0: i32, %arg1: i32, %arg2: memref<256x32xbf16, #tpu.memory_space<vmem>>, %arg3: memref<1024x32xbf16, #tpu.memory_space<vmem>>, %arg4: memref<1x256xi32, #tpu.memory_space<vmem>>, %arg5: memref<1x256xf32, #tpu.memory_space<vmem>>, %arg6: memref<1x256xf32, #tpu.memory_space<vmem>>, %arg7: memref<1x256xf32, #tpu.memory_space<vmem>>, %arg8: memref<1x256xf32, #tpu.memory_space<vmem>>) attributes {dimension_semantics = [#tpu.dimension_semantics<parallel>, #tpu.dimension_semantics<arbitrary>], iteration_bounds = array<i64: 1, 1>, scalar_prefetch = 0 : i64, scratch_operands = 3 : i64, tpu.core_type = #tpu.core_type<tc>, window_params = [{transform_indices = @transform_0, window_bounds = array<i64: 256, 32>}, {transform_indices = @transform_1, window_bounds = array<i64: 1024, 32>}, {transform_indices = @transform_2, window_bounds = array<i64: 1, 256>}, {transform_indices = @transform_3, window_bounds = array<i64: 1, 256>}]} {
    %c0_i32 = arith.constant 0 : i32
    %0 = arith.cmpi eq, %arg1, %c0_i32 : i32
    %1 = arith.extui %0 : i1 to i32
    %c0_i32_0 = arith.constant 0 : i32
    %2 = arith.cmpi ne, %1, %c0_i32_0 : i32
    scf.if %2 {
      %cst_24 = arith.constant 0xFF800000 : f32
      %40 = vector.broadcast %cst_24 : f32 to vector<1x256xf32>
      %c0_25 = arith.constant 0 : index
      %c0_26 = arith.constant 0 : index
      %41 = vector.load %arg6[%c0_25, %c0_26] : memref<1x256xf32, #tpu.memory_space<vmem>>, vector<1x256xf32>
      tpu.vector_store %arg6[%c0_25, %c0_26], %40 {strides = array<i32>} : memref<1x256xf32, #tpu.memory_space<vmem>>, vector<1x256xf32>,
      %cst_27 = arith.constant 0.000000e+00 : f32
      %42 = vector.broadcast %cst_27 : f32 to vector<1x256xf32>
      %c0_28 = arith.constant 0 : index
      %c0_29 = arith.constant 0 : index
      %43 = vector.load %arg7[%c0_28, %c0_29] : memref<1x256xf32, #tpu.memory_space<vmem>>, vector<1x256xf32>
      tpu.vector_store %arg7[%c0_28, %c0_29], %42 {strides = array<i32>} : memref<1x256xf32, #tpu.memory_space<vmem>>, vector<1x256xf32>,
      %cst_30 = arith.constant 0.000000e+00 : f32
      %44 = vector.broadcast %cst_30 : f32 to vector<1x256xf32>
      %c0_31 = arith.constant 0 : index
      %c0_32 = arith.constant 0 : index
      %45 = vector.load %arg8[%c0_31, %c0_32] : memref<1x256xf32, #tpu.memory_space<vmem>>, vector<1x256xf32>
      tpu.vector_store %arg8[%c0_31, %c0_32], %44 {strides = array<i32>} : memref<1x256xf32, #tpu.memory_space<vmem>>, vector<1x256xf32>,
    } else {
    }
    %c0 = arith.constant 0 : index
    %c0_1 = arith.constant 0 : index
    %3 = vector.load %arg3[%c0, %c0_1] : memref<1024x32xbf16, #tpu.memory_space<vmem>>, vector<1024x32xbf16>
    %c0_2 = arith.constant 0 : index
    %c0_3 = arith.constant 0 : index
    %4 = vector.load %arg2[%c0_2, %c0_3] : memref<256x32xbf16, #tpu.memory_space<vmem>>, vector<256x32xbf16>
    %cst = arith.constant dense<0.000000e+00> : vector<1024x256xf32>
    %5 = tpu.matmul %3, %4, %cst {dimension_numbers = #tpu.dot_dimension_numbers<[1], [1], [0], [0], [0, 0, 1, 0], [], []>} : vector<1024x32xbf16>, vector<256x32xbf16>, vector<1024x256xf32> -> vector<1024x256xf32>
    %6 = tpu.iota {dimensions = array<i32: 0>} : vector<1024x1xi32>
    %c0_4 = arith.constant 0 : index
    %c0_5 = arith.constant 0 : index
    %7 = vector.load %arg4[%c0_4, %c0_5] : memref<1x256xi32, #tpu.memory_space<vmem>>, vector<1x256xi32>
    %c1024_i32 = arith.constant 1024 : i32
    %8 = arith.muli %arg1, %c1024_i32 : i32
    %9 = vector.broadcast %8 : i32 to vector<1x256xi32>
    %10 = arith.subi %7, %9 : vector<1x256xi32>
    %c0_6 = arith.constant 0 : index
    %c0_7 = arith.constant 0 : index
    %11 = vector.load %arg8[%c0_6, %c0_7] : memref<1x256xf32, #tpu.memory_space<vmem>>, vector<1x256xf32>
    %12 = vector.broadcast %6 : vector<1024x1xi32> to vector<1024x256xi32>
    %13 = vector.broadcast %10 : vector<1x256xi32> to vector<1024x256xi32>
    %14 = arith.cmpi eq, %12, %13 : vector<1024x256xi32>
    %cst_8 = arith.constant 0.000000e+00 : f32
    %15 = vector.broadcast %cst_8 : f32 to vector<1024x256xf32>
    %16 = arith.select %14, %5, %15 : vector<1024x256xi1>, vector<1024x256xf32>
    %cst_9 = arith.constant dense<0.000000e+00> : vector<256xf32>
    %17 = vector.multi_reduction <add>, %16, %cst_9 [0] : vector<1024x256xf32> to vector<256xf32>
    %18 = vector.shape_cast %17 : vector<256xf32> to vector<1x256xf32>
    %19 = arith.addf %11, %18 : vector<1x256xf32>
    %c0_10 = arith.constant 0 : index
    %c0_11 = arith.constant 0 : index
    %20 = vector.load %arg8[%c0_10, %c0_11] : memref<1x256xf32, #tpu.memory_space<vmem>>, vector<1x256xf32>
    tpu.vector_store %arg8[%c0_10, %c0_11], %19 {strides = array<i32>} : memref<1x256xf32, #tpu.memory_space<vmem>>, vector<1x256xf32>,
    %c0_12 = arith.constant 0 : index
    %c0_13 = arith.constant 0 : index
    %21 = vector.load %arg6[%c0_12, %c0_13] : memref<1x256xf32, #tpu.memory_space<vmem>>, vector<1x256xf32>
    %cst_14 = arith.constant dense<0xFF800000> : vector<256xf32>
    %22 = vector.multi_reduction <maximumf>, %5, %cst_14 [0] : vector<1024x256xf32> to vector<256xf32>
    %23 = vector.shape_cast %22 : vector<256xf32> to vector<1x256xf32>
    %24 = arith.maximumf %21, %23 : vector<1x256xf32>
    %c0_15 = arith.constant 0 : index
    %c0_16 = arith.constant 0 : index
    %25 = vector.load %arg7[%c0_15, %c0_16] : memref<1x256xf32, #tpu.memory_space<vmem>>, vector<1x256xf32>
    %26 = arith.subf %21, %24 : vector<1x256xf32>
    %27 = math.exp %26 : vector<1x256xf32>
    %28 = arith.mulf %25, %27 : vector<1x256xf32>
    %29 = vector.broadcast %24 : vector<1x256xf32> to vector<1024x256xf32>
    %30 = arith.subf %5, %29 : vector<1024x256xf32>
    %31 = math.exp %30 : vector<1024x256xf32>
    %cst_17 = arith.constant dense<0.000000e+00> : vector<256xf32>
    %32 = vector.multi_reduction <add>, %31, %cst_17 [0] : vector<1024x256xf32> to vector<256xf32>
    %33 = vector.shape_cast %32 : vector<256xf32> to vector<1x256xf32>
    %34 = arith.addf %28, %33 : vector<1x256xf32>
    %c0_18 = arith.constant 0 : index
    %c0_19 = arith.constant 0 : index
    %35 = vector.load %arg7[%c0_18, %c0_19] : memref<1x256xf32, #tpu.memory_space<vmem>>, vector<1x256xf32>
    tpu.vector_store %arg7[%c0_18, %c0_19], %34 {strides = array<i32>} : memref<1x256xf32, #tpu.memory_space<vmem>>, vector<1x256xf32>,
    %c0_20 = arith.constant 0 : index
    %c0_21 = arith.constant 0 : index
    %36 = vector.load %arg6[%c0_20, %c0_21] : memref<1x256xf32, #tpu.memory_space<vmem>>, vector<1x256xf32>
    tpu.vector_store %arg6[%c0_20, %c0_21], %24 {strides = array<i32>} : memref<1x256xf32, #tpu.memory_space<vmem>>, vector<1x256xf32>,
    %c0_i32_22 = arith.constant 0 : i32
    %37 = arith.cmpi eq, %arg1, %c0_i32_22 : i32
    %38 = arith.extui %37 : i1 to i32
    %c0_i32_23 = arith.constant 0 : i32
    %39 = arith.cmpi ne, %38, %c0_i32_23 : i32
    scf.if %39 {
      %c0_24 = arith.constant 0 : index
      %c0_25 = arith.constant 0 : index
      %40 = vector.load %arg6[%c0_24, %c0_25] : memref<1x256xf32, #tpu.memory_space<vmem>>, vector<1x256xf32>
      %c0_26 = arith.constant 0 : index
      %c0_27 = arith.constant 0 : index
      %41 = vector.load %arg7[%c0_26, %c0_27] : memref<1x256xf32, #tpu.memory_space<vmem>>, vector<1x256xf32>
      %42 = math.log %41 : vector<1x256xf32>
      %43 = arith.addf %40, %42 : vector<1x256xf32>
      %c0_28 = arith.constant 0 : index
      %c0_29 = arith.constant 0 : index
      %44 = vector.load %arg8[%c0_28, %c0_29] : memref<1x256xf32, #tpu.memory_space<vmem>>, vector<1x256xf32>
      %45 = arith.subf %43, %44 : vector<1x256xf32>
      %c0_30 = arith.constant 0 : index
      %c0_31 = arith.constant 0 : index
      %46 = vector.load %arg5[%c0_30, %c0_31] : memref<1x256xf32, #tpu.memory_space<vmem>>, vector<1x256xf32>
      tpu.vector_store %arg5[%c0_30, %c0_31], %45 {strides = array<i32>} : memref<1x256xf32, #tpu.memory_space<vmem>>, vector<1x256xf32>,
    } else {
    }
    return
  }
  func.func @transform_0(%arg0: i32, %arg1: i32) -> (i32, i32) {
    %c0_i32 = arith.constant 0 : i32
    %c0_i32_0 = arith.constant 0 : i32
    return %arg0, %c0_i32 : i32, i32
  }
  func.func @transform_1(%arg0: i32, %arg1: i32) -> (i32, i32) {
    %c0_i32 = arith.constant 0 : i32
    %c0_i32_0 = arith.constant 0 : i32
    return %arg1, %c0_i32 : i32, i32
  }
  func.func @transform_2(%arg0: i32, %arg1: i32) -> (i32, i32) {
    %c0_i32 = arith.constant 0 : i32
    %c0_i32_0 = arith.constant 0 : i32
    return %c0_i32, %arg0 : i32, i32
  }
  func.func @transform_3(%arg0: i32, %arg1: i32) -> (i32, i32) {
    %c0_i32 = arith.constant 0 : i32
    %c0_i32_0 = arith.constant 0 : i32
    return %c0_i32, %arg0 : i32, i32
  }
}

</mosaic_0001>

<bundles_post_ra>
// kernel: tpu_custom_call.1
= control target key start
LH: loop header
LB: loop body
LE: loop exit
PB: predicated region body
PF: predicated region fallthrough
CT: control target
= control target key end

     0   :  { %vm586_vm0 = vcmask 261120   ;;  %s7623_s0 = inlined_call_operand.vmem [shape: bf16[256,32], index: 0, kind: input, shape index: {}]   ;;  %s7624_s1 = inlined_call_operand.vmem [shape: bf16[1024,32], index: 1, kind: input, shape index: {}]   ;;  %s7625_s2 = inlined_call_operand.vmem [shape: s32[1,256], index: 2, kind: input, shape index: {}]   ;;  %s7626_s3 = inlined_call_operand.hbm [shape: f32[1,256], index: 3, kind: output, shape index: {}]  }
   0x1   :  { %v4282_v0 = vld [vmem:[%s7623_s0 + $0x38] sm:$0xff]  ;;  %v4281_v4 = vld [vmem:[%s7623_s0 + $0x30] sm:$0xff] }
   0x2   :  { %v4290_v1 = vld [vmem:[%s7623_s0 + $0x78] sm:$0xff]  ;;  %v801_v2 = vsel %vm586_vm0, %v4282_v0, 0  ;;  %v4289_v5 = vld [vmem:[%s7623_s0 + $0x70] sm:$0xff] }
   0x3   :  { %v825_v3 = vsel %vm586_vm0, %v4290_v1, 0  ;;  %827 = vmatpush.bf16.xpose.msra.mxu0 %v801_v2  ;;  %4291 = vmatpush.bf16.xpose.msra.mxu2 %v801_v2 }
   0x4   :  { %1156 = vmatpush.bf16.xpose.msra.mxu1 %v825_v3  ;;  %4299 = vmatpush.bf16.xpose.msra.mxu3 %v825_v3 }
   0x5   :  { %8 = vsyncpa [#allocation6], 0  ;;  %v798_v6 = vsel %vm586_vm0, %v4281_v4, 0  ;;  %v822_v7 = vsel %vm586_vm0, %v4289_v5, 0  ;;  %v4280_v8 = vld [vmem:[%s7623_s0 + $0x28] sm:$0xff]  ;;  %v4279_v12 = vld [vmem:[%s7623_s0 + $0x20] sm:$0xff] }
   0x6   :  { %v4288_v9 = vld [vmem:[%s7623_s0 + $0x68] sm:$0xff]  ;;  %v795_v10 = vsel %vm586_vm0, %v4280_v8, 0  ;;  %v4287_v13 = vld [vmem:[%s7623_s0 + $0x60] sm:$0xff]  ;;  %v792_v14 = vsel %vm586_vm0, %v4279_v12, 0  ;;  %v4278_v16 = vld [vmem:[%s7623_s0 + $0x18] sm:$0xff]  ;;  %s3754_s9 = sshll.u32 %s7626_s3, 4  ;;  %s3755_s9 = int_to_ptr.hbm [resolvable:$true] %s3754_s9 }
   0x7   :  { %v819_v11 = vsel %vm586_vm0, %v4288_v9, 0  ;;  %v816_v15 = vsel %vm586_vm0, %v4287_v13, 0  ;;  %v4286_v17 = vld [vmem:[%s7623_s0 + $0x58] sm:$0xff]  ;;  %v789_v18 = vsel %vm586_vm0, %v4278_v16, 0  ;;  %v4277_v20 = vld [vmem:[%s7623_s0 + $0x10] sm:$0xff]  ;;  %v4276_v24 = vld [vmem:[%s7623_s0 + $0x8] sm:$0xff] }
   0x8   :  { %v813_v19 = vsel %vm586_vm0, %v4286_v17, 0  ;;  %v4285_v21 = vld [vmem:[%s7623_s0 + $0x50] sm:$0xff]  ;;  %v786_v22 = vsel %vm586_vm0, %v4277_v20, 0  ;;  %v4284_v25 = vld [vmem:[%s7623_s0 + $0x48] sm:$0xff]  ;;  %v783_v26 = vsel %vm586_vm0, %v4276_v24, 0  ;;  %v4275_v28 = vld [vmem:[%s7623_s0] sm:$0xff] }
   0x9   :  { %v810_v23 = vsel %vm586_vm0, %v4285_v21, 0  ;;  %v807_v27 = vsel %vm586_vm0, %v4284_v25, 0  ;;  %v4283_v29 = vld [vmem:[%s7623_s0 + $0x40] sm:$0xff]  ;;  %v780_v30 = vsel %vm586_vm0, %v4275_v28, 0  ;;  %v4212_v34 = vld [vmem:[%s7624_s1 + $0x8] sm:$0xff]  ;;  %v4213_v36 = vld [vmem:[%s7624_s1 + $0x10] sm:$0xff] }
   0xa   :  { %v804_v31 = vsel %vm586_vm0, %v4283_v29, 0  ;;  %v4211_v32 = vld [vmem:[%s7624_s1] sm:$0xff]  ;;  %v4244_v35 = vld [vmem:[%s7624_s1 + $0x108] sm:$0xff]  ;;  %v4245_v37 = vld [vmem:[%s7624_s1 + $0x110] sm:$0xff] }
   0xb   :  { %828 = vmatpush.bf16.xpose.msra.mxu0 %v798_v6  ;;  %4292 = vmatpush.bf16.xpose.msra.mxu2 %v798_v6  ;;  %v4243_v33 = vld [vmem:[%s7624_s1 + $0x100] sm:$0xff]  ;;  %v4214_v38 = vld [vmem:[%s7624_s1 + $0x18] sm:$0xff]  ;;  %v4216_v42 = vld [vmem:[%s7624_s1 + $0x28] sm:$0xff] }
   0xc   :  { %1157 = vmatpush.bf16.xpose.msra.mxu1 %v822_v7  ;;  %4300 = vmatpush.bf16.xpose.msra.mxu3 %v822_v7  ;;  %v4246_v39 = vld [vmem:[%s7624_s1 + $0x118] sm:$0xff]  ;;  %v4215_v40 = vld [vmem:[%s7624_s1 + $0x20] sm:$0xff]  ;;  %v4248_v43 = vld [vmem:[%s7624_s1 + $0x128] sm:$0xff] }
   0xd   :  { %v4247_v41 = vld [vmem:[%s7624_s1 + $0x120] sm:$0xff]  ;;  %v4217_v44 = vld [vmem:[%s7624_s1 + $0x30] sm:$0xff]  ;;  %v4218_v46 = vld [vmem:[%s7624_s1 + $0x38] sm:$0xff] }
   0xe   :  { %v4249_v45 = vld [vmem:[%s7624_s1 + $0x130] sm:$0xff]  ;;  %v4250_v47 = vld [vmem:[%s7624_s1 + $0x138] sm:$0xff]  ;;  %v4219_v48 = vld [vmem:[%s7624_s1 + $0x40] sm:$0xff] }
   0xf   :  { %v4251_v51 = vld [vmem:[%s7624_s1 + $0x140] sm:$0xff]  ;;  %v4220_v56 = vld [vmem:[%s7624_s1 + $0x48] sm:$0xff]  ;;  %v4221_v2 = vld [vmem:[%s7624_s1 + $0x50] sm:$0xff] }
  0x10   :  { %v4252_v61 = vld [vmem:[%s7624_s1 + $0x148] sm:$0xff]  ;;  %v4253_v7 = vld [vmem:[%s7624_s1 + $0x150] sm:$0xff]  ;;  %v4222_v12 = vld [vmem:[%s7624_s1 + $0x58] sm:$0xff] }
  0x11   :  { %v4254_v17 = vld [vmem:[%s7624_s1 + $0x158] sm:$0xff] }
  0x13   :  { %829 = vmatpush.bf16.xpose.msra.mxu0 %v795_v10  ;;  %4293 = vmatpush.bf16.xpose.msra.mxu2 %v795_v10 }
  0x14   :  { %1158 = vmatpush.bf16.xpose.msra.mxu1 %v819_v11  ;;  %4301 = vmatpush.bf16.xpose.msra.mxu3 %v819_v11 }
  0x1b   :  { %830 = vmatpush.bf16.xpose.msra.mxu0 %v792_v14  ;;  %4294 = vmatpush.bf16.xpose.msra.mxu2 %v792_v14 }
  0x1c   :  { %1159 = vmatpush.bf16.xpose.msra.mxu1 %v816_v15  ;;  %4302 = vmatpush.bf16.xpose.msra.mxu3 %v816_v15 }
  0x23   :  { %831 = vmatpush.bf16.xpose.msra.mxu0 %v789_v18  ;;  %4295 = vmatpush.bf16.xpose.msra.mxu2 %v789_v18 }
  0x24   :  { %1160 = vmatpush.bf16.xpose.msra.mxu1 %v813_v19  ;;  %4303 = vmatpush.bf16.xpose.msra.mxu3 %v813_v19 }
  0x2b   :  { %832 = vmatpush.bf16.xpose.msra.mxu0 %v786_v22  ;;  %4296 = vmatpush.bf16.xpose.msra.mxu2 %v786_v22  ;;  %v4223_v22 = vld [vmem:[%s7624_s1 + $0x60] sm:$0xff] }
  0x2c   :  { %1161 = vmatpush.bf16.xpose.msra.mxu1 %v810_v23  ;;  %4304 = vmatpush.bf16.xpose.msra.mxu3 %v810_v23 }
  0x33   :  { %833 = vmatpush.bf16.xpose.msra.mxu0 %v783_v26  ;;  %4297 = vmatpush.bf16.xpose.msra.mxu2 %v783_v26 }
  0x34   :  { %1162 = vmatpush.bf16.xpose.msra.mxu1 %v807_v27  ;;  %4305 = vmatpush.bf16.xpose.msra.mxu3 %v807_v27  ;;  %v4255_v27 = vld [vmem:[%s7624_s1 + $0x160] sm:$0xff] }
  0x3b   :  { %834 = vmatpush.bf16.xpose.msra.mxu0 %v780_v30  ;;  %4298 = vmatpush.bf16.xpose.msra.mxu2 %v780_v30 }
  0x3c   :  { %1163 = vmatpush.bf16.xpose.msra.mxu1 %v804_v31  ;;  %4306 = vmatpush.bf16.xpose.msra.mxu3 %v804_v31 }
  0x42   :  { %4083 = vmatmul.msk.bf16.vlgmr.msra.gmra.mxu0 %vm586_vm0, %v4211_v32  ;;  %4115 = vmatmul.msk.bf16.vlgmr.msra.gmra.mxu2 %vm586_vm0, %v4243_v33 }
  0x43   :  { %4147 = vmatmul.msk.bf16.vlgmr.msra.gmra.mxu1 %vm586_vm0, %v4211_v32  ;;  %4179 = vmatmul.msk.bf16.vlgmr.msra.gmra.mxu3 %vm586_vm0, %v4243_v33  ;;  %v4224_v32 = vld [vmem:[%s7624_s1 + $0x68] sm:$0xff] }
  0x52   :  { %4084 = vmatmul.msk.bf16.gmra.mxu0 %vm586_vm0, %v4212_v34  ;;  %4116 = vmatmul.msk.bf16.gmra.mxu2 %vm586_vm0, %v4244_v35 }
  0x53   :  { %4148 = vmatmul.msk.bf16.gmra.mxu1 %vm586_vm0, %v4212_v34  ;;  %4180 = vmatmul.msk.bf16.gmra.mxu3 %vm586_vm0, %v4244_v35 }
  0x62   :  { %4085 = vmatmul.msk.bf16.gmra.mxu0 %vm586_vm0, %v4213_v36  ;;  %4117 = vmatmul.msk.bf16.gmra.mxu2 %vm586_vm0, %v4245_v37 }
  0x63   :  { %4149 = vmatmul.msk.bf16.gmra.mxu1 %vm586_vm0, %v4213_v36  ;;  %4181 = vmatmul.msk.bf16.gmra.mxu3 %vm586_vm0, %v4245_v37  ;;  %v4256_v37 = vld [vmem:[%s7624_s1 + $0x168] sm:$0xff] }
  0x72   :  { %4086 = vmatmul.msk.bf16.gmra.mxu0 %vm586_vm0, %v4214_v38  ;;  %4118 = vmatmul.msk.bf16.gmra.mxu2 %vm586_vm0, %v4246_v39 }
  0x73   :  { %4150 = vmatmul.msk.bf16.gmra.mxu1 %vm586_vm0, %v4214_v38  ;;  %4182 = vmatmul.msk.bf16.gmra.mxu3 %vm586_vm0, %v4246_v39 }
  0x82   :  { %4087 = vmatmul.msk.bf16.gmra.mxu0 %vm586_vm0, %v4215_v40  ;;  %4119 = vmatmul.msk.bf16.gmra.mxu2 %vm586_vm0, %v4247_v41 }
  0x83   :  { %4151 = vmatmul.msk.bf16.gmra.mxu1 %vm586_vm0, %v4215_v40  ;;  %4183 = vmatmul.msk.bf16.gmra.mxu3 %vm586_vm0, %v4247_v41 }
  0x92   :  { %4088 = vmatmul.msk.bf16.gmra.mxu0 %vm586_vm0, %v4216_v42  ;;  %4120 = vmatmul.msk.bf16.gmra.mxu2 %vm586_vm0, %v4248_v43 }
  0x93   :  { %4152 = vmatmul.msk.bf16.gmra.mxu1 %vm586_vm0, %v4216_v42  ;;  %4184 = vmatmul.msk.bf16.gmra.mxu3 %vm586_vm0, %v4248_v43  ;;  %v4225_v42 = vld [vmem:[%s7624_s1 + $0x70] sm:$0xff] }
  0xa2   :  { %4089 = vmatmul.msk.bf16.gmra.mxu0 %vm586_vm0, %v4217_v44  ;;  %4121 = vmatmul.msk.bf16.gmra.mxu2 %vm586_vm0, %v4249_v45 }
  0xa3   :  { %4153 = vmatmul.msk.bf16.gmra.mxu1 %vm586_vm0, %v4217_v44  ;;  %4185 = vmatmul.msk.bf16.gmra.mxu3 %vm586_vm0, %v4249_v45 }
  0xb2   :  { %4090 = vmatmul.msk.bf16.gmra.mxu0 %vm586_vm0, %v4218_v46  ;;  %4122 = vmatmul.msk.bf16.gmra.mxu2 %vm586_vm0, %v4250_v47 }
  0xb3   :  { %4154 = vmatmul.msk.bf16.gmra.mxu1 %vm586_vm0, %v4218_v46  ;;  %4186 = vmatmul.msk.bf16.gmra.mxu3 %vm586_vm0, %v4250_v47  ;;  %v4257_v47 = vld [vmem:[%s7624_s1 + $0x170] sm:$0xff] }
  0xbf   :  { %v5022_v49 = vpop.f32.mrf.mxu0 }
  0xc0   :  { %7971 = vst [vmem:[#allocation8_spill] sm:$0xff] %v5022_v49  ;;  %v5024_v50 = vpop.f32.mrf.mxu1 }
  0xc1   :  { %7972 = vst [vmem:[#allocation9_spill] sm:$0xff] %v5024_v50 }
  0xc2   :  { %4091 = vmatmul.msk.bf16.gmra.mxu0 %vm586_vm0, %v4219_v48  ;;  %4123 = vmatmul.msk.bf16.gmra.mxu2 %vm586_vm0, %v4251_v51 }
  0xc3   :  { %4155 = vmatmul.msk.bf16.gmra.mxu1 %vm586_vm0, %v4219_v48  ;;  %4187 = vmatmul.msk.bf16.gmra.mxu3 %vm586_vm0, %v4251_v51 }
  0xc5   :  { %v5035_v53 = vpop.f32.mrf.mxu2 }
  0xc6   :  { %v5033_v52 = vpop.f32.mrf.mxu3  ;;  %7974 = vst [vmem:[#allocation11_spill] sm:$0xff] %v5035_v53 }
  0xc7   :  { %7973 = vst [vmem:[#allocation10_spill] sm:$0xff] %v5033_v52  ;;  %v5037_v54 = vpop.f32.mrf.mxu0 }
  0xc8   :  { %7975 = vst [vmem:[#allocation12_spill] sm:$0xff] %v5037_v54  ;;  %v5039_v55 = vpop.f32.mrf.mxu1 }
  0xc9   :  { %7976 = vst [vmem:[#allocation13_spill] sm:$0xff] %v5039_v55 }
  0xcd   :  { %v5046_v58 = vpop.f32.mrf.mxu2 }
  0xce   :  { %v5044_v57 = vpop.f32.mrf.mxu3  ;;  %7978 = vst [vmem:[#allocation15_spill] sm:$0xff] %v5046_v58 }
  0xcf   :  { %7977 = vst [vmem:[#allocation14_spill] sm:$0xff] %v5044_v57  ;;  %v5048_v59 = vpop.f32.mrf.mxu0 }
  0xd0   :  { %7979 = vst [vmem:[#allocation16_spill] sm:$0xff] %v5048_v59  ;;  %v5050_v60 = vpop.f32.mrf.mxu1 }
  0xd1   :  { %7980 = vst [vmem:[#allocation17_spill] sm:$0xff] %v5050_v60 }
  0xd2   :  { %4092 = vmatmul.msk.bf16.gmra.mxu0 %vm586_vm0, %v4220_v56  ;;  %4124 = vmatmul.msk.bf16.gmra.mxu2 %vm586_vm0, %v4252_v61 }
  0xd3   :  { %4156 = vmatmul.msk.bf16.gmra.mxu1 %vm586_vm0, %v4220_v56  ;;  %4188 = vmatmul.msk.bf16.gmra.mxu3 %vm586_vm0, %v4252_v61 }
  0xd5   :  { %v5061_v63 = vpop.f32.mrf.mxu2 }
  0xd6   :  { %v5059_v62 = vpop.f32.mrf.mxu3  ;;  %7982 = vst [vmem:[#allocation19_spill] sm:$0xff] %v5061_v63 }
  0xd7   :  { %7981 = vst [vmem:[#allocation18_spill] sm:$0xff] %v5059_v62  ;;  %v5063_v0 = vpop.f32.mrf.mxu0 }
  0xd8   :  { %7983 = vst [vmem:[#allocation20_spill] sm:$0xff] %v5063_v0  ;;  %v5065_v1 = vpop.f32.mrf.mxu1 }
  0xd9   :  { %7984 = vst [vmem:[#allocation21_spill] sm:$0xff] %v5065_v1 }
  0xdd   :  { %v5072_v4 = vpop.f32.mrf.mxu2 }
  0xde   :  { %v5070_v3 = vpop.f32.mrf.mxu3  ;;  %7986 = vst [vmem:[#allocation23_spill] sm:$0xff] %v5072_v4 }
  0xdf   :  { %7985 = vst [vmem:[#allocation22_spill] sm:$0xff] %v5070_v3  ;;  %v5074_v5 = vpop.f32.mrf.mxu0 }
  0xe0   :  { %7987 = vst [vmem:[#allocation24_spill] sm:$0xff] %v5074_v5  ;;  %v5076_v6 = vpop.f32.mrf.mxu1 }
  0xe1   :  { %7988 = vst [vmem:[#allocation25_spill] sm:$0xff] %v5076_v6 }
  0xe2   :  { %4093 = vmatmul.msk.bf16.gmra.mxu0 %vm586_vm0, %v4221_v2  ;;  %4125 = vmatmul.msk.bf16.gmra.mxu2 %vm586_vm0, %v4253_v7 }
  0xe3   :  { %4157 = vmatmul.msk.bf16.gmra.mxu1 %vm586_vm0, %v4221_v2  ;;  %4189 = vmatmul.msk.bf16.gmra.mxu3 %vm586_vm0, %v4253_v7  ;;  %v4226_v2 = vld [vmem:[%s7624_s1 + $0x78] sm:$0xff] }
  0xe5   :  { %v5087_v9 = vpop.f32.mrf.mxu2 }
  0xe6   :  { %v5085_v8 = vpop.f32.mrf.mxu3  ;;  %7990 = vst [vmem:[#allocation27_spill] sm:$0xff] %v5087_v9 }
  0xe7   :  { %7989 = vst [vmem:[#allocation26_spill] sm:$0xff] %v5085_v8  ;;  %v5089_v10 = vpop.f32.mrf.mxu0 }
  0xe8   :  { %7991 = vst [vmem:[#allocation28_spill] sm:$0xff] %v5089_v10  ;;  %v5091_v11 = vpop.f32.mrf.mxu1 }
  0xe9   :  { %7992 = vst [vmem:[#allocation29_spill] sm:$0xff] %v5091_v11 }
  0xed   :  { %v5098_v14 = vpop.f32.mrf.mxu2 }
  0xee   :  { %v5096_v13 = vpop.f32.mrf.mxu3  ;;  %7994 = vst [vmem:[#allocation31_spill] sm:$0xff] %v5098_v14 }
  0xef   :  { %7993 = vst [vmem:[#allocation30_spill] sm:$0xff] %v5096_v13  ;;  %v5100_v15 = vpop.f32.mrf.mxu0 }
  0xf0   :  { %7995 = vst [vmem:[#allocation32_spill] sm:$0xff] %v5100_v15  ;;  %v5102_v16 = vpop.f32.mrf.mxu1 }
  0xf1   :  { %7996 = vst [vmem:[#allocation33_spill] sm:$0xff] %v5102_v16 }
  0xf2   :  { %4094 = vmatmul.msk.bf16.gmra.mxu0 %vm586_vm0, %v4222_v12  ;;  %4126 = vmatmul.msk.bf16.gmra.mxu2 %vm586_vm0, %v4254_v17 }
  0xf3   :  { %4158 = vmatmul.msk.bf16.gmra.mxu1 %vm586_vm0, %v4222_v12  ;;  %4190 = vmatmul.msk.bf16.gmra.mxu3 %vm586_vm0, %v4254_v17 }
  0xf5   :  { %v5113_v19 = vpop.f32.mrf.mxu2 }
  0xf6   :  { %v5111_v18 = vpop.f32.mrf.mxu3  ;;  %7998 = vst [vmem:[#allocation35_spill] sm:$0xff] %v5113_v19 }
  0xf7   :  { %7997 = vst [vmem:[#allocation34_spill] sm:$0xff] %v5111_v18  ;;  %v5115_v20 = vpop.f32.mrf.mxu0 }
  0xf8   :  { %7999 = vst [vmem:[#allocation36_spill] sm:$0xff] %v5115_v20  ;;  %v5117_v21 = vpop.f32.mrf.mxu1 }
  0xf9   :  { %8000 = vst [vmem:[#allocation37_spill] sm:$0xff] %v5117_v21 }
  0xfd   :  { %v5124_v24 = vpop.f32.mrf.mxu2 }
  0xfe   :  { %v5122_v23 = vpop.f32.mrf.mxu3  ;;  %8002 = vst [vmem:[#allocation39_spill] sm:$0xff] %v5124_v24 }
  0xff   :  { %8001 = vst [vmem:[#allocation38_spill] sm:$0xff] %v5122_v23  ;;  %v5126_v25 = vpop.f32.mrf.mxu0 }
 0x100   :  { %8003 = vst [vmem:[#allocation40_spill] sm:$0xff] %v5126_v25  ;;  %v5128_v26 = vpop.f32.mrf.mxu1 }
 0x101   :  { %8004 = vst [vmem:[#allocation41_spill] sm:$0xff] %v5128_v26 }
 0x102   :  { %4095 = vmatmul.msk.bf16.gmra.mxu0 %vm586_vm0, %v4223_v22  ;;  %4127 = vmatmul.msk.bf16.gmra.mxu2 %vm586_vm0, %v4255_v27 }
 0x103   :  { %4159 = vmatmul.msk.bf16.gmra.mxu1 %vm586_vm0, %v4223_v22  ;;  %4191 = vmatmul.msk.bf16.gmra.mxu3 %vm586_vm0, %v4255_v27  ;;  %v4258_v27 = vld [vmem:[%s7624_s1 + $0x178] sm:$0xff] }
 0x105   :  { %v5139_v29 = vpop.f32.mrf.mxu2 }
 0x106   :  { %v5137_v28 = vpop.f32.mrf.mxu3  ;;  %8006 = vst [vmem:[#allocation43_spill] sm:$0xff] %v5139_v29 }
 0x107   :  { %8005 = vst [vmem:[#allocation42_spill] sm:$0xff] %v5137_v28  ;;  %v5141_v30 = vpop.f32.mrf.mxu0 }
 0x108   :  { %8007 = vst [vmem:[#allocation44_spill] sm:$0xff] %v5141_v30  ;;  %v5143_v31 = vpop.f32.mrf.mxu1 }
 0x109   :  { %8008 = vst [vmem:[#allocation45_spill] sm:$0xff] %v5143_v31 }
 0x10d   :  { %v5150_v34 = vpop.f32.mrf.mxu2 }
 0x10e   :  { %v5148_v33 = vpop.f32.mrf.mxu3  ;;  %8010 = vst [vmem:[#allocation47_spill] sm:$0xff] %v5150_v34 }
 0x10f   :  { %8009 = vst [vmem:[#allocation46_spill] sm:$0xff] %v5148_v33  ;;  %v5152_v35 = vpop.f32.mrf.mxu0 }
 0x110   :  { %8011 = vst [vmem:[#allocation48_spill] sm:$0xff] %v5152_v35  ;;  %v5154_v36 = vpop.f32.mrf.mxu1 }
 0x111   :  { %8012 = vst [vmem:[#allocation49_spill] sm:$0xff] %v5154_v36 }
 0x112   :  { %4096 = vmatmul.msk.bf16.gmra.mxu0 %vm586_vm0, %v4224_v32  ;;  %4128 = vmatmul.msk.bf16.gmra.mxu2 %vm586_vm0, %v4256_v37 }
 0x113   :  { %4160 = vmatmul.msk.bf16.gmra.mxu1 %vm586_vm0, %v4224_v32  ;;  %4192 = vmatmul.msk.bf16.gmra.mxu3 %vm586_vm0, %v4256_v37 }
 0x115   :  { %v5165_v39 = vpop.f32.mrf.mxu2 }
 0x116   :  { %v5163_v38 = vpop.f32.mrf.mxu3  ;;  %8014 = vst [vmem:[#allocation51_spill] sm:$0xff] %v5165_v39  ;;  %v4272_v39 = vld [vmem:[%s7624_s1 + $0x1e8] sm:$0xff] }
 0x117   :  { %8013 = vst [vmem:[#allocation50_spill] sm:$0xff] %v5163_v38  ;;  %v5167_v40 = vpop.f32.mrf.mxu0 }
 0x118   :  { %8015 = vst [vmem:[#allocation52_spill] sm:$0xff] %v5167_v40  ;;  %v5169_v41 = vpop.f32.mrf.mxu1 }
 0x119   :  { %8016 = vst [vmem:[#allocation53_spill] sm:$0xff] %v5169_v41 }
 0x11d   :  { %v5176_v44 = vpop.f32.mrf.mxu2 }
 0x11e   :  { %v5174_v43 = vpop.f32.mrf.mxu3  ;;  %8018 = vst [vmem:[#allocation55_spill] sm:$0xff] %v5176_v44 }
 0x11f   :  { %8017 = vst [vmem:[#allocation54_spill] sm:$0xff] %v5174_v43  ;;  %v5178_v45 = vpop.f32.mrf.mxu0 }
 0x120   :  { %8019 = vst [vmem:[#allocation56_spill] sm:$0xff] %v5178_v45  ;;  %v5180_v46 = vpop.f32.mrf.mxu1 }
 0x121   :  { %8020 = vst [vmem:[#allocation57_spill] sm:$0xff] %v5180_v46 }
 0x122   :  { %4097 = vmatmul.msk.bf16.gmra.mxu0 %vm586_vm0, %v4225_v42  ;;  %4129 = vmatmul.msk.bf16.gmra.mxu2 %vm586_vm0, %v4257_v47 }
 0x123   :  { %4161 = vmatmul.msk.bf16.gmra.mxu1 %vm586_vm0, %v4225_v42  ;;  %4193 = vmatmul.msk.bf16.gmra.mxu3 %vm586_vm0, %v4257_v47 }
 0x125   :  { %v5191_v51 = vpop.f32.mrf.mxu2 }
 0x126   :  { %v5189_v48 = vpop.f32.mrf.mxu3  ;;  %8022 = vst [vmem:[#allocation59_spill] sm:$0xff] %v5191_v51 }
 0x127   :  { %8021 = vst [vmem:[#allocation58_spill] sm:$0xff] %v5189_v48  ;;  %v5193_v56 = vpop.f32.mrf.mxu0 }
 0x128   :  { %8023 = vst [vmem:[#allocation60_spill] sm:$0xff] %v5193_v56  ;;  %v5195_v61 = vpop.f32.mrf.mxu1 }
 0x129   :  { %8024 = vst [vmem:[#allocation61_spill] sm:$0xff] %v5195_v61  ;;  %v4240_v61 = vld [vmem:[%s7624_s1 + $0xe8] sm:$0xff] }
 0x12d   :  { %v5202_v12 = vpop.f32.mrf.mxu2 }
 0x12e   :  { %v5200_v7 = vpop.f32.mrf.mxu3  ;;  %8026 = vst [vmem:[#allocation63_spill] sm:$0xff] %v5202_v12  ;;  %v4227_v12 = vld [vmem:[%s7624_s1 + $0x80] sm:$0xff] }
 0x12f   :  { %8025 = vst [vmem:[#allocation62_spill] sm:$0xff] %v5200_v7  ;;  %v5204_v17 = vpop.f32.mrf.mxu0 }
 0x130   :  { %8027 = vst [vmem:[#allocation64_spill] sm:$0xff] %v5204_v17  ;;  %v5206_v22 = vpop.f32.mrf.mxu1 }
 0x131   :  { %8028 = vst [vmem:[#allocation65_spill] sm:$0xff] %v5206_v22 }
 0x132   :  { %4098 = vmatmul.msk.bf16.gmra.mxu0 %vm586_vm0, %v4226_v2  ;;  %4130 = vmatmul.msk.bf16.gmra.mxu2 %vm586_vm0, %v4258_v27 }
 0x133   :  { %4162 = vmatmul.msk.bf16.gmra.mxu1 %vm586_vm0, %v4226_v2  ;;  %4194 = vmatmul.msk.bf16.gmra.mxu3 %vm586_vm0, %v4258_v27  ;;  %v4259_v27 = vld [vmem:[%s7624_s1 + $0x180] sm:$0xff] }
 0x135   :  { %v5217_v37 = vpop.f32.mrf.mxu2 }
 0x136   :  { %v5215_v32 = vpop.f32.mrf.mxu3  ;;  %8030 = vst [vmem:[#allocation67_spill] sm:$0xff] %v5217_v37 }
 0x137   :  { %8029 = vst [vmem:[#allocation66_spill] sm:$0xff] %v5215_v32  ;;  %v5219_v42 = vpop.f32.mrf.mxu0 }
 0x138   :  { %8031 = vst [vmem:[#allocation68_spill] sm:$0xff] %v5219_v42  ;;  %v5221_v47 = vpop.f32.mrf.mxu1 }
 0x139   :  { %8032 = vst [vmem:[#allocation69_spill] sm:$0xff] %v5221_v47 }
 0x13d   :  { %v5228_v22 = vpop.f32.mrf.mxu2 }
 0x13e   :  { %v5226_v7 = vpop.f32.mrf.mxu3  ;;  %8034 = vst [vmem:[#allocation71_spill] sm:$0xff] %v5228_v22 }
 0x13f   :  { %8033 = vst [vmem:[#allocation70_spill] sm:$0xff] %v5226_v7  ;;  %v5230_v2 = vpop.f32.mrf.mxu0 }
 0x140   :  { %8035 = vst [vmem:[#allocation72_spill] sm:$0xff] %v5230_v2  ;;  %v5232_v17 = vpop.f32.mrf.mxu1 }
 0x141   :  { %8036 = vst [vmem:[#allocation73_spill] sm:$0xff] %v5232_v17  ;;  %v4228_v17 = vld [vmem:[%s7624_s1 + $0x88] sm:$0xff] }
 0x142   :  { %4099 = vmatmul.msk.bf16.gmra.mxu0 %vm586_vm0, %v4227_v12  ;;  %4131 = vmatmul.msk.bf16.gmra.mxu2 %vm586_vm0, %v4259_v27 }
 0x143   :  { %4163 = vmatmul.msk.bf16.gmra.mxu1 %vm586_vm0, %v4227_v12  ;;  %4195 = vmatmul.msk.bf16.gmra.mxu3 %vm586_vm0, %v4259_v27  ;;  %v4260_v27 = vld [vmem:[%s7624_s1 + $0x188] sm:$0xff] }
 0x145   :  { %v5243_v7 = vpop.f32.mrf.mxu2 }
 0x146   :  { %v5241_v37 = vpop.f32.mrf.mxu3  ;;  %8038 = vst [vmem:[#allocation75_spill] sm:$0xff] %v5243_v7 }
 0x147   :  { %8037 = vst [vmem:[#allocation74_spill] sm:$0xff] %v5241_v37  ;;  %v5245_v22 = vpop.f32.mrf.mxu0 }
 0x148   :  { %8039 = vst [vmem:[#allocation76_spill] sm:$0xff] %v5245_v22  ;;  %v5247_v2 = vpop.f32.mrf.mxu1 }
 0x149   :  { %8040 = vst [vmem:[#allocation77_spill] sm:$0xff] %v5247_v2 }
 0x14d   :  { %v5254_v47 = vpop.f32.mrf.mxu2 }
 0x14e   :  { %v5252_v32 = vpop.f32.mrf.mxu3  ;;  %8042 = vst [vmem:[#allocation79_spill] sm:$0xff] %v5254_v47 }
 0x14f   :  { %8041 = vst [vmem:[#allocation78_spill] sm:$0xff] %v5252_v32  ;;  %v5256_v12 = vpop.f32.mrf.mxu0 }
 0x150   :  { %8043 = vst [vmem:[#allocation80_spill] sm:$0xff] %v5256_v12  ;;  %v5258_v42 = vpop.f32.mrf.mxu1 }
 0x151   :  { %8044 = vst [vmem:[#allocation81_spill] sm:$0xff] %v5258_v42  ;;  %v4229_v42 = vld [vmem:[%s7624_s1 + $0x90] sm:$0xff] }
 0x152   :  { %4100 = vmatmul.msk.bf16.gmra.mxu0 %vm586_vm0, %v4228_v17  ;;  %4132 = vmatmul.msk.bf16.gmra.mxu2 %vm586_vm0, %v4260_v27 }
 0x153   :  { %4164 = vmatmul.msk.bf16.gmra.mxu1 %vm586_vm0, %v4228_v17  ;;  %4196 = vmatmul.msk.bf16.gmra.mxu3 %vm586_vm0, %v4260_v27  ;;  %v4261_v27 = vld [vmem:[%s7624_s1 + $0x190] sm:$0xff] }
 0x155   :  { %v5269_v32 = vpop.f32.mrf.mxu2 }
 0x156   :  { %v5267_v7 = vpop.f32.mrf.mxu3  ;;  %8046 = vst [vmem:[#allocation83_spill] sm:$0xff] %v5269_v32 }
 0x157   :  { %8045 = vst [vmem:[#allocation82_spill] sm:$0xff] %v5267_v7  ;;  %v5271_v47 = vpop.f32.mrf.mxu0 }
 0x158   :  { %8047 = vst [vmem:[#allocation84_spill] sm:$0xff] %v5271_v47  ;;  %v5273_v12 = vpop.f32.mrf.mxu1 }
 0x159   :  { %8048 = vst [vmem:[#allocation85_spill] sm:$0xff] %v5273_v12 }
 0x15d   :  { %v5280_v2 = vpop.f32.mrf.mxu2 }
 0x15e   :  { %v5278_v37 = vpop.f32.mrf.mxu3  ;;  %8050 = vst [vmem:[#allocation87_spill] sm:$0xff] %v5280_v2 }
 0x15f   :  { %8049 = vst [vmem:[#allocation86_spill] sm:$0xff] %v5278_v37  ;;  %v5282_v17 = vpop.f32.mrf.mxu0 }
 0x160   :  { %8051 = vst [vmem:[#allocation88_spill] sm:$0xff] %v5282_v17  ;;  %v5284_v22 = vpop.f32.mrf.mxu1 }
 0x161   :  { %8052 = vst [vmem:[#allocation89_spill] sm:$0xff] %v5284_v22  ;;  %v4230_v22 = vld [vmem:[%s7624_s1 + $0x98] sm:$0xff] }
 0x162   :  { %4101 = vmatmul.msk.bf16.gmra.mxu0 %vm586_vm0, %v4229_v42  ;;  %4133 = vmatmul.msk.bf16.gmra.mxu2 %vm586_vm0, %v4261_v27 }
 0x163   :  { %4165 = vmatmul.msk.bf16.gmra.mxu1 %vm586_vm0, %v4229_v42  ;;  %4197 = vmatmul.msk.bf16.gmra.mxu3 %vm586_vm0, %v4261_v27  ;;  %v4262_v27 = vld [vmem:[%s7624_s1 + $0x198] sm:$0xff] }
 0x165   :  { %v5295_v37 = vpop.f32.mrf.mxu2 }
 0x166   :  { %v5293_v32 = vpop.f32.mrf.mxu3  ;;  %8054 = vst [vmem:[#allocation91_spill] sm:$0xff] %v5295_v37 }
 0x167   :  { %8053 = vst [vmem:[#allocation90_spill] sm:$0xff] %v5293_v32  ;;  %v5297_v2 = vpop.f32.mrf.mxu0 }
 0x168   :  { %8055 = vst [vmem:[#allocation92_spill] sm:$0xff] %v5297_v2  ;;  %v5299_v17 = vpop.f32.mrf.mxu1 }
 0x169   :  { %8056 = vst [vmem:[#allocation93_spill] sm:$0xff] %v5299_v17 }
 0x16d   :  { %v5306_v12 = vpop.f32.mrf.mxu2 }
 0x16e   :  { %v5304_v7 = vpop.f32.mrf.mxu3  ;;  %8058 = vst [vmem:[#allocation95_spill] sm:$0xff] %v5306_v12 }
 0x16f   :  { %8057 = vst [vmem:[#allocation94_spill] sm:$0xff] %v5304_v7  ;;  %v5308_v42 = vpop.f32.mrf.mxu0 }
 0x170   :  { %8059 = vst [vmem:[#allocation96_spill] sm:$0xff] %v5308_v42  ;;  %v5310_v47 = vpop.f32.mrf.mxu1 }
 0x171   :  { %8060 = vst [vmem:[#allocation97_spill] sm:$0xff] %v5310_v47  ;;  %v4231_v47 = vld [vmem:[%s7624_s1 + $0xa0] sm:$0xff] }
 0x172   :  { %4102 = vmatmul.msk.bf16.gmra.mxu0 %vm586_vm0, %v4230_v22  ;;  %4134 = vmatmul.msk.bf16.gmra.mxu2 %vm586_vm0, %v4262_v27 }
 0x173   :  { %4166 = vmatmul.msk.bf16.gmra.mxu1 %vm586_vm0, %v4230_v22  ;;  %4198 = vmatmul.msk.bf16.gmra.mxu3 %vm586_vm0, %v4262_v27  ;;  %v4263_v27 = vld [vmem:[%s7624_s1 + $0x1a0] sm:$0xff] }
 0x175   :  { %v5321_v7 = vpop.f32.mrf.mxu2 }
 0x176   :  { %v5319_v37 = vpop.f32.mrf.mxu3  ;;  %8062 = vst [vmem:[#allocation99_spill] sm:$0xff] %v5321_v7 }
 0x177   :  { %8061 = vst [vmem:[#allocation98_spill] sm:$0xff] %v5319_v37  ;;  %v5323_v12 = vpop.f32.mrf.mxu0 }
 0x178   :  { %8063 = vst [vmem:[#allocation100_spill] sm:$0xff] %v5323_v12  ;;  %v5325_v42 = vpop.f32.mrf.mxu1 }
 0x179   :  { %8064 = vst [vmem:[#allocation101_spill] sm:$0xff] %v5325_v42 }
 0x17d   :  { %v5332_v17 = vpop.f32.mrf.mxu2 }
 0x17e   :  { %v5330_v32 = vpop.f32.mrf.mxu3  ;;  %8066 = vst [vmem:[#allocation103_spill] sm:$0xff] %v5332_v17 }
 0x17f   :  { %8065 = vst [vmem:[#allocation102_spill] sm:$0xff] %v5330_v32  ;;  %v5334_v22 = vpop.f32.mrf.mxu0 }
 0x180   :  { %8067 = vst [vmem:[#allocation104_spill] sm:$0xff] %v5334_v22  ;;  %v5336_v2 = vpop.f32.mrf.mxu1 }
 0x181   :  { %8068 = vst [vmem:[#allocation105_spill] sm:$0xff] %v5336_v2  ;;  %v4232_v2 = vld [vmem:[%s7624_s1 + $0xa8] sm:$0xff] }
 0x182   :  { %4103 = vmatmul.msk.bf16.gmra.mxu0 %vm586_vm0, %v4231_v47  ;;  %4135 = vmatmul.msk.bf16.gmra.mxu2 %vm586_vm0, %v4263_v27 }
 0x183   :  { %4167 = vmatmul.msk.bf16.gmra.mxu1 %vm586_vm0, %v4231_v47  ;;  %4199 = vmatmul.msk.bf16.gmra.mxu3 %vm586_vm0, %v4263_v27  ;;  %v4264_v27 = vld [vmem:[%s7624_s1 + $0x1a8] sm:$0xff] }
 0x185   :  { %v5347_v32 = vpop.f32.mrf.mxu2 }
 0x186   :  { %v5345_v7 = vpop.f32.mrf.mxu3  ;;  %8070 = vst [vmem:[#allocation107_spill] sm:$0xff] %v5347_v32 }
 0x187   :  { %8069 = vst [vmem:[#allocation106_spill] sm:$0xff] %v5345_v7  ;;  %v5349_v17 = vpop.f32.mrf.mxu0 }
 0x188   :  { %8071 = vst [vmem:[#allocation108_spill] sm:$0xff] %v5349_v17  ;;  %v5351_v22 = vpop.f32.mrf.mxu1 }
 0x189   :  { %8072 = vst [vmem:[#allocation109_spill] sm:$0xff] %v5351_v22 }
 0x18d   :  { %v5358_v42 = vpop.f32.mrf.mxu2 }
 0x18e   :  { %v5356_v37 = vpop.f32.mrf.mxu3  ;;  %8074 = vst [vmem:[#allocation111_spill] sm:$0xff] %v5358_v42 }
 0x18f   :  { %8073 = vst [vmem:[#allocation110_spill] sm:$0xff] %v5356_v37  ;;  %v5360_v47 = vpop.f32.mrf.mxu0 }
 0x190   :  { %8075 = vst [vmem:[#allocation112_spill] sm:$0xff] %v5360_v47  ;;  %v5362_v12 = vpop.f32.mrf.mxu1 }
 0x191   :  { %8076 = vst [vmem:[#allocation113_spill] sm:$0xff] %v5362_v12  ;;  %v4233_v12 = vld [vmem:[%s7624_s1 + $0xb0] sm:$0xff] }
 0x192   :  { %4104 = vmatmul.msk.bf16.gmra.mxu0 %vm586_vm0, %v4232_v2  ;;  %4136 = vmatmul.msk.bf16.gmra.mxu2 %vm586_vm0, %v4264_v27 }
 0x193   :  { %4168 = vmatmul.msk.bf16.gmra.mxu1 %vm586_vm0, %v4232_v2  ;;  %4200 = vmatmul.msk.bf16.gmra.mxu3 %vm586_vm0, %v4264_v27  ;;  %v4265_v27 = vld [vmem:[%s7624_s1 + $0x1b0] sm:$0xff] }
 0x195   :  { %v5373_v37 = vpop.f32.mrf.mxu2 }
 0x196   :  { %v5371_v32 = vpop.f32.mrf.mxu3  ;;  %8078 = vst [vmem:[#allocation115_spill] sm:$0xff] %v5373_v37 }
 0x197   :  { %8077 = vst [vmem:[#allocation114_spill] sm:$0xff] %v5371_v32  ;;  %v5375_v42 = vpop.f32.mrf.mxu0 }
 0x198   :  { %8079 = vst [vmem:[#allocation116_spill] sm:$0xff] %v5375_v42  ;;  %v5377_v47 = vpop.f32.mrf.mxu1 }
 0x199   :  { %8080 = vst [vmem:[#allocation117_spill] sm:$0xff] %v5377_v47 }
 0x19d   :  { %v5384_v22 = vpop.f32.mrf.mxu2 }
 0x19e   :  { %v5382_v7 = vpop.f32.mrf.mxu3  ;;  %8082 = vst [vmem:[#allocation119_spill] sm:$0xff] %v5384_v22 }
 0x19f   :  { %8081 = vst [vmem:[#allocation118_spill] sm:$0xff] %v5382_v7  ;;  %v5386_v2 = vpop.f32.mrf.mxu0 }
 0x1a0   :  { %8083 = vst [vmem:[#allocation120_spill] sm:$0xff] %v5386_v2  ;;  %v5388_v17 = vpop.f32.mrf.mxu1 }
 0x1a1   :  { %8084 = vst [vmem:[#allocation121_spill] sm:$0xff] %v5388_v17  ;;  %v4234_v17 = vld [vmem:[%s7624_s1 + $0xb8] sm:$0xff] }
 0x1a2   :  { %4105 = vmatmul.msk.bf16.gmra.mxu0 %vm586_vm0, %v4233_v12  ;;  %4137 = vmatmul.msk.bf16.gmra.mxu2 %vm586_vm0, %v4265_v27 }
 0x1a3   :  { %4169 = vmatmul.msk.bf16.gmra.mxu1 %vm586_vm0, %v4233_v12  ;;  %4201 = vmatmul.msk.bf16.gmra.mxu3 %vm586_vm0, %v4265_v27  ;;  %v4266_v27 = vld [vmem:[%s7624_s1 + $0x1b8] sm:$0xff] }
 0x1a5   :  { %v5399_v7 = vpop.f32.mrf.mxu2 }
 0x1a6   :  { %v5397_v37 = vpop.f32.mrf.mxu3  ;;  %8086 = vst [vmem:[#allocation123_spill] sm:$0xff] %v5399_v7 }
 0x1a7   :  { %8085 = vst [vmem:[#allocation122_spill] sm:$0xff] %v5397_v37  ;;  %v5401_v22 = vpop.f32.mrf.mxu0 }
 0x1a8   :  { %8087 = vst [vmem:[#allocation124_spill] sm:$0xff] %v5401_v22  ;;  %v5403_v2 = vpop.f32.mrf.mxu1 }
 0x1a9   :  { %8088 = vst [vmem:[#allocation125_spill] sm:$0xff] %v5403_v2 }
 0x1ad   :  { %v5410_v47 = vpop.f32.mrf.mxu2 }
 0x1ae   :  { %v5408_v32 = vpop.f32.mrf.mxu3  ;;  %8090 = vst [vmem:[#allocation127_spill] sm:$0xff] %v5410_v47 }
 0x1af   :  { %8089 = vst [vmem:[#allocation126_spill] sm:$0xff] %v5408_v32  ;;  %v5412_v12 = vpop.f32.mrf.mxu0 }
 0x1b0   :  { %8091 = vst [vmem:[#allocation128_spill] sm:$0xff] %v5412_v12  ;;  %v5414_v42 = vpop.f32.mrf.mxu1 }
 0x1b1   :  { %8092 = vst [vmem:[#allocation129_spill] sm:$0xff] %v5414_v42  ;;  %v4235_v42 = vld [vmem:[%s7624_s1 + $0xc0] sm:$0xff] }
 0x1b2   :  { %4106 = vmatmul.msk.bf16.gmra.mxu0 %vm586_vm0, %v4234_v17  ;;  %4138 = vmatmul.msk.bf16.gmra.mxu2 %vm586_vm0, %v4266_v27 }
 0x1b3   :  { %4170 = vmatmul.msk.bf16.gmra.mxu1 %vm586_vm0, %v4234_v17  ;;  %4202 = vmatmul.msk.bf16.gmra.mxu3 %vm586_vm0, %v4266_v27  ;;  %v4267_v27 = vld [vmem:[%s7624_s1 + $0x1c0] sm:$0xff] }
 0x1b5   :  { %v5425_v32 = vpop.f32.mrf.mxu2 }
 0x1b6   :  { %v5423_v7 = vpop.f32.mrf.mxu3  ;;  %8094 = vst [vmem:[#allocation131_spill] sm:$0xff] %v5425_v32 }
 0x1b7   :  { %8093 = vst [vmem:[#allocation130_spill] sm:$0xff] %v5423_v7  ;;  %v5427_v47 = vpop.f32.mrf.mxu0 }
 0x1b8   :  { %8095 = vst [vmem:[#allocation132_spill] sm:$0xff] %v5427_v47  ;;  %v5429_v12 = vpop.f32.mrf.mxu1 }
 0x1b9   :  { %8096 = vst [vmem:[#allocation133_spill] sm:$0xff] %v5429_v12 }
 0x1bd   :  { %v5436_v2 = vpop.f32.mrf.mxu2 }
 0x1be   :  { %v5434_v37 = vpop.f32.mrf.mxu3  ;;  %8098 = vst [vmem:[#allocation135_spill] sm:$0xff] %v5436_v2 }
 0x1bf   :  { %8097 = vst [vmem:[#allocation134_spill] sm:$0xff] %v5434_v37  ;;  %v5438_v17 = vpop.f32.mrf.mxu0 }
 0x1c0   :  { %8099 = vst [vmem:[#allocation136_spill] sm:$0xff] %v5438_v17  ;;  %v5440_v22 = vpop.f32.mrf.mxu1 }
 0x1c1   :  { %8100 = vst [vmem:[#allocation137_spill] sm:$0xff] %v5440_v22  ;;  %v4236_v22 = vld [vmem:[%s7624_s1 + $0xc8] sm:$0xff] }
 0x1c2   :  { %4107 = vmatmul.msk.bf16.gmra.mxu0 %vm586_vm0, %v4235_v42  ;;  %4139 = vmatmul.msk.bf16.gmra.mxu2 %vm586_vm0, %v4267_v27 }
 0x1c3   :  { %4171 = vmatmul.msk.bf16.gmra.mxu1 %vm586_vm0, %v4235_v42  ;;  %4203 = vmatmul.msk.bf16.gmra.mxu3 %vm586_vm0, %v4267_v27  ;;  %v4268_v27 = vld [vmem:[%s7624_s1 + $0x1c8] sm:$0xff] }
 0x1c5   :  { %v5451_v37 = vpop.f32.mrf.mxu2 }
 0x1c6   :  { %v5449_v32 = vpop.f32.mrf.mxu3  ;;  %8102 = vst [vmem:[#allocation139_spill] sm:$0xff] %v5451_v37 }
 0x1c7   :  { %8101 = vst [vmem:[#allocation138_spill] sm:$0xff] %v5449_v32  ;;  %v5453_v2 = vpop.f32.mrf.mxu0 }
 0x1c8   :  { %8103 = vst [vmem:[#allocation140_spill] sm:$0xff] %v5453_v2  ;;  %v5455_v17 = vpop.f32.mrf.mxu1 }
 0x1c9   :  { %8104 = vst [vmem:[#allocation141_spill] sm:$0xff] %v5455_v17 }
 0x1cd   :  { %v5462_v12 = vpop.f32.mrf.mxu2 }
 0x1ce   :  { %v5460_v7 = vpop.f32.mrf.mxu3  ;;  %8106 = vst [vmem:[#allocation143_spill] sm:$0xff] %v5462_v12 }
 0x1cf   :  { %8105 = vst [vmem:[#allocation142_spill] sm:$0xff] %v5460_v7  ;;  %v5464_v42 = vpop.f32.mrf.mxu0 }
 0x1d0   :  { %8107 = vst [vmem:[#allocation144_spill] sm:$0xff] %v5464_v42  ;;  %v5466_v47 = vpop.f32.mrf.mxu1 }
 0x1d1   :  { %8108 = vst [vmem:[#allocation145_spill] sm:$0xff] %v5466_v47  ;;  %v4237_v47 = vld [vmem:[%s7624_s1 + $0xd0] sm:$0xff] }
 0x1d2   :  { %4108 = vmatmul.msk.bf16.gmra.mxu0 %vm586_vm0, %v4236_v22  ;;  %4140 = vmatmul.msk.bf16.gmra.mxu2 %vm586_vm0, %v4268_v27 }
 0x1d3   :  { %4172 = vmatmul.msk.bf16.gmra.mxu1 %vm586_vm0, %v4236_v22  ;;  %4204 = vmatmul.msk.bf16.gmra.mxu3 %vm586_vm0, %v4268_v27  ;;  %v4269_v27 = vld [vmem:[%s7624_s1 + $0x1d0] sm:$0xff] }
 0x1d5   :  { %v5477_v7 = vpop.f32.mrf.mxu2 }
 0x1d6   :  { %v5475_v37 = vpop.f32.mrf.mxu3  ;;  %8110 = vst [vmem:[#allocation147_spill] sm:$0xff] %v5477_v7 }
 0x1d7   :  { %8109 = vst [vmem:[#allocation146_spill] sm:$0xff] %v5475_v37  ;;  %v5479_v12 = vpop.f32.mrf.mxu0 }
 0x1d8   :  { %8111 = vst [vmem:[#allocation148_spill] sm:$0xff] %v5479_v12  ;;  %v5481_v42 = vpop.f32.mrf.mxu1 }
 0x1d9   :  { %8112 = vst [vmem:[#allocation149_spill] sm:$0xff] %v5481_v42 }
 0x1dd   :  { %v5488_v17 = vpop.f32.mrf.mxu2 }
 0x1de   :  { %v5486_v32 = vpop.f32.mrf.mxu3  ;;  %8114 = vst [vmem:[#allocation151_spill] sm:$0xff] %v5488_v17 }
 0x1df   :  { %8113 = vst [vmem:[#allocation150_spill] sm:$0xff] %v5486_v32  ;;  %v5490_v22 = vpop.f32.mrf.mxu0 }
 0x1e0   :  { %8115 = vst [vmem:[#allocation152_spill] sm:$0xff] %v5490_v22  ;;  %v5492_v2 = vpop.f32.mrf.mxu1 }
 0x1e1   :  { %8116 = vst [vmem:[#allocation153_spill] sm:$0xff] %v5492_v2  ;;  %v4238_v2 = vld [vmem:[%s7624_s1 + $0xd8] sm:$0xff] }
 0x1e2   :  { %4109 = vmatmul.msk.bf16.gmra.mxu0 %vm586_vm0, %v4237_v47  ;;  %4141 = vmatmul.msk.bf16.gmra.mxu2 %vm586_vm0, %v4269_v27 }
 0x1e3   :  { %4173 = vmatmul.msk.bf16.gmra.mxu1 %vm586_vm0, %v4237_v47  ;;  %4205 = vmatmul.msk.bf16.gmra.mxu3 %vm586_vm0, %v4269_v27  ;;  %v4270_v27 = vld [vmem:[%s7624_s1 + $0x1d8] sm:$0xff] }
 0x1e5   :  { %v5503_v32 = vpop.f32.mrf.mxu2 }
 0x1e6   :  { %v5501_v7 = vpop.f32.mrf.mxu3  ;;  %8118 = vst [vmem:[#allocation155_spill] sm:$0xff] %v5503_v32 }
 0x1e7   :  { %8117 = vst [vmem:[#allocation154_spill] sm:$0xff] %v5501_v7  ;;  %v5505_v17 = vpop.f32.mrf.mxu0 }
 0x1e8   :  { %8119 = vst [vmem:[#allocation156_spill] sm:$0xff] %v5505_v17  ;;  %v5507_v22 = vpop.f32.mrf.mxu1 }
 0x1e9   :  { %8120 = vst [vmem:[#allocation157_spill] sm:$0xff] %v5507_v22 }
 0x1ed   :  { %v5514_v42 = vpop.f32.mrf.mxu2 }
 0x1ee   :  { %v5512_v37 = vpop.f32.mrf.mxu3  ;;  %8122 = vst [vmem:[#allocation159_spill] sm:$0xff] %v5514_v42 }
 0x1ef   :  { %8121 = vst [vmem:[#allocation158_spill] sm:$0xff] %v5512_v37  ;;  %v5516_v47 = vpop.f32.mrf.mxu0 }
 0x1f0   :  { %8123 = vst [vmem:[#allocation160_spill] sm:$0xff] %v5516_v47  ;;  %v5518_v12 = vpop.f32.mrf.mxu1 }
 0x1f1   :  { %8124 = vst [vmem:[#allocation161_spill] sm:$0xff] %v5518_v12  ;;  %v4239_v12 = vld [vmem:[%s7624_s1 + $0xe0] sm:$0xff] }
 0x1f2   :  { %4110 = vmatmul.msk.bf16.gmra.mxu0 %vm586_vm0, %v4238_v2  ;;  %4142 = vmatmul.msk.bf16.gmra.mxu2 %vm586_vm0, %v4270_v27 }
 0x1f3   :  { %4174 = vmatmul.msk.bf16.gmra.mxu1 %vm586_vm0, %v4238_v2  ;;  %4206 = vmatmul.msk.bf16.gmra.mxu3 %vm586_vm0, %v4270_v27  ;;  %v4271_v27 = vld [vmem:[%s7624_s1 + $0x1e0] sm:$0xff] }
 0x1f5   :  { %v5529_v37 = vpop.f32.mrf.mxu2 }
 0x1f6   :  { %v5527_v32 = vpop.f32.mrf.mxu3  ;;  %8126 = vst [vmem:[#allocation163_spill] sm:$0xff] %v5529_v37  ;;  %v7737_v37 = vlaneseq }
 0x1f7   :  { %8125 = vst [vmem:[#allocation162_spill] sm:$0xff] %v5527_v32  ;;  %v5531_v42 = vpop.f32.mrf.mxu0 }
 0x1f8   :  { %8127 = vst [vmem:[#allocation164_spill] sm:$0xff] %v5531_v42  ;;  %v5533_v47 = vpop.f32.mrf.mxu1 }
 0x1f9   :  { %8128 = vst [vmem:[#allocation165_spill] sm:$0xff] %v5533_v47 }
 0x1fd   :  { %v5540_v22 = vpop.f32.mrf.mxu2 }
 0x1fe   :  { %v5538_v7 = vpop.f32.mrf.mxu3  ;;  %8130 = vst [vmem:[#allocation167_spill] sm:$0xff] %v5540_v22  ;;  %v1614_v22 = vld [vmem:[%s7625_s2] sm:$0x3] }
 0x1ff   :  { %8129 = vst [vmem:[#allocation166_spill] sm:$0xff] %v5538_v7  ;;  %v5542_v2 = vpop.f32.mrf.mxu0  ;;  %v5557_v7 = vshrl.u32 %v7737_v37, 7  ;;  %v5563_v32 = vperm.slane %v1614_v22, 0  ;;  %v5565_v47 = vperm.slane %v1614_v22, 1 }
 0x200   :  { %8131 = vst [vmem:[#allocation168_spill] sm:$0xff] %v5542_v2  ;;  %v5544_v17 = vpop.f32.mrf.mxu1 }
 0x201   :  { %8132 = vst [vmem:[#allocation169_spill] sm:$0xff] %v5544_v17  ;;  %v1488_v51 = vadd.s32 16, %v5557_v7  ;;  %v1550_v48 = vadd.s32 512, %v5557_v7  ;;  %v5575_v37 = vadd.s32 520, %v5557_v7  ;;  %vm1621_vm1 = vcmp.eq.s32.totalorder %v5557_v7, %v5563_v32 }
 0x202   :  { %4111 = vmatmul.msk.bf16.gmra.mxu0 %vm586_vm0, %v4239_v12  ;;  %4143 = vmatmul.msk.bf16.gmra.mxu2 %vm586_vm0, %v4271_v27  ;;  %vm1622_vm2 = vcmp.eq.s32.totalorder %v5557_v7, %v5565_v47  ;;  %v1490_v22 = vadd.s32 32, %v5557_v7  ;;  %v1877_v43 = vsel %vm1621_vm1, %v5022_v49, 0.0  ;;  %v5619_v45 = vadd.s32 536, %v5557_v7 }
 0x203   :  { %4175 = vmatmul.msk.bf16.gmra.mxu1 %vm586_vm0, %v4239_v12  ;;  %4207 = vmatmul.msk.bf16.gmra.mxu3 %vm586_vm0, %v4271_v27  ;;  %v1487_v12 = vadd.s32 8, %v5557_v7  ;;  %vm1625_vm5 = vcmp.eq.s32.totalorder %v1488_v51, %v5563_v32  ;;  %vm1626_vm6 = vcmp.eq.s32.totalorder %v1488_v51, %v5565_v47  ;;  %vm1750_vm7 = vcmp.eq.s32.totalorder %v1550_v48, %v5565_v47 }
 0x204   :  { %vm1749_vm8 = vcmp.eq.s32.totalorder %v1550_v48, %v5563_v32  ;;  %vm1752_vm9 = vcmp.eq.s32.totalorder %v5575_v37, %v5565_v47  ;;  %v1878_v46 = vsel %vm1622_vm2, %v5024_v50, 0.0  ;;  %8140 = vst [vmem:[#allocation177_spill] sm:$0xff] %v5619_v45  ;;  %vm1629_vm12 = vcmp.eq.s32.totalorder %v1490_v22, %v5563_v32 }
 0x205   :  { %v5561_v2 = vpop.f32.mrf.mxu2  ;;  %vm1623_vm3 = vcmp.eq.s32.totalorder %v1487_v12, %v5563_v32  ;;  %vm1624_vm4 = vcmp.eq.s32.totalorder %v1487_v12, %v5565_v47  ;;  %vm1630_vm13 = vcmp.eq.s32.totalorder %v1490_v22, %v5565_v47  ;;  %v5633_v12 = vsel %vm1750_vm7, %v5033_v52, 0.0 }
 0x206   :  { %v5559_v17 = vpop.f32.mrf.mxu3  ;;  %8134 = vst [vmem:[#allocation171_spill] sm:$0xff] %v5561_v2  ;;  %v5588_v2 = vadd.s32 40, %v5557_v7  ;;  %v5638_v45 = vsel %vm1749_vm8, %v5035_v53, 0.0  ;;  %v1881_v41 = vsel %vm1625_vm5, %v5048_v59, 0.0  ;;  %v1882_v48 = vsel %vm1626_vm6, %v5050_v60, 0.0 }
 0x207   :  { %8133 = vst [vmem:[#allocation170_spill] sm:$0xff] %v5559_v17  ;;  %v5568_v42 = vpop.f32.mrf.mxu0  ;;  %v1489_v17 = vadd.s32 24, %v5557_v7  ;;  %v2474_v51 = vmax.f32 %v5046_v58, %v5035_v53 }
 0x208   :  { %8135 = vst [vmem:[#allocation172_spill] sm:$0xff] %v5568_v42  ;;  %v5570_v27 = vpop.f32.mrf.mxu1  ;;  %v5598_v42 = vadd.s32 528, %v5557_v7  ;;  %vm1631_vm14 = vcmp.eq.s32.totalorder %v5588_v2, %v5563_v32  ;;  %vm1632_vm15 = vcmp.eq.s32.totalorder %v5588_v2, %v5565_v47 }
 0x209   :  { %8136 = vst [vmem:[#allocation173_spill] sm:$0xff] %v5570_v27  ;;  %v1879_v27 = vsel %vm1623_vm3, %v5037_v54, 0.0  ;;  %vm1627_vm10 = vcmp.eq.s32.totalorder %v1489_v17, %v5563_v32  ;;  %vm1628_vm11 = vcmp.eq.s32.totalorder %v1489_v17, %v5565_v47  ;;  %v1494_v17 = vadd.s32 64, %v5557_v7 }
 0x20a   :  { %8137 = vst [vmem:[#allocation174_spill] sm:$0xff] %v5598_v42  ;;  %v1880_v42 = vsel %vm1624_vm4, %v5039_v55, 0.0  ;;  %v1888_v22 = vsel %vm1632_vm15, %v5091_v11, 0.0  ;;  %vm1751_vm15 = vcmp.eq.s32.totalorder %v5575_v37, %v5563_v32 }
 0x20b   :  { %8143 = vst [vmem:[#allocation180_spill] sm:$0xff] %v5633_v12  ;;  %v2266_v38 = vadd.f32 %v1880_v42, %v1878_v46  ;;  %v5652_v12 = vadd.s32 544, %v5557_v7  ;;  %v5662_v46 = vsel %vm1752_vm9, %v5044_v57, 0.0  ;;  %v5667_v42 = vadd.s32 552, %v5557_v7 }
 0x20c   :  { %8144 = vst [vmem:[#allocation181_spill] sm:$0xff] %v5638_v45  ;;  %v1884_v45 = vsel %vm1628_vm11, %v5065_v1, 0.0  ;;  %vm1637_vm5 = vcmp.eq.s32.totalorder %v1494_v17, %v5563_v32  ;;  %vm1638_vm6 = vcmp.eq.s32.totalorder %v1494_v17, %v5565_v47 }
 0x20d   :  { %v5605_v44 = vpop.f32.mrf.mxu2  ;;  %8145 = vst [vmem:[#allocation182_spill] sm:$0xff] %v5652_v12 }
 0x20e   :  { %v5603_v56 = vpop.f32.mrf.mxu3  ;;  %8139 = vst [vmem:[#allocation176_spill] sm:$0xff] %v5605_v44 }
 0x20f   :  { %8138 = vst [vmem:[#allocation175_spill] sm:$0xff] %v5603_v56  ;;  %v5621_v56 = vpop.f32.mrf.mxu0 }
 0x210   :  { %8141 = vst [vmem:[#allocation178_spill] sm:$0xff] %v5621_v56  ;;  %v5623_v44 = vpop.f32.mrf.mxu1  ;;  %v2133_v56 = vadd.f32 %v1879_v27, %v1877_v43  ;;  %v2607_v43 = vmax.f32 %v5044_v57, %v5033_v52  ;;  %v2545_v27 = vmax.f32 %v5024_v50, %v5050_v60  ;;  %v1883_v57 = vsel %vm1627_vm10, %v5063_v0, 0.0 }
 0x211   :  { %8142 = vst [vmem:[#allocation179_spill] sm:$0xff] %v5623_v44  ;;  %v1492_v44 = vadd.s32 48, %v5557_v7  ;;  %v1493_v52 = vadd.s32 56, %v5557_v7  ;;  %v2476_v50 = vmax.f32 %v2474_v51, %v5061_v63  ;;  %v1886_v51 = vsel %vm1630_vm13, %v5076_v6, 0.0  ;;  %v8223_v63 = vld [vmem:[#allocation105_spill] sm:$0xff] }
 0x212   :  { %4112 = vmatmul.msk.bf16.gmra.mxu0 %vm586_vm0, %v4240_v61  ;;  %8146 = vst [vmem:[#allocation183_spill] sm:$0xff] %v5662_v46  ;;  %4144 = vmatmul.msk.bf16.gmra.mxu2 %vm586_vm0, %v4272_v39  ;;  %v2134_v53 = vadd.f32 %v2133_v56, %v1881_v41  ;;  %v2267_v46 = vadd.f32 %v2266_v38, %v1882_v48  ;;  %v1885_v56 = vsel %vm1629_vm12, %v5074_v5, 0.0 }
 0x213   :  { %4176 = vmatmul.msk.bf16.gmra.mxu1 %vm586_vm0, %v4240_v61  ;;  %8147 = vst [vmem:[#allocation184_spill] sm:$0xff] %v5667_v42  ;;  %4208 = vmatmul.msk.bf16.gmra.mxu3 %vm586_vm0, %v4272_v39  ;;  %v2412_v61 = vmax.f32 %v5022_v49, %v5048_v59  ;;  %vm1633_vm1 = vcmp.eq.s32.totalorder %v1492_v44, %v5563_v32  ;;  %v8229_v42 = vld [vmem:[#allocation109_spill] sm:$0xff] }
 0x214   :  { %v2413_v39 = vmax.f32 %v5037_v54, %v5063_v0  ;;  %vm1634_vm2 = vcmp.eq.s32.totalorder %v1492_v44, %v5565_v47  ;;  %v2609_v60 = vmax.f32 %v2607_v43, %v5059_v62  ;;  %v2135_v38 = vadd.f32 %v2134_v53, %v1883_v57 }
 0x215   :  { %v5690_v49 = vpop.f32.mrf.mxu2  ;;  %v2546_v41 = vmax.f32 %v5039_v55, %v5065_v1  ;;  %v2268_v43 = vadd.f32 %v2267_v46, %v1884_v45  ;;  %vm1635_vm3 = vcmp.eq.s32.totalorder %v1493_v52, %v5563_v32  ;;  %vm1636_vm4 = vcmp.eq.s32.totalorder %v1493_v52, %v5565_v47 }
 0x216   :  { %v5688_v59 = vpop.f32.mrf.mxu3  ;;  %v2414_v53 = vmax.f32 %v2412_v61, %v5074_v5  ;;  %v2547_v57 = vmax.f32 %v2545_v27, %v5076_v6  ;;  %v2611_v1 = vmax.f32 %v2609_v60, %v5070_v3  ;;  %v2478_v55 = vmax.f32 %v2476_v50, %v5072_v4 }
 0x217   :  { %v5698_v48 = vpop.f32.mrf.mxu0  ;;  %v2136_v54 = vadd.f32 %v2135_v38, %v1885_v56  ;;  %v1887_v45 = vsel %vm1631_vm14, %v5089_v10, 0.0  ;;  %v1495_v46 = vadd.s32 72, %v5557_v7  ;;  %v2269_v61 = vadd.f32 %v2268_v43, %v1886_v51 }
 0x218   :  { %8148 = vst [vmem:[#allocation185_spill] sm:$0xff] %v5698_v48  ;;  %v5700_v0 = vpop.f32.mrf.mxu1  ;;  %v2613_v50 = vmax.f32 %v2611_v1, %v5085_v8  ;;  %v2415_v60 = vmax.f32 %v2413_v39, %v5089_v10  ;;  %v5725_v27 = vmax.f32 %v2546_v41, %v5091_v11  ;;  %v5728_v38 = vadd.s32 80, %v5557_v7  ;;  %v4273_v11 = vld [vmem:[%s7624_s1 + $0x1f0] sm:$0xff] }
 0x219   :  { %8149 = vst [vmem:[#allocation186_spill] sm:$0xff] %v5700_v0  ;;  %v2480_v2 = vmax.f32 %v2478_v55, %v5087_v9  ;;  %v2137_v56 = vadd.f32 %v2136_v54, %v1887_v45  ;;  %v2270_v6 = vadd.f32 %v2269_v61, %v1888_v22  ;;  %v1889_v43 = vsel %vm1633_vm1, %v5100_v15, 0.0  ;;  %v4241_v54 = vld [vmem:[%s7624_s1 + $0xf0] sm:$0xff] }
 0x21a   :  { %v1890_v1 = vsel %vm1634_vm2, %v5102_v16, 0.0  ;;  %vm1639_vm7 = vcmp.eq.s32.totalorder %v1495_v46, %v5563_v32  ;;  %vm1640_vm8 = vcmp.eq.s32.totalorder %v1495_v46, %v5565_v47  ;;  %v2615_v39 = vmax.f32 %v2613_v50, %v5096_v13  ;;  %v8197_v13 = vld [vmem:[#allocation85_spill] sm:$0xff] }
 0x21b   :  { %v2482_v41 = vmax.f32 %v2480_v2, %v5098_v14  ;;  %v2416_v45 = vmax.f32 %v2414_v53, %v5100_v15  ;;  %v2549_v44 = vmax.f32 %v2547_v57, %v5102_v16  ;;  %v1891_v22 = vsel %vm1635_vm3, %v5115_v20, 0.0 }
 0x21c   :  { %v1497_v61 = vadd.s32 88, %v5557_v7  ;;  %v2138_v10 = vadd.f32 %v2137_v56, %v1889_v43  ;;  %v2271_v5 = vadd.f32 %v2270_v6, %v1890_v1  ;;  %v1892_v53 = vsel %vm1636_vm4, %v5117_v21, 0.0 }
 0x21d   :  { %v5746_v51 = vpop.f32.mrf.mxu2  ;;  %vm1641_vm9 = vcmp.eq.s32.totalorder %v5728_v38, %v5563_v32  ;;  %v2417_v57 = vmax.f32 %v2415_v60, %v5115_v20  ;;  %vm1642_vm10 = vcmp.eq.s32.totalorder %v5728_v38, %v5565_v47  ;;  %v2617_v16 = vmax.f32 %v2615_v39, %v5111_v18  ;;  %v4274_v20 = vld [vmem:[%s7624_s1 + $0x1f8] sm:$0xff] }
 0x21e   :  { %v5744_v55 = vpop.f32.mrf.mxu3  ;;  %v2484_v15 = vmax.f32 %v2482_v41, %v5113_v19  ;;  %v2139_v14 = vadd.f32 %v2138_v10, %v1891_v22  ;;  %v2550_v6 = vmax.f32 %v5725_v27, %v5117_v21  ;;  %v1893_v52 = vsel %vm1637_vm5, %v5126_v25, 0.0 }
 0x21f   :  { %v5754_v50 = vpop.f32.mrf.mxu0  ;;  %v1498_v56 = vadd.s32 96, %v5557_v7  ;;  %v2272_v60 = vadd.f32 %v2271_v5, %v1892_v53  ;;  %v1894_v43 = vsel %vm1638_vm6, %v5128_v26, 0.0  ;;  %vm1643_vm11 = vcmp.eq.s32.totalorder %v1497_v61, %v5563_v32 }
 0x220   :  { %8150 = vst [vmem:[#allocation187_spill] sm:$0xff] %v5754_v50  ;;  %v5756_v2 = vpop.f32.mrf.mxu1  ;;  %vm1644_vm12 = vcmp.eq.s32.totalorder %v1497_v61, %v5565_v47  ;;  %v2418_v10 = vmax.f32 %v2416_v45, %v5126_v25  ;;  %v2551_v27 = vmax.f32 %v2549_v44, %v5128_v26  ;;  %v2619_v1 = vmax.f32 %v2617_v16, %v5122_v23  ;;  %v8185_v23 = vld [vmem:[#allocation76_spill] sm:$0xff] }
 0x221   :  { %8151 = vst [vmem:[#allocation188_spill] sm:$0xff] %v5756_v2  ;;  %v2486_v5 = vmax.f32 %v2484_v15, %v5124_v24  ;;  %v2140_v39 = vadd.f32 %v2139_v14, %v1893_v52  ;;  %v1895_v17 = vsel %vm1639_vm7, %v5141_v30, 0.0  ;;  %v1896_v41 = vsel %vm1640_vm8, %v5143_v31, 0.0  ;;  %v8182_v24 = vld [vmem:[#allocation73_spill] sm:$0xff] }
 0x222   :  { %4113 = vmatmul.msk.bf16.gmra.mxu0 %vm586_vm0, %v4241_v54  ;;  %4145 = vmatmul.msk.bf16.gmra.mxu2 %vm586_vm0, %v4273_v11  ;;  %vm1645_vm13 = vcmp.eq.s32.totalorder %v1498_v56, %v5563_v32  ;;  %vm1646_vm14 = vcmp.eq.s32.totalorder %v1498_v56, %v5565_v47  ;;  %v2621_v16 = vmax.f32 %v2619_v1, %v5137_v28  ;;  %v1897_v46 = vsel %vm1641_vm9, %v5152_v35, 0.0 }
 0x223   :  { %4177 = vmatmul.msk.bf16.gmra.mxu1 %vm586_vm0, %v4241_v54  ;;  %4209 = vmatmul.msk.bf16.gmra.mxu3 %vm586_vm0, %v4273_v11  ;;  %v1499_v54 = vadd.s32 104, %v5557_v7  ;;  %v2273_v11 = vadd.f32 %v2272_v60, %v1894_v43  ;;  %v2419_v15 = vmax.f32 %v2417_v57, %v5141_v30  ;;  %v1500_v44 = vadd.s32 112, %v5557_v7 }
 0x224   :  { %v2488_v22 = vmax.f32 %v2486_v5, %v5139_v29  ;;  %v2141_v60 = vadd.f32 %v2140_v39, %v1895_v17  ;;  %v2552_v1 = vmax.f32 %v2550_v6, %v5143_v31  ;;  %v1898_v57 = vsel %vm1642_vm10, %v5154_v36, 0.0 }
 0x225   :  { %v5802_v14 = vpop.f32.mrf.mxu2  ;;  %v2274_v43 = vadd.f32 %v2273_v11, %v1896_v41  ;;  %vm1647_vm1 = vcmp.eq.s32.totalorder %v1499_v54, %v5563_v32  ;;  %vm1648_vm2 = vcmp.eq.s32.totalorder %v1499_v54, %v5565_v47  ;;  %v2623_v26 = vmax.f32 %v2621_v16, %v5148_v33  ;;  %v8155_v41 = vld [vmem:[#allocation53_spill] sm:$0xff]  ;;  %v8174_v33 = vld [vmem:[#allocation68_spill] sm:$0xff] }
 0x226   :  { %v5800_v45 = vpop.f32.mrf.mxu3  ;;  %v2490_v5 = vmax.f32 %v2488_v22, %v5150_v34  ;;  %v2142_v21 = vadd.f32 %v2141_v60, %v1897_v46  ;;  %v2420_v30 = vmax.f32 %v2418_v10, %v5152_v35  ;;  %v2553_v39 = vmax.f32 %v2551_v27, %v5154_v36  ;;  %v8156_v10 = vld [vmem:[#allocation50_spill] sm:$0xff]  ;;  %v8157_v27 = vld [vmem:[#allocation51_spill] sm:$0xff]  ;;  %v8159_v36 = vld [vmem:[#allocation57_spill] sm:$0xff] }
 0x227   :  { %8152 = vst [vmem:[#allocation189_spill] sm:$0xff] %v5800_v45  ;;  %v5813_v53 = vpop.f32.mrf.mxu0  ;;  %v1501_v6 = vadd.s32 120, %v5557_v7  ;;  %v2275_v17 = vadd.f32 %v2274_v43, %v1898_v57  ;;  %v1899_v38 = vsel %vm1643_vm11, %v5167_v40, 0.0  ;;  %v1900_v11 = vsel %vm1644_vm12, %v8155_v41, 0.0  ;;  %v8158_v43 = vld [vmem:[#allocation56_spill] sm:$0xff] }
 0x228   :  { %8153 = vst [vmem:[#allocation190_spill] sm:$0xff] %v5813_v53  ;;  %v5815_v52 = vpop.f32.mrf.mxu1  ;;  %vm1649_vm3 = vcmp.eq.s32.totalorder %v1500_v44, %v5563_v32  ;;  %v2421_v16 = vmax.f32 %v2419_v15, %v5167_v40  ;;  %vm1650_vm4 = vcmp.eq.s32.totalorder %v1500_v44, %v5565_v47  ;;  %v2625_v46 = vmax.f32 %v2623_v26, %v8156_v10  ;;  %v4242_v26 = vld [vmem:[%s7624_s1 + $0xf8] sm:$0xff]  ;;  %v8165_v34 = vld [vmem:[#allocation60_spill] sm:$0xff]  ;;  %s4854_s1 = smov [#allocation5]  }
 0x229   :  { %8154 = vst [vmem:[#allocation191_spill] sm:$0xff] %v5815_v52  ;;  %v2492_v22 = vmax.f32 %v2490_v5, %v8157_v27  ;;  %v2554_v60 = vmax.f32 %v2552_v1, %v8155_v41  ;;  %v1901_v57 = vsel %vm1645_vm13, %v8158_v43, 0.0  ;;  %v1902_v61 = vsel %vm1646_vm14, %v8159_v36, 0.0  ;;  %v8161_v40 = vld [vmem:[#allocation54_spill] sm:$0xff]  ;;  %s3752_s6 = sshll.u32 %s4854_s1, 4  ;;  %s3753_s6 = int_to_ptr.vmem [resolvable:$true] %s3752_s6 }
 0x22a   :  { %v1502_v31 = vadd.s32 128, %v5557_v7  ;;  %v2143_v35 = vadd.f32 %v2142_v21, %v1899_v38  ;;  %v2276_v15 = vadd.f32 %v2275_v17, %v1900_v11  ;;  %vm1651_vm5 = vcmp.eq.s32.totalorder %v1501_v6, %v5563_v32  ;;  %v8162_v21 = vld [vmem:[#allocation55_spill] sm:$0xff] }
 0x22b   :  { %vm1652_vm6 = vcmp.eq.s32.totalorder %v1501_v6, %v5565_v47  ;;  %v2422_v41 = vmax.f32 %v2420_v30, %v8158_v43  ;;  %v2555_v56 = vmax.f32 %v2553_v39, %v8159_v36  ;;  %v2627_v25 = vmax.f32 %v2625_v46, %v8161_v40  ;;  %v8166_v36 = vld [vmem:[#allocation61_spill] sm:$0xff]  ;;  %v8170_v40 = vld [vmem:[#allocation64_spill] sm:$0xff] }
 0x22c   :  { %v2494_v17 = vmax.f32 %v2492_v22, %v8162_v21  ;;  %v2144_v27 = vadd.f32 %v2143_v35, %v1901_v57  ;;  %v2277_v10 = vadd.f32 %v2276_v15, %v1902_v61  ;;  %v1903_v30 = vsel %vm1647_vm1, %v8165_v34, 0.0  ;;  %v8167_v22 = vld [vmem:[#allocation58_spill] sm:$0xff]  ;;  %v8169_v15 = vld [vmem:[#allocation59_spill] sm:$0xff] }
 0x22d   :  { %v5855_v5 = vpop.f32.mrf.mxu2  ;;  %v1503_v39 = vadd.s32 136, %v5557_v7  ;;  %v1904_v46 = vsel %vm1648_vm2, %v8166_v36, 0.0  ;;  %vm1653_vm7 = vcmp.eq.s32.totalorder %v1502_v31, %v5563_v32  ;;  %vm1654_vm8 = vcmp.eq.s32.totalorder %v1502_v31, %v5565_v47 }
 0x22e   :  { %v5853_v1 = vpop.f32.mrf.mxu3  ;;  %v2629_v43 = vmax.f32 %v2627_v25, %v8167_v22  ;;  %v5882_v35 = vsel %vm1751_vm15, %v5046_v58, 0.0  ;;  %v2423_v57 = vmax.f32 %v2421_v16, %v8165_v34  ;;  %v2556_v61 = vmax.f32 %v2554_v60, %v8166_v36  ;;  %v8171_v22 = vld [vmem:[#allocation65_spill] sm:$0xff] }
 0x22f   :  { %8160 = vst [vmem:[#allocation192_spill] sm:$0xff] %v5853_v1  ;;  %v5861_v38 = vpop.f32.mrf.mxu0  ;;  %v2496_v21 = vmax.f32 %v2494_v17, %v8169_v15  ;;  %v2145_v54 = vadd.f32 %v2144_v27, %v1903_v30  ;;  %v1905_v25 = vsel %vm1649_vm3, %v8170_v40, 0.0  ;;  %v1906_v37 = vsel %vm1650_vm4, %v8171_v22, 0.0  ;;  %v8172_v27 = vld [vmem:[#allocation62_spill] sm:$0xff]  ;;  %v8173_v30 = vld [vmem:[#allocation63_spill] sm:$0xff] }
 0x230   :  { %8163 = vst [vmem:[#allocation193_spill] sm:$0xff] %v5861_v38  ;;  %v5863_v11 = vpop.f32.mrf.mxu1  ;;  %v1504_v58 = vadd.s32 144, %v5557_v7  ;;  %v2278_v16 = vadd.f32 %v2277_v10, %v1904_v46  ;;  %vm1655_vm9 = vcmp.eq.s32.totalorder %v1503_v39, %v5563_v32  ;;  %vm1656_vm10 = vcmp.eq.s32.totalorder %v1503_v39, %v5565_v47  ;;  %v8175_v10 = vld [vmem:[#allocation69_spill] sm:$0xff] }
 0x231   :  { %8164 = vst [vmem:[#allocation194_spill] sm:$0xff] %v5863_v11  ;;  %v2631_v60 = vmax.f32 %v2629_v43, %v8172_v27  ;;  %v2557_v17 = vmax.f32 %v2555_v56, %v8171_v22  ;;  %v1505_v44 = vadd.s32 152, %v5557_v7  ;;  %v2498_v36 = vmax.f32 %v2496_v21, %v8173_v30  ;;  %v8178_v21 = vld [vmem:[#allocation67_spill] sm:$0xff]  ;;  %v8181_v22 = vld [vmem:[#allocation72_spill] sm:$0xff] }
 0x232   :  { %8168 = vst [vmem:[#allocation195_spill] sm:$0xff] %v5882_v35  ;;  %4114 = vmatmul.msk.bf16.gmra.mxu0 %vm586_vm0, %v4242_v26  ;;  %4146 = vmatmul.msk.bf16.gmra.mxu2 %vm586_vm0, %v4274_v20  ;;  %v2146_v34 = vadd.f32 %v2145_v54, %v1905_v25  ;;  %v2279_v15 = vadd.f32 %v2278_v16, %v1906_v37  ;;  %v1908_v46 = vsel %vm1652_vm6, %v8175_v10, 0.0  ;;  %v1506_v30 = vadd.s32 160, %v5557_v7  ;;  %v8213_v35 = vld [vmem:[#allocation97_spill] sm:$0xff] }
 0x233   :  { %4178 = vmatmul.msk.bf16.gmra.mxu1 %vm586_vm0, %v4242_v26  ;;  %4210 = vmatmul.msk.bf16.gmra.mxu3 %vm586_vm0, %v4274_v20  ;;  %v2424_v26 = vmax.f32 %v2422_v41, %v8170_v40  ;;  %v1907_v20 = vsel %vm1651_vm5, %v8174_v33, 0.0  ;;  %vm1657_vm0 = vcmp.eq.s32.totalorder %v1504_v58, %v5563_v32  ;;  %vm1658_vm11 = vcmp.eq.s32.totalorder %v1504_v58, %v5565_v47  ;;  %v8177_v41 = vld [vmem:[#allocation66_spill] sm:$0xff] }
 0x234   :  { %v2633_v56 = vmax.f32 %v2631_v60, %v8177_v41  ;;  %v2500_v54 = vmax.f32 %v2498_v36, %v8178_v21  ;;  %v2425_v16 = vmax.f32 %v2423_v57, %v8174_v33  ;;  %v2558_v6 = vmax.f32 %v2556_v61, %v8175_v10  ;;  %v8183_v57 = vld [vmem:[#allocation70_spill] sm:$0xff]  ;;  %v8184_v10 = vld [vmem:[#allocation71_spill] sm:$0xff] }
 0x235   :  { %v5913_v43 = vpop.f32.mrf.mxu2  ;;  %v1909_v40 = vsel %vm1653_vm7, %v8181_v22, 0.0  ;;  %v2147_v27 = vadd.f32 %v2146_v34, %v1907_v20  ;;  %v2280_v28 = vadd.f32 %v2279_v15, %v1908_v46  ;;  %v1910_v36 = vsel %vm1654_vm8, %v8182_v24, 0.0  ;;  %v8186_v20 = vld [vmem:[#allocation77_spill] sm:$0xff] }
 0x236   :  { %v5911_v29 = vpop.f32.mrf.mxu3  ;;  %vm1659_vm12 = vcmp.eq.s32.totalorder %v1505_v44, %v5563_v32  ;;  %v2426_v60 = vmax.f32 %v2424_v26, %v8181_v22  ;;  %vm1660_vm13 = vcmp.eq.s32.totalorder %v1505_v44, %v5565_v47  ;;  %v2606_v61 = vmax.f32 %v8183_v57, %v2633_v56  ;;  %v8188_v56 = vld [vmem:[#allocation75_spill] sm:$0xff]  ;;  %v8189_v22 = vld [vmem:[#allocation80_spill] sm:$0xff] }
 0x237   :  { %8176 = vst [vmem:[#allocation196_spill] sm:$0xff] %v5911_v29  ;;  %v5919_v25 = vpop.f32.mrf.mxu0  ;;  %v2475_v33 = vmax.f32 %v8184_v10, %v2500_v54  ;;  %v2148_v21 = vadd.f32 %v2147_v27, %v1909_v40  ;;  %v2559_v41 = vmax.f32 %v2557_v17, %v8182_v24  ;;  %v1911_v34 = vsel %vm1655_vm9, %v8185_v23, 0.0  ;;  %v8187_v27 = vld [vmem:[#allocation74_spill] sm:$0xff] }
 0x238   :  { %8179 = vst [vmem:[#allocation197_spill] sm:$0xff] %v5919_v25  ;;  %v5921_v37 = vpop.f32.mrf.mxu1  ;;  %v1507_v31 = vadd.s32 168, %v5557_v7  ;;  %v2281_v15 = vadd.f32 %v2280_v28, %v1910_v36  ;;  %v1912_v26 = vsel %vm1656_vm10, %v8186_v20, 0.0  ;;  %vm1661_vm14 = vcmp.eq.s32.totalorder %v1506_v30, %v5563_v32  ;;  %v8190_v36 = vld [vmem:[#allocation81_spill] sm:$0xff] }
 0x239   :  { %8180 = vst [vmem:[#allocation198_spill] sm:$0xff] %v5921_v37  ;;  %vm1662_vm15 = vcmp.eq.s32.totalorder %v1506_v30, %v5565_v47  ;;  %v2427_v46 = vmax.f32 %v2425_v16, %v8185_v23  ;;  %v2560_v40 = vmax.f32 %v2558_v6, %v8186_v20  ;;  %v2608_v17 = vmax.f32 %v2606_v61, %v8187_v27 }
 0x23a   :  { %v2477_v54 = vmax.f32 %v2475_v33, %v8188_v56  ;;  %v2149_v24 = vadd.f32 %v2148_v21, %v1911_v34  ;;  %v1913_v28 = vsel %vm1657_vm0, %v8189_v22, 0.0  ;;  %v1914_v39 = vsel %vm1658_vm11, %v8190_v36, 0.0  ;;  %v8192_v33 = vld [vmem:[#allocation78_spill] sm:$0xff]  ;;  %v8195_v56 = vld [vmem:[#allocation79_spill] sm:$0xff] }
 0x23b   :  { %v1508_v10 = vadd.s32 176, %v5557_v7  ;;  %v2282_v6 = vadd.f32 %v2281_v15, %v1912_v26  ;;  %vm1663_vm1 = vcmp.eq.s32.totalorder %v1507_v31, %v5563_v32  ;;  %vm1664_vm2 = vcmp.eq.s32.totalorder %v1507_v31, %v5565_v47  ;;  %v8196_v26 = vld [vmem:[#allocation84_spill] sm:$0xff] }
 0x23c   :  { %v2610_v21 = vmax.f32 %v2608_v17, %v8192_v33  ;;  %v2428_v58 = vmax.f32 %v2426_v60, %v8189_v22  ;;  %v2561_v20 = vmax.f32 %v2559_v41, %v8190_v36  ;;  %v1509_v23 = vadd.s32 184, %v5557_v7  ;;  %v8198_v60 = vld [vmem:[#allocation82_spill] sm:$0xff]  ;;  %v8199_v36 = vld [vmem:[#allocation83_spill] sm:$0xff]  ;;  %v8201_v33 = vld [vmem:[#allocation89_spill] sm:$0xff] }
 0x23d   :  { %v5960_v16 = vpop.f32.mrf.mxu2  ;;  %v2479_v27 = vmax.f32 %v2477_v54, %v8195_v56  ;;  %v2150_v19 = vadd.f32 %v2149_v24, %v1913_v28  ;;  %v2283_v15 = vadd.f32 %v2282_v6, %v1914_v39  ;;  %v1915_v18 = vsel %vm1659_vm12, %v8196_v26, 0.0  ;;  %v8200_v28 = vld [vmem:[#allocation88_spill] sm:$0xff] }
 0x23e   :  { %v5958_v57 = vpop.f32.mrf.mxu3  ;;  %v1916_v17 = vsel %vm1660_vm13, %v8197_v13, 0.0  ;;  %vm1665_vm3 = vcmp.eq.s32.totalorder %v1508_v10, %v5563_v32  ;;  %vm1666_vm4 = vcmp.eq.s32.totalorder %v1508_v10, %v5565_v47  ;;  %v2612_v41 = vmax.f32 %v2610_v21, %v8198_v60  ;;  %v8203_v21 = vld [vmem:[#allocation87_spill] sm:$0xff]  ;;  %v8204_v60 = vld [vmem:[#allocation92_spill] sm:$0xff] }
 0x23f   :  { %8191 = vst [vmem:[#allocation199_spill] sm:$0xff] %v5958_v57  ;;  %v5965_v61 = vpop.f32.mrf.mxu0  ;;  %v2481_v22 = vmax.f32 %v2479_v27, %v8199_v36  ;;  %v2429_v54 = vmax.f32 %v2427_v46, %v8196_v26  ;;  %v2562_v24 = vmax.f32 %v2560_v40, %v8197_v13  ;;  %v1917_v39 = vsel %vm1661_vm14, %v8200_v28, 0.0  ;;  %v8202_v46 = vld [vmem:[#allocation86_spill] sm:$0xff] }
 0x240   :  { %8193 = vst [vmem:[#allocation200_spill] sm:$0xff] %v5965_v61  ;;  %v5967_v34 = vpop.f32.mrf.mxu1  ;;  %v1510_v6 = vadd.s32 192, %v5557_v7  ;;  %v2151_v44 = vadd.f32 %v2150_v19, %v1915_v18  ;;  %v2284_v56 = vadd.f32 %v2283_v15, %v1916_v17  ;;  %v1918_v9 = vsel %vm1662_vm15, %v8201_v33, 0.0  ;;  %v8207_v17 = vld [vmem:[#allocation93_spill] sm:$0xff] }
 0x241   :  { %8194 = vst [vmem:[#allocation201_spill] sm:$0xff] %v5967_v34  ;;  %vm1667_vm5 = vcmp.eq.s32.totalorder %v1509_v23, %v5563_v32  ;;  %v2430_v27 = vmax.f32 %v2428_v58, %v8200_v28  ;;  %vm1668_vm6 = vcmp.eq.s32.totalorder %v1509_v23, %v5565_v47  ;;  %v2614_v40 = vmax.f32 %v2612_v41, %v8202_v46  ;;  %v8212_v46 = vld [vmem:[#allocation96_spill] sm:$0xff] }
 0x242   :  { %v2483_v13 = vmax.f32 %v2481_v22, %v8203_v21  ;;  %v2152_v26 = vadd.f32 %v2151_v44, %v1917_v39  ;;  %v2563_v36 = vmax.f32 %v2561_v20, %v8201_v33  ;;  %v1919_v18 = vsel %vm1663_vm1, %v8204_v60, 0.0  ;;  %v8210_v33 = vld [vmem:[#allocation90_spill] sm:$0xff]  ;;  %v8211_v21 = vld [vmem:[#allocation91_spill] sm:$0xff] }
 0x243   :  { %v1511_v19 = vadd.s32 200, %v5557_v7  ;;  %v2285_v58 = vadd.f32 %v2284_v56, %v1918_v9  ;;  %v1920_v41 = vsel %vm1664_vm2, %v8207_v17, 0.0  ;;  %vm1669_vm7 = vcmp.eq.s32.totalorder %v1510_v6, %v5563_v32 }
 0x244   :  { %vm1670_vm8 = vcmp.eq.s32.totalorder %v1510_v6, %v5565_v47  ;;  %v2431_v39 = vmax.f32 %v2429_v54, %v8204_v60  ;;  %v2564_v44 = vmax.f32 %v2562_v24, %v8207_v17  ;;  %v2616_v28 = vmax.f32 %v2614_v40, %v8210_v33  ;;  %v8214_v54 = vld [vmem:[#allocation94_spill] sm:$0xff] }
 0x245   :  { %v6004_v15 = vpop.f32.mrf.mxu2  ;;  %v2485_v9 = vmax.f32 %v2483_v13, %v8211_v21  ;;  %v2153_v56 = vadd.f32 %v2152_v26, %v1919_v18  ;;  %v1921_v31 = vsel %vm1665_vm3, %v8212_v46, 0.0  ;;  %v1922_v8 = vsel %vm1666_vm4, %v8213_v35, 0.0  ;;  %v8215_v18 = vld [vmem:[#allocation95_spill] sm:$0xff]  ;;  %v8216_v21 = vld [vmem:[#allocation100_spill] sm:$0xff] }
 0x246   :  { %v6002_v30 = vpop.f32.mrf.mxu3  ;;  %8206 = vst [vmem:[#allocation203_spill] sm:$0xff] %v6004_v15  ;;  %v1512_v4 = vadd.s32 208, %v5557_v7  ;;  %v2286_v3 = vadd.f32 %v2285_v58, %v1920_v41  ;;  %vm1671_vm9 = vcmp.eq.s32.totalorder %v1511_v19, %v5563_v32  ;;  %vm1672_vm10 = vcmp.eq.s32.totalorder %v1511_v19, %v5565_v47  ;;  %v8217_v41 = vld [vmem:[#allocation101_spill] sm:$0xff] }
 0x247   :  { %8205 = vst [vmem:[#allocation202_spill] sm:$0xff] %v6002_v30  ;;  %v6011_v22 = vpop.f32.mrf.mxu0  ;;  %v2618_v24 = vmax.f32 %v2616_v28, %v8214_v54  ;;  %v2432_v13 = vmax.f32 %v2430_v27, %v8212_v46  ;;  %v2565_v26 = vmax.f32 %v2563_v36, %v8213_v35  ;;  %v1513_v40 = vadd.s32 216, %v5557_v7  ;;  %v8218_v28 = vld [vmem:[#allocation98_spill] sm:$0xff]  ;;  %v8219_v27 = vld [vmem:[#allocation99_spill] sm:$0xff] }
 0x248   :  { %8208 = vst [vmem:[#allocation204_spill] sm:$0xff] %v6011_v22  ;;  %v6013_v20 = vpop.f32.mrf.mxu1  ;;  %v2487_v17 = vmax.f32 %v2485_v9, %v8215_v18  ;;  %v2154_v60 = vadd.f32 %v2153_v56, %v1921_v31  ;;  %v2287_v10 = vadd.f32 %v2286_v3, %v1922_v8  ;;  %v1923_v58 = vsel %vm1667_vm5, %v8216_v21, 0.0  ;;  %v8220_v8 = vld [vmem:[#allocation104_spill] sm:$0xff] }
 0x249   :  { %8209 = vst [vmem:[#allocation205_spill] sm:$0xff] %v6013_v20  ;;  %v1924_v33 = vsel %vm1668_vm6, %v8217_v41, 0.0  ;;  %vm1673_vm0 = vcmp.eq.s32.totalorder %v1512_v4, %v5563_v32  ;;  %vm1674_vm11 = vcmp.eq.s32.totalorder %v1512_v4, %v5565_v47  ;;  %v2620_v36 = vmax.f32 %v2618_v24, %v8218_v28 }
 0x24a   :  { %v2489_v35 = vmax.f32 %v2487_v17, %v8219_v27  ;;  %v2433_v9 = vmax.f32 %v2431_v39, %v8216_v21  ;;  %v2566_v3 = vmax.f32 %v2564_v44, %v8217_v41  ;;  %v1925_v56 = vsel %vm1669_vm7, %v8220_v8, 0.0  ;;  %v8226_v41 = vld [vmem:[#allocation102_spill] sm:$0xff]  ;;  %v8227_v27 = vld [vmem:[#allocation103_spill] sm:$0xff] }
 0x24b   :  { %v1514_v31 = vadd.s32 224, %v5557_v7  ;;  %v2155_v18 = vadd.f32 %v2154_v60, %v1923_v58  ;;  %v2288_v54 = vadd.f32 %v2287_v10, %v1924_v33  ;;  %v1926_v17 = vsel %vm1670_vm8, %v8223_v63, 0.0  ;;  %v8228_v10 = vld [vmem:[#allocation108_spill] sm:$0xff] }
 0x24c   :  { %vm1675_vm12 = vcmp.eq.s32.totalorder %v1513_v40, %v5563_v32  ;;  %v2434_v24 = vmax.f32 %v2432_v13, %v8220_v8  ;;  %vm1676_vm13 = vcmp.eq.s32.totalorder %v1513_v40, %v5565_v47  ;;  %v2622_v21 = vmax.f32 %v2620_v36, %v8226_v41 }
 0x24d   :  { %v6051_v46 = vpop.f32.mrf.mxu2  ;;  %v2491_v28 = vmax.f32 %v2489_v35, %v8227_v27  ;;  %v2156_v60 = vadd.f32 %v2155_v18, %v1925_v56  ;;  %v2567_v33 = vmax.f32 %v2565_v26, %v8223_v63  ;;  %v1927_v6 = vsel %vm1671_vm9, %v8228_v10, 0.0  ;;  %v8230_v26 = vld [vmem:[#allocation106_spill] sm:$0xff]  ;;  %v8231_v56 = vld [vmem:[#allocation107_spill] sm:$0xff]  ;;  %v8232_v27 = vld [vmem:[#allocation112_spill] sm:$0xff] }
 0x24e   :  { %v6049_v23 = vpop.f32.mrf.mxu3  ;;  %8222 = vst [vmem:[#allocation207_spill] sm:$0xff] %v6051_v46  ;;  %v1515_v58 = vadd.s32 232, %v5557_v7  ;;  %v2289_v62 = vadd.f32 %v2288_v54, %v1926_v17  ;;  %v1928_v13 = vsel %vm1672_vm10, %v8229_v42, 0.0  ;;  %vm1677_vm14 = vcmp.eq.s32.totalorder %v1514_v31, %v5563_v32  ;;  %v8233_v17 = vld [vmem:[#allocation113_spill] sm:$0xff] }
 0x24f   :  { %8221 = vst [vmem:[#allocation206_spill] sm:$0xff] %v6049_v23  ;;  %v6057_v39 = vpop.f32.mrf.mxu0  ;;  %vm1678_vm15 = vcmp.eq.s32.totalorder %v1514_v31, %v5565_v47  ;;  %v2435_v35 = vmax.f32 %v2433_v9, %v8228_v10  ;;  %v2568_v18 = vmax.f32 %v2566_v3, %v8229_v42  ;;  %v2624_v36 = vmax.f32 %v2622_v21, %v8230_v26  ;;  %v8234_v9 = vld [vmem:[#allocation110_spill] sm:$0xff]  ;;  %v8239_v46 = vld [vmem:[#allocation117_spill] sm:$0xff] }
 0x250   :  { %8224 = vst [vmem:[#allocation208_spill] sm:$0xff] %v6057_v39  ;;  %v6059_v44 = vpop.f32.mrf.mxu1  ;;  %v2493_v63 = vmax.f32 %v2491_v28, %v8231_v56  ;;  %v2157_v8 = vadd.f32 %v2156_v60, %v1927_v6  ;;  %v1929_v54 = vsel %vm1673_vm0, %v8232_v27, 0.0  ;;  %v1930_v19 = vsel %vm1674_vm11, %v8233_v17, 0.0  ;;  %v8235_v6 = vld [vmem:[#allocation111_spill] sm:$0xff] }
 0x251   :  { %8225 = vst [vmem:[#allocation209_spill] sm:$0xff] %v6059_v44  ;;  %v1516_v41 = vadd.s32 240, %v5557_v7  ;;  %v2290_v12 = vadd.f32 %v2289_v62, %v1928_v13  ;;  %vm1679_vm1 = vcmp.eq.s32.totalorder %v1515_v58, %v5563_v32  ;;  %vm1680_vm2 = vcmp.eq.s32.totalorder %v1515_v58, %v5565_v47  ;;  %v8238_v13 = vld [vmem:[#allocation116_spill] sm:$0xff] }
 0x252   :  { %v2626_v21 = vmax.f32 %v2624_v36, %v8234_v9  ;;  %v2436_v28 = vmax.f32 %v2434_v24, %v8232_v27  ;;  %v2569_v3 = vmax.f32 %v2567_v33, %v8233_v17  ;;  %v1517_v60 = vadd.s32 248, %v5557_v7  ;;  %v8244_v27 = vld [vmem:[#allocation120_spill] sm:$0xff] }
 0x253   :  { %v2495_v42 = vmax.f32 %v2493_v63, %v8235_v6  ;;  %v2158_v56 = vadd.f32 %v2157_v8, %v1929_v54  ;;  %v2291_v62 = vadd.f32 %v2290_v12, %v1930_v19  ;;  %v1931_v26 = vsel %vm1675_vm12, %v8238_v13, 0.0  ;;  %v8242_v63 = vld [vmem:[#allocation114_spill] sm:$0xff]  ;;  %v8243_v8 = vld [vmem:[#allocation115_spill] sm:$0xff] }
 0x254   :  { %v1932_v24 = vsel %vm1676_vm13, %v8239_v46, 0.0  ;;  %vm1681_vm3 = vcmp.eq.s32.totalorder %v1516_v41, %v5563_v32  ;;  %vm1682_vm4 = vcmp.eq.s32.totalorder %v1516_v41, %v5565_v47  ;;  %v2628_v17 = vmax.f32 %v2626_v21, %v8242_v63  ;;  %v8247_v21 = vld [vmem:[#allocation119_spill] sm:$0xff]  ;;  %v8248_v63 = vld [vmem:[#allocation124_spill] sm:$0xff] }
 0x255   :  { %v6095_v4 = vpop.f32.mrf.mxu2  ;;  %v2497_v12 = vmax.f32 %v2495_v42, %v8243_v8  ;;  %v2437_v54 = vmax.f32 %v2435_v35, %v8238_v13  ;;  %v2570_v19 = vmax.f32 %v2568_v18, %v8239_v46  ;;  %v1933_v40 = vsel %vm1677_vm14, %v8244_v27, 0.0  ;;  %v8246_v35 = vld [vmem:[#allocation118_spill] sm:$0xff] }
 0x256   :  { %v6093_v10 = vpop.f32.mrf.mxu3  ;;  %8237 = vst [vmem:[#allocation211_spill] sm:$0xff] %v6095_v4  ;;  %v1518_v6 = vadd.s32 256, %v5557_v7  ;;  %v2159_v9 = vadd.f32 %v2158_v56, %v1931_v26  ;;  %v2292_v4 = vadd.f32 %v2291_v62, %v1932_v24  ;;  %vm1683_vm5 = vcmp.eq.s32.totalorder %v1517_v60, %v5563_v32  ;;  %v8249_v62 = vld [vmem:[#allocation125_spill] sm:$0xff] }
 0x257   :  { %8236 = vst [vmem:[#allocation210_spill] sm:$0xff] %v6093_v10  ;;  %v6103_v36 = vpop.f32.mrf.mxu0  ;;  %v8245_v10 = vld [vmem:[#allocation121_spill] sm:$0xff]  ;;  %v2438_v42 = vmax.f32 %v2436_v28, %v8244_v27  ;;  %vm1684_vm6 = vcmp.eq.s32.totalorder %v1517_v60, %v5565_v47  ;;  %v2630_v18 = vmax.f32 %v2628_v17, %v8246_v35  ;;  %v2499_v46 = vmax.f32 %v2497_v12, %v8247_v21  ;;  %v8251_v12 = vld [vmem:[#allocation123_spill] sm:$0xff] }
 0x258   :  { %8240 = vst [vmem:[#allocation212_spill] sm:$0xff] %v6103_v36  ;;  %v6105_v33 = vpop.f32.mrf.mxu1  ;;  %v2160_v13 = vadd.f32 %v2159_v9, %v1933_v40  ;;  %v2571_v8 = vmax.f32 %v2569_v3, %v8245_v10  ;;  %v1935_v26 = vsel %vm1679_vm1, %v8248_v63, 0.0  ;;  %v1519_v31 = vadd.s32 264, %v5557_v7  ;;  %v8250_v3 = vld [vmem:[#allocation122_spill] sm:$0xff]  ;;  %v8255_v21 = vld [vmem:[#allocation129_spill] sm:$0xff]  ;;  %v8304_v36 = vld [vmem:[#allocation164_spill] sm:$0xff] }
 0x259   :  { %8241 = vst [vmem:[#allocation213_spill] sm:$0xff] %v6105_v33  ;;  %v1934_v33 = vsel %vm1678_vm15, %v8245_v10, 0.0  ;;  %v1936_v28 = vsel %vm1680_vm2, %v8249_v62, 0.0  ;;  %vm1685_vm7 = vcmp.eq.s32.totalorder %v1518_v6, %v5563_v32  ;;  %vm1686_vm8 = vcmp.eq.s32.totalorder %v1518_v6, %v5565_v47  ;;  %v8270_v6 = vld [vmem:[#allocation140_spill] sm:$0xff] }
 0x25a   :  { %v2293_v56 = vadd.f32 %v2292_v4, %v1934_v33  ;;  %v2439_v17 = vmax.f32 %v2437_v54, %v8248_v63  ;;  %v2572_v9 = vmax.f32 %v2570_v19, %v8249_v62  ;;  %v2632_v24 = vmax.f32 %v2630_v18, %v8250_v3  ;;  %v8254_v33 = vld [vmem:[#allocation128_spill] sm:$0xff] }
 0x25b   :  { %v2501_v40 = vmax.f32 %v2499_v46, %v8251_v12  ;;  %v2161_v4 = vadd.f32 %v2160_v13, %v1935_v26  ;;  %v1937_v58 = vsel %vm1681_vm3, %v8254_v33, 0.0  ;;  %v1938_v35 = vsel %vm1682_vm4, %v8255_v21, 0.0  ;;  %v8258_v13 = vld [vmem:[#allocation126_spill] sm:$0xff]  ;;  %v8259_v12 = vld [vmem:[#allocation127_spill] sm:$0xff] }
 0x25c   :  { %v1520_v54 = vadd.s32 272, %v5557_v7  ;;  %v2294_v46 = vadd.f32 %v2293_v56, %v1936_v28  ;;  %vm1687_vm9 = vcmp.eq.s32.totalorder %v1519_v31, %v5563_v32  ;;  %vm1688_vm10 = vcmp.eq.s32.totalorder %v1519_v31, %v5565_v47  ;;  %v8261_v28 = vld [vmem:[#allocation133_spill] sm:$0xff] }
 0x25d   :  { %v6141_v27 = vpop.f32.mrf.mxu2  ;;  %v2634_v26 = vmax.f32 %v2632_v24, %v8258_v13  ;;  %v2440_v62 = vmax.f32 %v2438_v42, %v8254_v33  ;;  %v2573_v63 = vmax.f32 %v2571_v8, %v8255_v21  ;;  %v1521_v41 = vadd.s32 280, %v5557_v7  ;;  %v8262_v42 = vld [vmem:[#allocation130_spill] sm:$0xff]  ;;  %v8263_v24 = vld [vmem:[#allocation131_spill] sm:$0xff]  ;;  %v8265_v33 = vld [vmem:[#allocation137_spill] sm:$0xff] }
 0x25e   :  { %v6139_v10 = vpop.f32.mrf.mxu3  ;;  %8253 = vst [vmem:[#allocation215_spill] sm:$0xff] %v6141_v27  ;;  %v2502_v3 = vmax.f32 %v8259_v12, %v2501_v40  ;;  %v2162_v27 = vadd.f32 %v2161_v4, %v1937_v58  ;;  %vm1689_vm0 = vcmp.eq.s32.totalorder %v1520_v54, %v5563_v32  ;;  %vm1690_vm11 = vcmp.eq.s32.totalorder %v1520_v54, %v5565_v47  ;;  %v8264_v4 = vld [vmem:[#allocation136_spill] sm:$0xff] }
 0x25f   :  { %8252 = vst [vmem:[#allocation214_spill] sm:$0xff] %v6139_v10  ;;  %v6150_v19 = vpop.f32.mrf.mxu0  ;;  %v2295_v10 = vadd.f32 %v2294_v46, %v1938_v35  ;;  %v2635_v8 = vmax.f32 %v8262_v42, %v2634_v26  ;;  %v2574_v35 = vmax.f32 %v2572_v9, %v8261_v28  ;;  %v1941_v58 = vsel %vm1685_vm7, %v8264_v4, 0.0  ;;  %v8267_v26 = vld [vmem:[#allocation135_spill] sm:$0xff] }
 0x260   :  { %8256 = vst [vmem:[#allocation216_spill] sm:$0xff] %v6150_v19  ;;  %v6152_v18 = vpop.f32.mrf.mxu1  ;;  %v8260_v19 = vld [vmem:[#allocation132_spill] sm:$0xff]  ;;  %v2504_v21 = vmax.f32 %v2502_v3, %v8263_v24  ;;  %v1522_v46 = vadd.s32 288, %v5557_v7  ;;  %v1942_v12 = vsel %vm1686_vm8, %v8265_v33, 0.0  ;;  %vm1691_vm12 = vcmp.eq.s32.totalorder %v1521_v41, %v5563_v32 }
 0x261   :  { %8257 = vst [vmem:[#allocation217_spill] sm:$0xff] %v6152_v18  ;;  %v1939_v56 = vsel %vm1683_vm5, %v8260_v19, 0.0  ;;  %v1940_v18 = vsel %vm1684_vm6, %v8261_v28, 0.0  ;;  %v2441_v40 = vmax.f32 %v2439_v17, %v8260_v19  ;;  %v2442_v3 = vmax.f32 %v2440_v62, %v8264_v4  ;;  %v8266_v17 = vld [vmem:[#allocation134_spill] sm:$0xff] }
 0x262   :  { %v2163_v60 = vadd.f32 %v2162_v27, %v1939_v56  ;;  %v2296_v13 = vadd.f32 %v2295_v10, %v1940_v18  ;;  %vm1692_vm13 = vcmp.eq.s32.totalorder %v1521_v41, %v5565_v47  ;;  %v2637_v9 = vmax.f32 %v2635_v8, %v8266_v17  ;;  %v8273_v17 = vld [vmem:[#allocation141_spill] sm:$0xff] }
 0x263   :  { %v2506_v28 = vmax.f32 %v2504_v21, %v8267_v26  ;;  %v2575_v56 = vmax.f32 %v2573_v63, %v8265_v33  ;;  %v1943_v10 = vsel %vm1687_vm9, %v8270_v6, 0.0  ;;  %v1523_v18 = vadd.s32 296, %v5557_v7  ;;  %v8275_v26 = vld [vmem:[#allocation139_spill] sm:$0xff] }
 0x264   :  { %v2164_v27 = vadd.f32 %v2163_v60, %v1941_v58  ;;  %v2297_v8 = vadd.f32 %v2296_v13, %v1942_v12  ;;  %v1944_v21 = vsel %vm1688_vm10, %v8273_v17, 0.0  ;;  %vm1693_vm14 = vcmp.eq.s32.totalorder %v1522_v46, %v5563_v32  ;;  %v8274_v60 = vld [vmem:[#allocation138_spill] sm:$0xff] }
 0x265   :  { %v6187_v24 = vpop.f32.mrf.mxu2  ;;  %vm1694_vm15 = vcmp.eq.s32.totalorder %v1522_v46, %v5565_v47  ;;  %v2443_v63 = vmax.f32 %v2441_v40, %v8270_v6  ;;  %v2576_v58 = vmax.f32 %v2574_v35, %v8273_v17  ;;  %v2639_v33 = vmax.f32 %v2637_v9, %v8274_v60  ;;  %v8278_v40 = vld [vmem:[#allocation142_spill] sm:$0xff] }
 0x266   :  { %v6185_v19 = vpop.f32.mrf.mxu3  ;;  %8269 = vst [vmem:[#allocation219_spill] sm:$0xff] %v6187_v24  ;;  %v2508_v42 = vmax.f32 %v2506_v28, %v8275_v26  ;;  %v8276_v24 = vld [vmem:[#allocation144_spill] sm:$0xff]  ;;  %v2165_v13 = vadd.f32 %v2164_v27, %v1943_v10  ;;  %vm1695_vm1 = vcmp.eq.s32.totalorder %v1523_v18, %v5563_v32  ;;  %vm1696_vm2 = vcmp.eq.s32.totalorder %v1523_v18, %v5565_v47  ;;  %v8279_v27 = vld [vmem:[#allocation143_spill] sm:$0xff] }
 0x267   :  { %8268 = vst [vmem:[#allocation218_spill] sm:$0xff] %v6185_v19  ;;  %v6194_v62 = vpop.f32.mrf.mxu0  ;;  %v1945_v12 = vsel %vm1689_vm0, %v8276_v24, 0.0  ;;  %v8277_v19 = vld [vmem:[#allocation145_spill] sm:$0xff]  ;;  %v2641_v35 = vmax.f32 %v2639_v33, %v8278_v40  ;;  %v2444_v28 = vmax.f32 %v2442_v3, %v8276_v24  ;;  %v1525_v17 = vadd.s32 312, %v5557_v7  ;;  %v8280_v26 = vld [vmem:[#allocation148_spill] sm:$0xff]  ;;  %v8282_v33 = vld [vmem:[#allocation146_spill] sm:$0xff] }
 0x268   :  { %8271 = vst [vmem:[#allocation220_spill] sm:$0xff] %v6194_v62  ;;  %v6196_v4 = vpop.f32.mrf.mxu1  ;;  %v1946_v31 = vsel %vm1690_vm11, %v8277_v19, 0.0  ;;  %v2298_v62 = vadd.f32 %v2297_v8, %v1944_v21  ;;  %v2577_v9 = vmax.f32 %v2575_v56, %v8277_v19  ;;  %v2510_v10 = vmax.f32 %v2508_v42, %v8279_v27  ;;  %v8281_v21 = vld [vmem:[#allocation149_spill] sm:$0xff]  ;;  %v8283_v56 = vld [vmem:[#allocation147_spill] sm:$0xff] }
 0x269   :  { %8272 = vst [vmem:[#allocation221_spill] sm:$0xff] %v6196_v4  ;;  %v1524_v4 = vadd.s32 304, %v5557_v7  ;;  %v2166_v6 = vadd.f32 %v2165_v13, %v1945_v12  ;;  %v1947_v8 = vsel %vm1691_vm12, %v8280_v26, 0.0  ;;  %v1948_v60 = vsel %vm1692_vm13, %v8281_v21, 0.0  ;;  %v8286_v13 = vld [vmem:[#allocation152_spill] sm:$0xff] }
 0x26a   :  { %v2299_v54 = vadd.f32 %v2298_v62, %v1946_v31  ;;  %v2643_v3 = vmax.f32 %v2641_v35, %v8282_v33  ;;  %v2512_v19 = vmax.f32 %v2510_v10, %v8283_v56  ;;  %v2445_v62 = vmax.f32 %v2443_v63, %v8280_v26  ;;  %v8289_v10 = vld [vmem:[#allocation153_spill] sm:$0xff]  ;;  %v8291_v26 = vld [vmem:[#allocation151_spill] sm:$0xff] }
 0x26b   :  { %vm1697_vm3 = vcmp.eq.s32.totalorder %v1524_v4, %v5563_v32  ;;  %vm1698_vm4 = vcmp.eq.s32.totalorder %v1524_v4, %v5565_v47  ;;  %v2578_v12 = vmax.f32 %v2576_v58, %v8281_v21  ;;  %v1949_v41 = vsel %vm1693_vm14, %v8286_v13, 0.0  ;;  %v8290_v58 = vld [vmem:[#allocation150_spill] sm:$0xff] }
 0x26c   :  { %v1526_v31 = vadd.s32 320, %v5557_v7  ;;  %v2167_v35 = vadd.f32 %v2166_v6, %v1947_v8  ;;  %v1950_v56 = vsel %vm1694_vm15, %v8289_v10, 0.0  ;;  %v2300_v33 = vadd.f32 %v2299_v54, %v1948_v60  ;;  %v8293_v54 = vld [vmem:[#allocation157_spill] sm:$0xff] }
 0x26d   :  { %v6233_v42 = vpop.f32.mrf.mxu2  ;;  %vm1699_vm5 = vcmp.eq.s32.totalorder %v1525_v17, %v5563_v32  ;;  %v2446_v63 = vmax.f32 %v2444_v28, %v8286_v13  ;;  %vm1700_vm6 = vcmp.eq.s32.totalorder %v1525_v17, %v5565_v47  ;;  %v2645_v21 = vmax.f32 %v2643_v3, %v8290_v58  ;;  %v8297_v13 = vld [vmem:[#allocation161_spill] sm:$0xff] }
 0x26e   :  { %v6231_v24 = vpop.f32.mrf.mxu3  ;;  %8285 = vst [vmem:[#allocation223_spill] sm:$0xff] %v6233_v42  ;;  %v2514_v42 = vmax.f32 %v2512_v19, %v8291_v26  ;;  %v1527_v46 = vadd.s32 328, %v5557_v7  ;;  %v2301_v60 = vadd.f32 %v2300_v33, %v1950_v56  ;;  %v1952_v28 = vsel %vm1696_vm2, %v8293_v54, 0.0 }
 0x26f   :  { %8284 = vst [vmem:[#allocation222_spill] sm:$0xff] %v6231_v24  ;;  %v6241_v27 = vpop.f32.mrf.mxu0  ;;  %v2168_v24 = vadd.f32 %v2167_v35, %v1949_v41  ;;  %vm1701_vm7 = vcmp.eq.s32.totalorder %v1526_v31, %v5563_v32  ;;  %vm1702_vm8 = vcmp.eq.s32.totalorder %v1526_v31, %v5565_v47  ;;  %v2580_v8 = vmax.f32 %v2578_v12, %v8293_v54  ;;  %v8295_v41 = vld [vmem:[#allocation155_spill] sm:$0xff] }
 0x270   :  { %8287 = vst [vmem:[#allocation224_spill] sm:$0xff] %v6241_v27  ;;  %v6243_v40 = vpop.f32.mrf.mxu1  ;;  %v2579_v27 = vmax.f32 %v2577_v9, %v8289_v10  ;;  %v8294_v9 = vld [vmem:[#allocation154_spill] sm:$0xff]  ;;  %v2516_v35 = vmax.f32 %v2514_v42, %v8295_v41  ;;  %v8296_v10 = vld [vmem:[#allocation160_spill] sm:$0xff]  ;;  %v1954_v18 = vsel %vm1698_vm4, %v8297_v13, 0.0  ;;  %v1528_v26 = vadd.s32 336, %v5557_v7 }
 0x271   :  { %8288 = vst [vmem:[#allocation225_spill] sm:$0xff] %v6243_v40  ;;  %v8292_v40 = vld [vmem:[#allocation156_spill] sm:$0xff]  ;;  %v2647_v3 = vmax.f32 %v2645_v21, %v8294_v9  ;;  %v1953_v33 = vsel %vm1697_vm3, %v8296_v10, 0.0  ;;  %v2302_v58 = vadd.f32 %v2301_v60, %v1952_v28  ;;  %vm1703_vm9 = vcmp.eq.s32.totalorder %v1527_v46, %v5563_v32 }
 0x272   :  { %v1951_v6 = vsel %vm1695_vm1, %v8292_v40, 0.0  ;;  %v2447_v19 = vmax.f32 %v2445_v62, %v8292_v40  ;;  %vm1704_vm10 = vcmp.eq.s32.totalorder %v1527_v46, %v5565_v47  ;;  %v8298_v62 = vld [vmem:[#allocation158_spill] sm:$0xff]  ;;  %v2448_v54 = vmax.f32 %v2446_v63, %v8296_v10 }
 0x273   :  { %v2169_v56 = vadd.f32 %v2168_v24, %v1951_v6  ;;  %v2649_v21 = vmax.f32 %v2647_v3, %v8298_v62  ;;  %v2581_v24 = vmax.f32 %v2579_v27, %v8297_v13  ;;  %v1529_v4 = vadd.s32 344, %v5557_v7  ;;  %v8301_v6 = vld [vmem:[#allocation159_spill] sm:$0xff]  ;;  %v8305_v62 = vld [vmem:[#allocation165_spill] sm:$0xff]  ;;  %v8306_v27 = vld [vmem:[#allocation162_spill] sm:$0xff] }
 0x274   :  { %v2518_v40 = vmax.f32 %v2516_v35, %v8301_v6  ;;  %v2303_v9 = vadd.f32 %v2302_v58, %v1954_v18  ;;  %v1955_v3 = vsel %vm1699_vm5, %v8304_v36, 0.0  ;;  %v1956_v63 = vsel %vm1700_vm6, %v8305_v62, 0.0  ;;  %v8307_v13 = vld [vmem:[#allocation163_spill] sm:$0xff]  ;;  %v8308_v6 = vld [vmem:[#allocation168_spill] sm:$0xff] }
 0x275   :  { %v6279_v42 = vpop.f32.mrf.mxu2  ;;  %v2170_v28 = vadd.f32 %v2169_v56, %v1953_v33  ;;  %vm1705_vm0 = vcmp.eq.s32.totalorder %v1528_v26, %v5563_v32  ;;  %vm1706_vm11 = vcmp.eq.s32.totalorder %v1528_v26, %v5565_v47  ;;  %v2651_v35 = vmax.f32 %v2649_v21, %v8306_v27  ;;  %v8310_v21 = vld [vmem:[#allocation166_spill] sm:$0xff]  ;;  %v8311_v27 = vld [vmem:[#allocation167_spill] sm:$0xff] }
 0x276   :  { %v6277_v12 = vpop.f32.mrf.mxu3  ;;  %8300 = vst [vmem:[#allocation227_spill] sm:$0xff] %v6279_v42  ;;  %v2520_v10 = vmax.f32 %v2518_v40, %v8307_v13  ;;  %v1957_v58 = vsel %vm1701_vm7, %v8308_v6, 0.0  ;;  %v2449_v33 = vmax.f32 %v2447_v19, %v8304_v36  ;;  %v2582_v56 = vmax.f32 %v2580_v8, %v8305_v62  ;;  %v8312_v62 = vld [vmem:[#allocation172_spill] sm:$0xff] }
 0x277   :  { %8299 = vst [vmem:[#allocation226_spill] sm:$0xff] %v6277_v12  ;;  %v6285_v41 = vpop.f32.mrf.mxu0  ;;  %v1530_v18 = vadd.s32 352, %v5557_v7  ;;  %v2171_v17 = vadd.f32 %v2170_v28, %v1955_v3  ;;  %v8309_v12 = vld [vmem:[#allocation169_spill] sm:$0xff]  ;;  %vm1707_vm12 = vcmp.eq.s32.totalorder %v1529_v4, %v5563_v32  ;;  %v2450_v40 = vmax.f32 %v2448_v54, %v8308_v6 }
 0x278   :  { %8302 = vst [vmem:[#allocation228_spill] sm:$0xff] %v6285_v41  ;;  %v6287_v60 = vpop.f32.mrf.mxu1  ;;  %v1958_v42 = vsel %vm1702_vm8, %v8309_v12, 0.0  ;;  %v2304_v41 = vadd.f32 %v2303_v9, %v1956_v63  ;;  %vm1708_vm13 = vcmp.eq.s32.totalorder %v1529_v4, %v5565_v47  ;;  %v2653_v13 = vmax.f32 %v2651_v35, %v8310_v21  ;;  %v8313_v3 = vld [vmem:[#allocation173_spill] sm:$0xff] }
 0x279   :  { %8303 = vst [vmem:[#allocation229_spill] sm:$0xff] %v6287_v60  ;;  %v2522_v19 = vmax.f32 %v2520_v10, %v8311_v27  ;;  %v2172_v36 = vadd.f32 %v2171_v17, %v1957_v58  ;;  %v2583_v8 = vmax.f32 %v2581_v24, %v8309_v12  ;;  %v1959_v28 = vsel %vm1703_vm9, %v8312_v62, 0.0  ;;  %v8316_v58 = vld [vmem:[#allocation170_spill] sm:$0xff]  ;;  %v8317_v12 = vld [vmem:[#allocation171_spill] sm:$0xff] }
 0x27a   :  { %v1531_v31 = vadd.s32 360, %v5557_v7  ;;  %v2305_v9 = vadd.f32 %v2304_v41, %v1958_v42  ;;  %v1960_v54 = vsel %vm1704_vm10, %v8313_v3, 0.0  ;;  %vm1709_vm14 = vcmp.eq.s32.totalorder %v1530_v18, %v5563_v32  ;;  %v8320_v27 = vld [vmem:[#allocation178_spill] sm:$0xff] }
 0x27b   :  { %vm1710_vm15 = vcmp.eq.s32.totalorder %v1530_v18, %v5565_v47  ;;  %v2451_v24 = vmax.f32 %v2449_v33, %v8312_v62  ;;  %v2584_v35 = vmax.f32 %v2582_v56, %v8313_v3  ;;  %v2655_v17 = vmax.f32 %v2653_v13, %v8316_v58  ;;  %v8322_v13 = vld [vmem:[#allocation175_spill] sm:$0xff]  ;;  %v8323_v62 = vld [vmem:[#allocation176_spill] sm:$0xff] }
 0x27c   :  { %v2524_v41 = vmax.f32 %v2522_v19, %v8317_v12  ;;  %v2173_v6 = vadd.f32 %v2172_v36, %v1959_v28  ;;  %v1961_v21 = vsel %vm1705_vm0, %v8320_v27, 0.0  ;;  %v1532_v33 = vadd.s32 368, %v5557_v7 }
 0x27d   :  { %v6325_v10 = vpop.f32.mrf.mxu2  ;;  %v2306_v56 = vadd.f32 %v2305_v9, %v1960_v54  ;;  %vm1711_vm1 = vcmp.eq.s32.totalorder %v1531_v31, %v5563_v32  ;;  %vm1712_vm2 = vcmp.eq.s32.totalorder %v1531_v31, %v5565_v47  ;;  %v2657_v19 = vmax.f32 %v2655_v17, %v8322_v13 }
 0x27e   :  { %v6323_v63 = vpop.f32.mrf.mxu3  ;;  %8315 = vst [vmem:[#allocation231_spill] sm:$0xff] %v6325_v10  ;;  %v2452_v3 = vmax.f32 %v2450_v40, %v8320_v27  ;;  %v1533_v28 = vadd.s32 376, %v5557_v7  ;;  %v2526_v12 = vmax.f32 %v2524_v41, %v8323_v62  ;;  %v2174_v58 = vadd.f32 %v2173_v6, %v1961_v21 }
 0x27f   :  { %8314 = vst [vmem:[#allocation230_spill] sm:$0xff] %v6323_v63  ;;  %v6331_v42 = vpop.f32.mrf.mxu0  ;;  %v8321_v63 = vld [vmem:[#allocation179_spill] sm:$0xff]  ;;  %v1963_v9 = vsel %vm1707_vm12, %v5698_v48, 0.0  ;;  %v1964_v54 = vsel %vm1708_vm13, %v5700_v0, 0.0  ;;  %vm1713_vm3 = vcmp.eq.s32.totalorder %v1532_v33, %v5563_v32  ;;  %vm1714_vm4 = vcmp.eq.s32.totalorder %v1532_v33, %v5565_v47 }
 0x280   :  { %8318 = vst [vmem:[#allocation232_spill] sm:$0xff] %v6331_v42  ;;  %v6333_v46 = vpop.f32.mrf.mxu1  ;;  %v1962_v10 = vsel %vm1706_vm11, %v8321_v63, 0.0  ;;  %v2585_v36 = vmax.f32 %v2583_v8, %v8321_v63  ;;  %v2659_v40 = vmax.f32 %v2657_v19, %v5688_v59  ;;  %v2528_v8 = vmax.f32 %v2526_v12, %v5690_v49 }
 0x281   :  { %8319 = vst [vmem:[#allocation233_spill] sm:$0xff] %v6333_v46  ;;  %v2307_v26 = vadd.f32 %v2306_v56, %v1962_v10  ;;  %v2453_v17 = vmax.f32 %v2451_v24, %v5698_v48  ;;  %v2586_v6 = vmax.f32 %v2584_v35, %v5700_v0  ;;  %v1965_v21 = vsel %vm1709_vm14, %v5754_v50, 0.0  ;;  %v8336_v48 = vld [vmem:[#allocation211_spill] sm:$0xff] }
 0x282   :  { %v1534_v10 = vadd.s32 384, %v5557_v7  ;;  %v2175_v4 = vadd.f32 %v2174_v58, %v1963_v9  ;;  %v1966_v56 = vsel %vm1710_vm15, %v5756_v2, 0.0  ;;  %vm1715_vm5 = vcmp.eq.s32.totalorder %v1533_v28, %v5563_v32 }
 0x283   :  { %v2308_v41 = vadd.f32 %v2307_v26, %v1964_v54  ;;  %v2454_v24 = vmax.f32 %v2452_v3, %v5754_v50  ;;  %vm1716_vm6 = vcmp.eq.s32.totalorder %v1533_v28, %v5565_v47  ;;  %v2661_v35 = vmax.f32 %v2659_v40, %v5744_v55 }
 0x284   :  { %v2530_v0 = vmax.f32 %v2528_v8, %v5746_v51  ;;  %v2176_v18 = vadd.f32 %v2175_v4, %v1965_v21  ;;  %v2587_v9 = vmax.f32 %v2585_v36, %v5756_v2  ;;  %v1967_v54 = vsel %vm1711_vm1, %v5813_v53, 0.0 }
 0x285   :  { %v6371_v12 = vpop.f32.mrf.mxu2  ;;  %v1535_v63 = vadd.s32 392, %v5557_v7  ;;  %v2309_v3 = vadd.f32 %v2308_v41, %v1966_v56  ;;  %v1968_v40 = vsel %vm1712_vm2, %v5815_v52, 0.0  ;;  %vm1717_vm7 = vcmp.eq.s32.totalorder %v1534_v10, %v5563_v32 }
 0x286   :  { %v6369_v19 = vpop.f32.mrf.mxu3  ;;  %vm1718_vm8 = vcmp.eq.s32.totalorder %v1534_v10, %v5565_v47  ;;  %v2455_v8 = vmax.f32 %v2453_v17, %v5813_v53  ;;  %v2588_v21 = vmax.f32 %v2586_v6, %v5815_v52  ;;  %v2663_v36 = vmax.f32 %v2661_v35, %v5800_v45  ;;  %v8334_v53 = vld [vmem:[#allocation213_spill] sm:$0xff] }
 0x287   :  { %v6377_v58 = vpop.f32.mrf.mxu0  ;;  %v2503_v4 = vmax.f32 %v5802_v14, %v2530_v0  ;;  %v2177_v2 = vadd.f32 %v2176_v18, %v1967_v54  ;;  %v1969_v41 = vsel %vm1713_vm3, %v5861_v38, 0.0  ;;  %v1970_v31 = vsel %vm1714_vm4, %v5863_v11, 0.0 }
 0x288   :  { %8324 = vst [vmem:[#allocation175_spill] sm:$0xff] %v6377_v58  ;;  %v6379_v26 = vpop.f32.mrf.mxu1  ;;  %v1536_v56 = vadd.s32 400, %v5557_v7  ;;  %v2310_v50 = vadd.f32 %v2309_v3, %v1968_v40  ;;  %vm1719_vm9 = vcmp.eq.s32.totalorder %v1535_v63, %v5563_v32  ;;  %vm1720_vm10 = vcmp.eq.s32.totalorder %v1535_v63, %v5565_v47 }
 0x289   :  { %8325 = vst [vmem:[#allocation176_spill] sm:$0xff] %v6379_v26  ;;  %v2636_v17 = vmax.f32 %v5853_v1, %v2663_v36  ;;  %v2456_v0 = vmax.f32 %v2454_v24, %v5861_v38  ;;  %v2589_v6 = vmax.f32 %v2587_v9, %v5863_v11  ;;  %v1537_v35 = vadd.s32 408, %v5557_v7 }
 0x28a   :  { %v2505_v18 = vmax.f32 %v2503_v4, %v5855_v5  ;;  %v2178_v54 = vadd.f32 %v2177_v2, %v1969_v41  ;;  %v2311_v33 = vadd.f32 %v2310_v50, %v1970_v31  ;;  %v1971_v3 = vsel %vm1715_vm5, %v5919_v25, 0.0 }
 0x28b   :  { %v1972_v40 = vsel %vm1716_vm6, %v5921_v37, 0.0  ;;  %vm1721_vm0 = vcmp.eq.s32.totalorder %v1536_v56, %v5563_v32  ;;  %vm1722_vm11 = vcmp.eq.s32.totalorder %v1536_v56, %v5565_v47  ;;  %v2638_v24 = vmax.f32 %v2636_v17, %v5911_v29 }
 0x28c   :  { %v2507_v50 = vmax.f32 %v2505_v18, %v5913_v43  ;;  %v2457_v4 = vmax.f32 %v2455_v8, %v5919_v25  ;;  %v2590_v28 = vmax.f32 %v2588_v21, %v5921_v37  ;;  %v1973_v41 = vsel %vm1717_vm7, %v5965_v61, 0.0 }
 0x28d   :  { %v6417_v36 = vpop.f32.mrf.mxu2  ;;  %v1538_v31 = vadd.s32 416, %v5557_v7  ;;  %v2179_v11 = vadd.f32 %v2178_v54, %v1971_v3  ;;  %v2312_v38 = vadd.f32 %v2311_v33, %v1972_v40  ;;  %v1974_v17 = vsel %vm1718_vm8, %v5967_v34, 0.0 }
 0x28e   :  { %v6415_v52 = vpop.f32.mrf.mxu3  ;;  %vm1723_vm12 = vcmp.eq.s32.totalorder %v1537_v35, %v5563_v32  ;;  %v2458_v18 = vmax.f32 %v2456_v0, %v5965_v61  ;;  %vm1724_vm13 = vcmp.eq.s32.totalorder %v1537_v35, %v5565_v47  ;;  %v2640_v8 = vmax.f32 %v2638_v24, %v5958_v57 }
 0x28f   :  { %8326 = vst [vmem:[#allocation234_spill] sm:$0xff] %v6415_v52  ;;  %v6423_v2 = vpop.f32.mrf.mxu0  ;;  %v2509_v21 = vmax.f32 %v2507_v50, %v5960_v16  ;;  %v2180_v37 = vadd.f32 %v2179_v11, %v1973_v41  ;;  %v2591_v25 = vmax.f32 %v2589_v6, %v5967_v34  ;;  %v1975_v54 = vsel %vm1719_vm9, %v6011_v22, 0.0  ;;  %v8333_v34 = vld [vmem:[#allocation207_spill] sm:$0xff] }
 0x290   :  { %8327 = vst [vmem:[#allocation235_spill] sm:$0xff] %v6423_v2  ;;  %v6425_v9 = vpop.f32.mrf.mxu1  ;;  %v1539_v10 = vadd.s32 424, %v5557_v7  ;;  %v2313_v33 = vadd.f32 %v2312_v38, %v1974_v17  ;;  %v1976_v0 = vsel %vm1720_vm10, %v6013_v20, 0.0  ;;  %vm1725_vm14 = vcmp.eq.s32.totalorder %v1538_v31, %v5563_v32 }
 0x291   :  { %8328 = vst [vmem:[#allocation236_spill] sm:$0xff] %v6425_v9  ;;  %vm1726_vm15 = vcmp.eq.s32.totalorder %v1538_v31, %v5565_v47  ;;  %v2459_v3 = vmax.f32 %v2457_v4, %v6011_v22  ;;  %v2592_v11 = vmax.f32 %v2590_v28, %v6013_v20  ;;  %v2642_v6 = vmax.f32 %v2640_v8, %v6002_v30  ;;  %v8342_v31 = vld [vmem:[#allocation221_spill] sm:$0xff] }
 0x292   :  { %v2511_v40 = vmax.f32 %v2509_v21, %v6004_v15  ;;  %v2181_v24 = vadd.f32 %v2180_v37, %v1975_v54  ;;  %v1977_v38 = vsel %vm1721_vm0, %v6057_v39, 0.0  ;;  %v1978_v63 = vsel %vm1722_vm11, %v6059_v44, 0.0  ;;  %v8332_v21 = vld [vmem:[#allocation212_spill] sm:$0xff] }
 0x293   :  { %v1540_v50 = vadd.s32 432, %v5557_v7  ;;  %v2314_v28 = vadd.f32 %v2313_v33, %v1976_v0  ;;  %vm1727_vm1 = vcmp.eq.s32.totalorder %v1539_v10, %v5563_v32  ;;  %vm1728_vm2 = vcmp.eq.s32.totalorder %v1539_v10, %v5565_v47 }
 0x294   :  { %v2644_v37 = vmax.f32 %v2642_v6, %v6049_v23  ;;  %v2460_v56 = vmax.f32 %v2458_v18, %v6057_v39  ;;  %v1979_v54 = vsel %vm1723_vm12, %v8332_v21, 0.0  ;;  %v1541_v20 = vadd.s32 440, %v5557_v7  ;;  %v8335_v18 = vld [vmem:[#allocation210_spill] sm:$0xff] }
 0x295   :  { %v6464_v4 = vpop.f32.mrf.mxu2  ;;  %v2513_v33 = vmax.f32 %v2511_v40, %v8333_v34  ;;  %v2182_v0 = vadd.f32 %v2181_v24, %v1977_v38  ;;  %v2315_v22 = vadd.f32 %v2314_v28, %v1978_v63  ;;  %v2593_v61 = vmax.f32 %v2591_v25, %v6059_v44  ;;  %v8337_v38 = vld [vmem:[#allocation216_spill] sm:$0xff]  ;;  %v8338_v63 = vld [vmem:[#allocation217_spill] sm:$0xff] }
 0x296   :  { %v6462_v41 = vpop.f32.mrf.mxu3  ;;  %v1980_v6 = vsel %vm1724_vm13, %v8334_v53, 0.0  ;;  %vm1729_vm3 = vcmp.eq.s32.totalorder %v1540_v50, %v5563_v32  ;;  %vm1730_vm4 = vcmp.eq.s32.totalorder %v1540_v50, %v5565_v47  ;;  %v2646_v39 = vmax.f32 %v2644_v37, %v8335_v18 }
 0x297   :  { %8329 = vst [vmem:[#allocation237_spill] sm:$0xff] %v6462_v41  ;;  %v6469_v17 = vpop.f32.mrf.mxu0  ;;  %v2515_v27 = vmax.f32 %v2513_v33, %v8336_v48  ;;  %v2183_v23 = vadd.f32 %v2182_v0, %v1979_v54  ;;  %v2461_v15 = vmax.f32 %v2459_v3, %v8332_v21  ;;  %v2594_v40 = vmax.f32 %v2592_v11, %v8334_v53  ;;  %v8339_v3 = vld [vmem:[#allocation214_spill] sm:$0xff]  ;;  %v8340_v11 = vld [vmem:[#allocation215_spill] sm:$0xff] }
 0x298   :  { %8330 = vst [vmem:[#allocation238_spill] sm:$0xff] %v6469_v17  ;;  %v6471_v8 = vpop.f32.mrf.mxu1  ;;  %v1542_v24 = vadd.s32 448, %v5557_v7  ;;  %v2316_v25 = vadd.f32 %v2315_v22, %v1980_v6  ;;  %v1981_v35 = vsel %vm1725_vm14, %v8337_v38, 0.0  ;;  %v1982_v28 = vsel %vm1726_vm15, %v8338_v63, 0.0  ;;  %v8341_v6 = vld [vmem:[#allocation220_spill] sm:$0xff] }
 0x299   :  { %8331 = vst [vmem:[#allocation239_spill] sm:$0xff] %v6471_v8  ;;  %vm1731_vm5 = vcmp.eq.s32.totalorder %v1541_v20, %v5563_v32  ;;  %vm1732_vm6 = vcmp.eq.s32.totalorder %v1541_v20, %v5565_v47  ;;  %v1543_v37 = vadd.s32 456, %v5557_v7  ;;  %v2648_v54 = vmax.f32 %v2646_v39, %v8339_v3 }
 0x29a   :  { %v2517_v33 = vmax.f32 %v2515_v27, %v8340_v11  ;;  %v2462_v22 = vmax.f32 %v2460_v56, %v8337_v38  ;;  %v2595_v0 = vmax.f32 %v2593_v61, %v8338_v63  ;;  %v1983_v53 = vsel %vm1727_vm1, %v8341_v6, 0.0  ;;  %v8346_v63 = vld [vmem:[#allocation218_spill] sm:$0xff]  ;;  %v8347_v38 = vld [vmem:[#allocation219_spill] sm:$0xff] }
 0x29b   :  { %v1984_v44 = vsel %vm1728_vm2, %v8342_v31, 0.0  ;;  %v2184_v48 = vadd.f32 %v2183_v23, %v1981_v35  ;;  %v2317_v18 = vadd.f32 %v2316_v25, %v1982_v28  ;;  %vm1733_vm7 = vcmp.eq.s32.totalorder %v1542_v24, %v5563_v32  ;;  %v8348_v28 = vld [vmem:[#allocation224_spill] sm:$0xff] }
 0x29c   :  { %vm1734_vm8 = vcmp.eq.s32.totalorder %v1542_v24, %v5565_v47  ;;  %v6518_v61 = vmax.f32 %v2461_v15, %v8341_v6  ;;  %v2596_v56 = vmax.f32 %v2594_v40, %v8342_v31  ;;  %v2650_v10 = vmax.f32 %v2648_v54, %v8346_v63  ;;  %v8349_v15 = vld [vmem:[#allocation225_spill] sm:$0xff]  ;;  %v8352_v6 = vld [vmem:[#allocation228_spill] sm:$0xff] }
 0x29d   :  { %v2519_v11 = vmax.f32 %v2517_v33, %v8347_v38  ;;  %v2185_v3 = vadd.f32 %v2184_v48, %v1983_v53  ;;  %v2318_v23 = vadd.f32 %v2317_v18, %v1984_v44  ;;  %vm1735_vm9 = vcmp.eq.s32.totalorder %v1543_v37, %v5563_v32  ;;  %v6525_v35 = vpop.f32.mrf.mxu2  ;;  %v8350_v44 = vld [vmem:[#allocation222_spill] sm:$0xff]  ;;  %v8351_v33 = vld [vmem:[#allocation223_spill] sm:$0xff] }
 0x29e   :  { %v6509_v21 = vpop.f32.mrf.mxu3  ;;  %v1544_v25 = vadd.s32 464, %v5557_v7  ;;  %v1985_v34 = vsel %vm1729_vm3, %v8348_v28, 0.0  ;;  %v1986_v40 = vsel %vm1730_vm4, %v8349_v15, 0.0  ;;  %v2598_v54 = vmax.f32 %v2596_v56, %v6287_v60 }
 0x29f   :  { %8343 = vst [vmem:[#allocation240_spill] sm:$0xff] %v6509_v21  ;;  %v6513_v39 = vpop.f32.mrf.mxu0  ;;  %vm1736_vm10 = vcmp.eq.s32.totalorder %v1543_v37, %v5565_v47  ;;  %v2464_v48 = vmax.f32 %v2462_v22, %v8348_v28  ;;  %v2597_v53 = vmax.f32 %v2595_v0, %v8349_v15  ;;  %v2652_v18 = vmax.f32 %v2650_v10, %v8350_v44  ;;  %v8353_v10 = vld [vmem:[#allocation227_spill] sm:$0xff] }
 0x2a0   :  { %8344 = vst [vmem:[#allocation241_spill] sm:$0xff] %v6513_v39  ;;  %v6515_v27 = vpop.f32.mrf.mxu1  ;;  %v2521_v31 = vmax.f32 %v2519_v11, %v8351_v33  ;;  %v1987_v38 = vsel %vm1731_vm5, %v8352_v6, 0.0  ;;  %v1988_v50 = vsel %vm1732_vm6, %v6287_v60, 0.0  ;;  %v2600_v56 = vmax.f32 %v2598_v54, %v6379_v26 }
 0x2a1   :  { %8345 = vst [vmem:[#allocation242_spill] sm:$0xff] %v6515_v27  ;;  %v1545_v63 = vadd.s32 472, %v5557_v7  ;;  %v2186_v30 = vadd.f32 %v2185_v3, %v1985_v34  ;;  %v2319_v22 = vadd.f32 %v2318_v23, %v1986_v40  ;;  %vm1737_vm0 = vcmp.eq.s32.totalorder %v1544_v25, %v5563_v32 }
 0x2a2   :  { %vm1738_vm11 = vcmp.eq.s32.totalorder %v1544_v25, %v5565_v47  ;;  %v1989_v11 = vsel %vm1733_vm7, %v6331_v42, 0.0  ;;  %v1990_v0 = vsel %vm1734_vm8, %v6333_v46, 0.0  ;;  %v2602_v20 = vmax.f32 %v2600_v56, %v6471_v8  ;;  %v8357_v25 = vld [vmem:[#allocation174_spill] sm:$0xff] }
 0x2a3   :  { %v6557_v54 = vmax.f32 %v2521_v31, %v8353_v10  ;;  %v2187_v60 = vadd.f32 %v2186_v30, %v1987_v38  ;;  %v2465_v34 = vmax.f32 %v6518_v61, %v8352_v6  ;;  %v2320_v3 = vadd.f32 %v2319_v22, %v1988_v50 }
 0x2a4   :  { %v1546_v23 = vadd.s32 480, %v5557_v7  ;;  %v1991_v24 = vsel %vm1735_vm9, %v6377_v58, 0.0  ;;  %v1992_v31 = vsel %vm1736_vm10, %v6379_v26, 0.0  ;;  %vm1739_vm12 = vcmp.eq.s32.totalorder %v1545_v63, %v5563_v32 }
 0x2a5   :  { %v2188_v38 = vadd.f32 %v2187_v60, %v1989_v11  ;;  %v2321_v61 = vadd.f32 %v2320_v3, %v1990_v0  ;;  %vm1740_vm13 = vcmp.eq.s32.totalorder %v1545_v63, %v5565_v47  ;;  %v1547_v50 = vadd.s32 488, %v5557_v7  ;;  %v6588_v3 = vpop.f32.mrf.mxu2 }
 0x2a6   :  { %v6576_v56 = vpop.f32.mrf.mxu3  ;;  %v2466_v22 = vmax.f32 %v2464_v48, %v6331_v42  ;;  %v2599_v6 = vmax.f32 %v2597_v53, %v6333_v46  ;;  %v1993_v37 = vsel %vm1737_vm0, %v6423_v2, 0.0  ;;  %vm1741_vm14 = vcmp.eq.s32.totalorder %v1546_v23, %v5563_v32 }
 0x2a7   :  { %v6562_v40 = vpop.f32.mrf.mxu0  ;;  %8356 = vst [vmem:[#allocation227_spill] sm:$0xff] %v6576_v56  ;;  %v2189_v60 = vadd.f32 %v2188_v38, %v1991_v24  ;;  %v2322_v11 = vadd.f32 %v2321_v61, %v1992_v31  ;;  %v1548_v0 = vadd.s32 496, %v5557_v7  ;;  %vm1742_vm15 = vcmp.eq.s32.totalorder %v1546_v23, %v5565_v47 }
 0x2a8   :  { %8354 = vst [vmem:[#allocation222_spill] sm:$0xff] %v6562_v40  ;;  %v6564_v15 = vpop.f32.mrf.mxu1  ;;  %v2468_v48 = vmax.f32 %v2466_v22, %v6423_v2  ;;  %v2601_v53 = vmax.f32 %v2599_v6, %v6425_v9  ;;  %vm1743_vm1 = vcmp.eq.s32.totalorder %v1547_v50, %v5563_v32  ;;  %vm1744_vm2 = vcmp.eq.s32.totalorder %v1547_v50, %v5565_v47  ;;  %v8368_v50 = vld [vmem:[#allocation184_spill] sm:$0xff] }
 0x2a9   :  { %8355 = vst [vmem:[#allocation223_spill] sm:$0xff] %v6564_v15  ;;  %v2604_v30 = vmax.f32 %v2602_v20, %v6564_v15  ;;  %v1994_v20 = vsel %vm1738_vm11, %v6425_v9, 0.0  ;;  %v2190_v46 = vadd.f32 %v2189_v60, %v1993_v37  ;;  %vm1754_vm3 = vcmp.eq.s32.totalorder %v8357_v25, %v5565_v47 }
 0x2aa   :  { %v2323_v42 = vadd.f32 %v2322_v11, %v1994_v20  ;;  %vm1753_vm4 = vcmp.eq.s32.totalorder %v8357_v25, %v5563_v32  ;;  %v1995_v24 = vsel %vm1739_vm12, %v6469_v17, 0.0  ;;  %v1996_v6 = vsel %vm1740_vm13, %v6471_v8, 0.0  ;;  %v8361_v20 = vld [vmem:[#allocation226_spill] sm:$0xff]  ;;  %v8378_v25 = vld [vmem:[#allocation181_spill] sm:$0xff] }
 0x2ab   :  { %v2654_v26 = vmax.f32 %v2652_v18, %v2604_v30  ;;  %v2470_v18 = vmax.f32 %v2468_v48, %v6513_v39  ;;  %v2603_v31 = vmax.f32 %v2601_v53, %v6515_v27  ;;  %v8358_v30 = vld [vmem:[#allocation177_spill] sm:$0xff]  ;;  %v1997_v38 = vsel %vm1741_vm14, %v6513_v39, 0.0 }
 0x2ac   :  { %vm1756_vm5 = vcmp.eq.s32.totalorder %v8358_v30, %v5565_v47  ;;  %vm1755_vm6 = vcmp.eq.s32.totalorder %v8358_v30, %v5563_v32  ;;  %vm1745_vm7 = vcmp.eq.s32.totalorder %v1548_v0, %v5563_v32  ;;  %vm1746_vm8 = vcmp.eq.s32.totalorder %v1548_v0, %v5565_v47 }
 0x2ad   :  { %v1549_v22 = vadd.s32 504, %v5557_v7  ;;  %v1998_v37 = vsel %vm1742_vm15, %v6515_v27, 0.0  ;;  %v2656_v60 = vmax.f32 %v2654_v26, %v8361_v20  ;;  %v2191_v53 = vadd.f32 %v2190_v46, %v1995_v24 }
 0x2ae   :  { %v2324_v8 = vadd.f32 %v2323_v42, %v1996_v6  ;;  %v8362_v9 = vlaneseq  ;;  %v8363_v39 = vmov 0  ;;  %v2467_v2 = vmax.f32 %v2465_v34, %v6377_v58  ;;  %v8366_v42 = vld [vmem:[#allocation182_spill] sm:$0xff]  ;;  %v6644_v24 = vpop.f32.mrf.mxu3  ;;  %v8389_v58 = vld [vmem:[#allocation35_spill] sm:$0xff] }
 0x2af   :  { %v6614_v61 = vpop.f32.mrf.mxu0  ;;  %v1999_v23 = vsel %vm1743_vm1, %v6562_v40, 0.0  ;;  %v2000_v26 = vsel %vm1744_vm2, %v6564_v15, 0.0  ;;  %v4852_v27 = vmov -inf   ;;  %vm1758_vm10 = vcmp.eq.s32.totalorder %v8366_v42, %v5565_v47  ;;  %8367 = vst [vmem:[#allocation182_spill] sm:$0xff] %v6644_v24 }
 0x2b0   :  { %8359 = vst [vmem:[#allocation174_spill] sm:$0xff] %v6614_v61  ;;  %v6617_v63 = vpop.f32.mrf.mxu1  ;;  %v2472_v11 = vmax.f32 %v2470_v18, %v6614_v61  ;;  %vm6628_vm9 = vcmp.lt.s32.totalorder %v8362_v9, 256  ;;  %v2192_v46 = vadd.f32 %v2191_v53, %v1997_v38  ;;  %v2325_v9 = vadd.f32 %v2324_v8, %v1998_v37  ;;  %v6659_v38 = vpop.f32.mrf.mxu2 }
 0x2b1   :  { %8360 = vst [vmem:[#allocation177_spill] sm:$0xff] %v6617_v63  ;;  %v2605_v48 = vmax.f32 %v2603_v31, %v6617_v63  ;;  %v8364_v39 = vsel %vm6628_vm9, 4294967295, %v8363_v39  ;;  %vm1757_vm0 = vcmp.eq.s32.totalorder %v8366_v42, %v5563_v32  ;;  %vm1760_vm11 = vcmp.eq.s32.totalorder %v8368_v50, %v5565_v47 }
 0x2b2   :  { %8365 = vst [vmem:[#allocation226_spill] sm:$0xff] %v8364_v39  ;;  %v2525_v34 = vmax.f32 %v6557_v54, %v2472_v11  ;;  %v2469_v6 = vmax.f32 %v2467_v2, %v6469_v17  ;;  %v2002_v8 = vsel %vm1746_vm8, %v6617_v63, 0.0  ;;  %v2193_v31 = vadd.f32 %v2192_v46, %v1999_v23  ;;  %v8371_v23 = vld [vmem:[#allocation231_spill] sm:$0xff]  ;;  %v8488_v39 = vld [vmem:[#allocation29_spill] sm:$0xff] }
 0x2b3   :  { %v2658_v18 = vmax.f32 %v2656_v60, %v2605_v48  ;;  %23 = vst.msk [vmem:[#allocation2] sm:$0x3] %vm6628_vm9, %v4852_v27  ;;  %v2001_v27 = vsel %vm1745_vm7, %v6614_v61, 0.0  ;;  %v2326_v54 = vadd.f32 %v2325_v9, %v2000_v26  ;;  %vm1747_vm12 = vcmp.eq.s32.totalorder %v1549_v22, %v5563_v32  ;;  %v8370_v60 = vld [vmem:[#allocation230_spill] sm:$0xff] }
 0x2b4   :  { %vm1748_vm13 = vcmp.eq.s32.totalorder %v1549_v22, %v5565_v47  ;;  %8369 = vst [vmem:[#allocation184_spill] sm:$0xff] %v6659_v38  ;;  %vm1759_vm14 = vcmp.eq.s32.totalorder %v8368_v50, %v5563_v32  ;;  %v1556_v2 = vadd.s32 560, %v5557_v7  ;;  %v2471_v37 = vmax.f32 %v2469_v6, %v6562_v40  ;;  %v8376_v61 = vld [vmem:[#allocation22_spill] sm:$0xff] }
 0x2b5   :  { %v2660_v11 = vmax.f32 %v2658_v18, %v8370_v60  ;;  %v6667_v0 = vadd.s32 568, %v5557_v7  ;;  %v2194_v48 = vadd.f32 %v2193_v31, %v2001_v27  ;;  %v2327_v53 = vadd.f32 %v2326_v54, %v2002_v8  ;;  %v8374_v18 = vld [vmem:[#allocation18_spill] sm:$0xff]  ;;  %v8375_v8 = vld [vmem:[#allocation19_spill] sm:$0xff] }
 0x2b6   :  { %v2527_v26 = vmax.f32 %v2525_v34, %v8371_v23  ;;  %v2010_v27 = vsel %vm1754_vm3, %v8374_v18, 0.0  ;;  %v2009_v34 = vsel %vm1753_vm4, %v8375_v8, 0.0  ;;  %vm1762_vm15 = vcmp.eq.s32.totalorder %v1556_v2, %v5565_v47  ;;  %v8384_v8 = vld [vmem:[#allocation27_spill] sm:$0xff]  ;;  %v8385_v40 = vld [vmem:[#allocation30_spill] sm:$0xff] }
 0x2b7   :  { %v6670_v46 = vpop.f32.mrf.mxu0  ;;  %vm1761_vm1 = vcmp.eq.s32.totalorder %v1556_v2, %v5563_v32  ;;  %vm1764_vm2 = vcmp.eq.s32.totalorder %v6667_v0, %v5565_v47  ;;  %vm1763_vm3 = vcmp.eq.s32.totalorder %v6667_v0, %v5563_v32  ;;  %v4853_v17 = vmov 0.0  }
 0x2b8   :  { %8372 = vst [vmem:[#allocation230_spill] sm:$0xff] %v6670_v46  ;;  %v6672_v22 = vpop.f32.mrf.mxu1  ;;  %v2003_v9 = vsel %vm1747_vm12, %v6670_v46, 0.0  ;;  %v2473_v63 = vmax.f32 %v2471_v37, %v6670_v46  ;;  %v2012_v37 = vsel %vm1756_vm5, %v8376_v61, 0.0  ;;  %v1562_v2 = vadd.s32 608, %v5557_v7 }
 0x2b9   :  { %8373 = vst [vmem:[#allocation231_spill] sm:$0xff] %v6672_v22  ;;  %v2662_v15 = vmax.f32 %v2660_v11, %v6672_v22  ;;  %v2004_v6 = vsel %vm1748_vm13, %v6672_v22, 0.0  ;;  %v2195_v31 = vadd.f32 %v2194_v48, %v2003_v9  ;;  %v8377_v11 = vld [vmem:[#allocation23_spill] sm:$0xff] }
 0x2ba   :  { %v2328_v54 = vadd.f32 %v2327_v53, %v2004_v6  ;;  %v2011_v22 = vsel %vm1755_vm6, %v8377_v11, 0.0  ;;  %v2529_v46 = vmax.f32 %v2527_v26, %v2473_v63  ;;  %v8379_v53 = vld [vmem:[#allocation180_spill] sm:$0xff]  ;;  %v1558_v6 = vadd.s32 576, %v5557_v7  ;;  %v8380_v63 = vld [vmem:[#allocation26_spill] sm:$0xff]  ;;  %v8381_v26 = vld [vmem:[#allocation195_spill] sm:$0xff] }
 0x2bb   :  { %v2664_v18 = vmax.f32 %v2662_v15, %v6369_v19  ;;  %v2196_v48 = vadd.f32 %v2195_v31, %v8378_v25  ;;  %v2014_v15 = vsel %vm1758_vm10, %v8380_v63, 0.0  ;;  %v1559_v11 = vadd.s32 584, %v5557_v7  ;;  %24 = vst.msk [vmem:[#allocation3] sm:$0x3] %vm6628_vm9, %v4853_v17 }
 0x2bc   :  { %v2329_v9 = vadd.f32 %v2328_v54, %v8379_v53  ;;  %v2531_v61 = vmax.f32 %v2529_v46, %v6371_v12  ;;  %v8382_v54 = vld [vmem:[#allocation183_spill] sm:$0xff]  ;;  %v6712_v53 = vpop.f32.mrf.mxu3  ;;  %v2013_v63 = vsel %vm1757_vm0, %v8384_v8, 0.0  ;;  %vm1766_vm4 = vcmp.eq.s32.totalorder %v1558_v6, %v5565_v47  ;;  %25 = vst.msk [vmem:[#allocation4] sm:$0x3] %vm6628_vm9, %v4853_v17 }
 0x2bd   :  { %v2665_v30 = vmax.f32 %v6415_v52, %v2664_v18  ;;  %v2197_v31 = vadd.f32 %v2196_v48, %v8381_v26  ;;  %8383 = vst [vmem:[#allocation181_spill] sm:$0xff] %v6712_v53  ;;  %v2016_v48 = vsel %vm1760_vm11, %v8385_v40, 0.0  ;;  %vm1765_vm5 = vcmp.eq.s32.totalorder %v1558_v6, %v5563_v32 }
 0x2be   :  { %v2330_v25 = vadd.f32 %v2329_v9, %v8382_v54  ;;  %v2532_v46 = vmax.f32 %v6417_v36, %v2531_v61  ;;  %v6725_v54 = vpop.f32.mrf.mxu2  ;;  %v8387_v61 = vld [vmem:[#allocation31_spill] sm:$0xff]  ;;  %vm1768_vm6 = vcmp.eq.s32.totalorder %v1559_v11, %v5565_v47  ;;  %vm1767_vm7 = vcmp.eq.s32.totalorder %v1559_v11, %v5563_v32 }
 0x2bf   :  { %v2666_v18 = vmax.f32 %v6462_v41, %v2665_v30  ;;  %v2198_v26 = vadd.f32 %v2197_v31, %v2009_v34  ;;  %8386 = vst [vmem:[#allocation180_spill] sm:$0xff] %v6725_v54  ;;  %v2015_v30 = vsel %vm1759_vm14, %v8387_v61, 0.0  ;;  %v1561_v17 = vadd.s32 600, %v5557_v7 }
 0x2c0   :  { %v2331_v9 = vadd.f32 %v2330_v25, %v2010_v27  ;;  %v2533_v42 = vmax.f32 %v6464_v4, %v2532_v46  ;;  %v1560_v27 = vadd.s32 592, %v5557_v7  ;;  %v8388_v46 = vld [vmem:[#allocation34_spill] sm:$0xff]  ;;  %vm1774_vm12 = vcmp.eq.s32.totalorder %v1562_v2, %v5565_v47 }
 0x2c1   :  { %v2667_v8 = vmax.f32 %v6509_v21, %v2666_v18  ;;  %v2199_v34 = vadd.f32 %v2198_v26, %v2011_v22  ;;  %v2018_v18 = vsel %vm1762_vm15, %v8388_v46, 0.0  ;;  %v2017_v22 = vsel %vm1761_vm1, %v8389_v58, 0.0  ;;  %v8397_v58 = vld [vmem:[#allocation47_spill] sm:$0xff] }
 0x2c2   :  { %v2332_v31 = vadd.f32 %v2331_v9, %v2012_v37  ;;  %v2534_v50 = vmax.f32 %v6525_v35, %v2533_v42  ;;  %v8390_v37 = vld [vmem:[#allocation38_spill] sm:$0xff]  ;;  %v8391_v42 = vld [vmem:[#allocation39_spill] sm:$0xff]  ;;  %vm1770_vm8 = vcmp.eq.s32.totalorder %v1560_v27, %v5565_v47  ;;  %vm1769_vm10 = vcmp.eq.s32.totalorder %v1560_v27, %v5563_v32 }
 0x2c3   :  { %v2668_v25 = vmax.f32 %v6576_v56, %v2667_v8  ;;  %v2200_v40 = vadd.f32 %v2199_v34, %v2013_v63  ;;  %v2020_v26 = vsel %vm1764_vm2, %v8390_v37, 0.0  ;;  %v2019_v46 = vsel %vm1763_vm3, %v8391_v42, 0.0  ;;  %v8393_v37 = vld [vmem:[#allocation42_spill] sm:$0xff] }
 0x2c4   :  { %v2333_v61 = vadd.f32 %v2332_v31, %v2014_v15  ;;  %v2535_v9 = vmax.f32 %v6588_v3, %v2534_v50  ;;  %vm1772_vm0 = vcmp.eq.s32.totalorder %v1561_v17, %v5565_v47  ;;  %vm1771_vm11 = vcmp.eq.s32.totalorder %v1561_v17, %v5563_v32  ;;  %v6768_v0 = vpop.f32.mrf.mxu3  ;;  %v8395_v42 = vld [vmem:[#allocation46_spill] sm:$0xff] }
 0x2c5   :  { %v2669_v8 = vmax.f32 %v6644_v24, %v2668_v25  ;;  %v2201_v63 = vadd.f32 %v2200_v40, %v2015_v30  ;;  %8392 = vst [vmem:[#allocation195_spill] sm:$0xff] %v6768_v0  ;;  %v2022_v40 = vsel %vm1766_vm4, %v8393_v37, 0.0  ;;  %v2023_v37 = vsel %vm1767_vm7, %v8397_v58, 0.0  ;;  %v8399_v58 = vld [vmem:[#allocation51_spill] sm:$0xff] }
 0x2c6   :  { %v2334_v15 = vadd.f32 %v2333_v61, %v2016_v48  ;;  %v2536_v34 = vmax.f32 %v6659_v38, %v2535_v9  ;;  %v1563_v48 = vadd.s32 616, %v5557_v7  ;;  %v8394_v9 = vld [vmem:[#allocation43_spill] sm:$0xff]  ;;  %vm1773_vm13 = vcmp.eq.s32.totalorder %v1562_v2, %v5563_v32  ;;  %v8406_v2 = vld [vmem:[#allocation66_spill] sm:$0xff] }
 0x2c7   :  { %v2670_v31 = vmax.f32 %v6712_v53, %v2669_v8  ;;  %v2202_v50 = vadd.f32 %v2201_v63, %v2017_v22  ;;  %v2021_v8 = vsel %vm1765_vm5, %v8394_v9, 0.0  ;;  %v1564_v6 = vadd.s32 624, %v5557_v7 }
 0x2c8   :  { %v2335_v25 = vadd.f32 %v2334_v15, %v2018_v18  ;;  %v2537_v61 = vmax.f32 %v6725_v54, %v2536_v34  ;;  %v2024_v18 = vsel %vm1768_vm6, %v8395_v42, 0.0  ;;  %v6782_v15 = vpop.f32.mrf.mxu2  ;;  %vm1776_vm14 = vcmp.eq.s32.totalorder %v1563_v48, %v5565_v47 }
 0x2c9   :  { %v2671_v30 = vmax.f32 %v6768_v0, %v2670_v31  ;;  %v2203_v22 = vadd.f32 %v2202_v50, %v2019_v46  ;;  %8396 = vst [vmem:[#allocation183_spill] sm:$0xff] %v6782_v15  ;;  %vm1775_vm15 = vcmp.eq.s32.totalorder %v1563_v48, %v5563_v32  ;;  %v8398_v50 = vld [vmem:[#allocation50_spill] sm:$0xff]  ;;  %vm1778_vm1 = vcmp.eq.s32.totalorder %v1564_v6, %v5565_v47  ;;  %v6832_v48 = vld [vmem:[#allocation2] sm:$0x3] }
 0x2ca   :  { %v2336_v63 = vadd.f32 %v2335_v25, %v2020_v26  ;;  %v2538_v31 = vmax.f32 %v6782_v15, %v2537_v61  ;;  %v2026_v11 = vsel %vm1770_vm8, %v8398_v50, 0.0  ;;  %v1565_v25 = vadd.s32 632, %v5557_v7  ;;  %8408 = vst [vmem:[#allocation51_spill] sm:$0xff] %v6832_v48 }
 0x2cb   :  { %v2672_v34 = vrot.slane %v2671_v30, 4  ;;  %v2204_v9 = vadd.f32 %v2203_v22, %v2021_v8  ;;  %v2025_v15 = vsel %vm1769_vm10, %v8399_v58, 0.0  ;;  %v8400_v8 = vld [vmem:[#allocation54_spill] sm:$0xff]  ;;  %vm1777_vm2 = vcmp.eq.s32.totalorder %v1564_v6, %v5563_v32 }
 0x2cc   :  { %v2337_v28 = vadd.f32 %v2336_v63, %v2022_v40  ;;  %v2539_v26 = vrot.slane %v2538_v31, 4  ;;  %v2028_v40 = vsel %vm1772_vm0, %v8400_v8, 0.0  ;;  %vm1780_vm3 = vcmp.eq.s32.totalorder %v1565_v25, %v5565_v47 }
 0x2cd   :  { %v2673_v46 = vmax.f32 %v2671_v30, %v2672_v34  ;;  %v2205_v42 = vadd.f32 %v2204_v9, %v2023_v37  ;;  %v8401_v30 = vld [vmem:[#allocation55_spill] sm:$0xff]  ;;  %vm1779_vm4 = vcmp.eq.s32.totalorder %v1565_v25, %v5563_v32  ;;  %vm2402_vm6 = vcmask 1040384  }
 0x2ce   :  { %v2338_v61 = vadd.f32 %v2337_v28, %v2024_v18  ;;  %v2540_v63 = vmax.f32 %v2538_v31, %v2539_v26  ;;  %v2027_v34 = vsel %vm1771_vm11, %v8401_v30, 0.0  ;;  %v1566_v28 = vadd.s32 640, %v5557_v7  ;;  %v8402_v31 = vld [vmem:[#allocation58_spill] sm:$0xff]  ;;  %v8403_v26 = vld [vmem:[#allocation59_spill] sm:$0xff] }
 0x2cf   :  { %v2674_v22 = vrot.slane %v2673_v46, 2  ;;  %v2206_v50 = vadd.f32 %v2205_v42, %v2025_v15  ;;  %v2030_v17 = vsel %vm1774_vm12, %v8402_v31, 0.0  ;;  %v2029_v42 = vsel %vm1773_vm13, %v8403_v26, 0.0 }
 0x2d0   :  { %v2339_v0 = vadd.f32 %v2338_v61, %v2026_v11  ;;  %v2541_v37 = vrot.slane %v2540_v63, 2  ;;  %v8404_v61 = vld [vmem:[#allocation62_spill] sm:$0xff]  ;;  %vm1782_vm5 = vcmp.eq.s32.totalorder %v1566_v28, %v5565_v47  ;;  %vm1781_vm7 = vcmp.eq.s32.totalorder %v1566_v28, %v5563_v32 }
 0x2d1   :  { %v2675_v27 = vmax.f32 %v2673_v46, %v2674_v22  ;;  %v2207_v9 = vadd.f32 %v2206_v50, %v2027_v34  ;;  %v2032_v46 = vsel %vm1776_vm14, %v8404_v61, 0.0  ;;  %v1567_v22 = vadd.s32 648, %v5557_v7  ;;  %v8405_v50 = vld [vmem:[#allocation63_spill] sm:$0xff] }
 0x2d2   :  { %v2340_v18 = vadd.f32 %v2339_v0, %v2028_v40  ;;  %v2542_v11 = vmax.f32 %v2540_v63, %v2541_v37  ;;  %v2031_v0 = vsel %vm1775_vm15, %v8405_v50, 0.0  ;;  %v2034_v63 = vsel %vm1778_vm1, %v8406_v2, 0.0  ;;  %v8407_v61 = vld [vmem:[#allocation67_spill] sm:$0xff]  ;;  %v8409_v2 = vld [vmem:[#allocation70_spill] sm:$0xff] }
 0x2d3   :  { %v2676_v15 = vrot.slane %v2675_v27, 1  ;;  %v2208_v8 = vadd.f32 %v2207_v9, %v2029_v42  ;;  %v2033_v9 = vsel %vm1777_vm2, %v8407_v61, 0.0  ;;  %vm1784_vm8 = vcmp.eq.s32.totalorder %v1567_v22, %v5565_v47 }
 0x2d4   :  { %v2341_v30 = vadd.f32 %v2340_v18, %v2030_v17  ;;  %v2543_v34 = vrot.slane %v2542_v11, 1  ;;  %v1568_v18 = vadd.s32 656, %v5557_v7  ;;  %vm1783_vm10 = vcmp.eq.s32.totalorder %v1567_v22, %v5563_v32 }
 0x2d5   :  { %v2677_v40 = vmax.f32 %v2675_v27, %v2676_v15  ;;  %v2209_v37 = vadd.f32 %v2208_v8, %v2031_v0  ;;  %v2036_v8 = vsel %vm1780_vm3, %v8409_v2, 0.0  ;;  %v1570_v25 = vadd.s32 672, %v5557_v7 }
 0x2d6   :  { %v2342_v31 = vadd.f32 %v2341_v30, %v2032_v46  ;;  %v2544_v42 = vmax.f32 %v2542_v11, %v2543_v34  ;;  %v8410_v30 = vld [vmem:[#allocation71_spill] sm:$0xff]  ;;  %v1569_v11 = vadd.s32 664, %v5557_v7  ;;  %vm1786_vm0 = vcmp.eq.s32.totalorder %v1568_v18, %v5565_v47 }
 0x2d7   :  { %v2680_v17 = vrot.slane %v2677_v40, 7  ;;  %v2210_v27 = vadd.f32 %v2209_v37, %v2033_v9  ;;  %v2035_v6 = vsel %vm1779_vm4, %v8410_v30, 0.0  ;;  %v8413_v37 = vld [vmem:[#allocation75_spill] sm:$0xff]  ;;  %vm1785_vm11 = vcmp.eq.s32.totalorder %v1568_v18, %v5563_v32 }
 0x2d8   :  { %v2343_v15 = vadd.f32 %v2342_v31, %v2034_v63  ;;  %v8412_v31 = vld [vmem:[#allocation74_spill] sm:$0xff]  ;;  %v2037_v9 = vsel %vm1781_vm7, %v8413_v37, 0.0  ;;  %vm1788_vm12 = vcmp.eq.s32.totalorder %v1569_v11, %v5565_v47  ;;  %vm1787_vm13 = vcmp.eq.s32.totalorder %v1569_v11, %v5563_v32 }
 0x2d9   :  { %v2681_v46 = vsel %vm2402_vm6, %v2544_v42, %v2680_v17  ;;  %v2211_v0 = vadd.f32 %v2210_v27, %v2035_v6  ;;  %v2038_v63 = vsel %vm1782_vm5, %v8412_v31, 0.0  ;;  %vm1790_vm14 = vcmp.eq.s32.totalorder %v1570_v25, %v5565_v47  ;;  %v8418_v31 = vld [vmem:[#allocation86_spill] sm:$0xff] }
 0x2da   :  { %v2344_v40 = vadd.f32 %v2343_v15, %v2036_v8  ;;  %v6846_v34 = vmax.f32 %v6832_v48, %v2681_v46  ;;  %v8414_v15 = vld [vmem:[#allocation78_spill] sm:$0xff]  ;;  %v8415_v8 = vld [vmem:[#allocation79_spill] sm:$0xff]  ;;  %v1571_v46 = vadd.s32 680, %v5557_v7  ;;  %vm1789_vm15 = vcmp.eq.s32.totalorder %v1570_v25, %v5563_v32 }
 0x2db   :  { %v2212_v17 = vadd.f32 %v2211_v0, %v2037_v9  ;;  %v2040_v28 = vsel %vm1784_vm8, %v8414_v15, 0.0  ;;  %v2039_v6 = vsel %vm1783_vm10, %v8415_v8, 0.0  ;;  %v8417_v9 = vld [vmem:[#allocation83_spill] sm:$0xff]  ;;  %v1572_v48 = vadd.s32 688, %v5557_v7 }
 0x2dc   :  { %8411 = vst [vmem:[#allocation59_spill] sm:$0xff] %v6846_v34  ;;  %v2345_v42 = vadd.f32 %v2344_v40, %v2038_v63  ;;  %v8416_v40 = vld [vmem:[#allocation82_spill] sm:$0xff]  ;;  %v2041_v27 = vsel %vm1785_vm11, %v8417_v9, 0.0  ;;  %v2044_v2 = vsel %vm1788_vm12, %v8418_v31, 0.0  ;;  %v8419_v8 = vld [vmem:[#allocation87_spill] sm:$0xff]  ;;  %vm1792_vm1 = vcmp.eq.s32.totalorder %v1571_v46, %v5565_v47 }
 0x2dd   :  { %3735 = vst.msk [vmem:[#allocation2] sm:$0x3] %vm6628_vm9, %v6846_v34  ;;  %v2213_v18 = vadd.f32 %v2212_v17, %v2039_v6  ;;  %v2042_v63 = vsel %vm1786_vm0, %v8416_v40, 0.0  ;;  %v2043_v37 = vsel %vm1787_vm13, %v8419_v8, 0.0  ;;  %vm1791_vm2 = vcmp.eq.s32.totalorder %v1571_v46, %v5563_v32  ;;  %v8421_v40 = vld [vmem:[#allocation91_spill] sm:$0xff] }
 0x2de   :  { %v2346_v0 = vadd.f32 %v2345_v42, %v2040_v28  ;;  %v1573_v11 = vadd.s32 696, %v5557_v7  ;;  %v8420_v28 = vld [vmem:[#allocation90_spill] sm:$0xff]  ;;  %v2045_v25 = vsel %vm1789_vm15, %v8421_v40, 0.0  ;;  %v1574_v9 = vadd.s32 704, %v5557_v7  ;;  %v8423_v31 = vld [vmem:[#allocation95_spill] sm:$0xff] }
 0x2df   :  { %v2214_v22 = vadd.f32 %v2213_v18, %v2041_v27  ;;  %v2046_v6 = vsel %vm1790_vm14, %v8420_v28, 0.0  ;;  %vm1794_vm3 = vcmp.eq.s32.totalorder %v1572_v48, %v5565_v47  ;;  %vm1793_vm4 = vcmp.eq.s32.totalorder %v1572_v48, %v5563_v32  ;;  %v8425_v28 = vld [vmem:[#allocation99_spill] sm:$0xff] }
 0x2e0   :  { %v2347_v15 = vadd.f32 %v2346_v0, %v2042_v63  ;;  %v8422_v0 = vld [vmem:[#allocation94_spill] sm:$0xff]  ;;  %v2047_v46 = vsel %vm1791_vm2, %v8423_v31, 0.0  ;;  %v1575_v8 = vadd.s32 712, %v5557_v7  ;;  %vm1796_vm5 = vcmp.eq.s32.totalorder %v1573_v11, %v5565_v47 }
 0x2e1   :  { %v2215_v17 = vadd.f32 %v2214_v22, %v2043_v37  ;;  %v2048_v63 = vsel %vm1792_vm1, %v8422_v0, 0.0  ;;  %vm1795_vm7 = vcmp.eq.s32.totalorder %v1573_v11, %v5563_v32  ;;  %v2049_v40 = vsel %vm1793_vm4, %v8425_v28, 0.0  ;;  %v8427_v0 = vld [vmem:[#allocation103_spill] sm:$0xff] }
 0x2e2   :  { %v2348_v42 = vadd.f32 %v2347_v15, %v2044_v2  ;;  %v8424_v15 = vld [vmem:[#allocation98_spill] sm:$0xff]  ;;  %vm1798_vm8 = vcmp.eq.s32.totalorder %v1574_v9, %v5565_v47  ;;  %vm1797_vm10 = vcmp.eq.s32.totalorder %v1574_v9, %v5563_v32  ;;  %v1576_v48 = vadd.s32 720, %v5557_v7 }
 0x2e3   :  { %v2216_v27 = vadd.f32 %v2215_v17, %v2045_v25  ;;  %v2050_v22 = vsel %vm1794_vm3, %v8424_v15, 0.0  ;;  %v2051_v31 = vsel %vm1795_vm7, %v8427_v0, 0.0  ;;  %vm1800_vm0 = vcmp.eq.s32.totalorder %v1575_v8, %v5565_v47  ;;  %v8429_v15 = vld [vmem:[#allocation107_spill] sm:$0xff] }
 0x2e4   :  { %v2349_v18 = vadd.f32 %v2348_v42, %v2046_v6  ;;  %v8426_v6 = vld [vmem:[#allocation102_spill] sm:$0xff]  ;;  %vm1799_vm11 = vcmp.eq.s32.totalorder %v1575_v8, %v5563_v32  ;;  %v1577_v11 = vadd.s32 728, %v5557_v7  ;;  %v2053_v9 = vsel %vm1797_vm10, %v8429_v15, 0.0 }
 0x2e5   :  { %v2217_v2 = vadd.f32 %v2216_v27, %v2047_v46  ;;  %v2052_v25 = vsel %vm1796_vm5, %v8426_v6, 0.0  ;;  %v1578_v28 = vadd.s32 736, %v5557_v7  ;;  %vm1802_vm12 = vcmp.eq.s32.totalorder %v1576_v48, %v5565_v47  ;;  %v8431_v6 = vld [vmem:[#allocation111_spill] sm:$0xff] }
 0x2e6   :  { %v2350_v37 = vadd.f32 %v2349_v18, %v2048_v63  ;;  %v8428_v63 = vld [vmem:[#allocation106_spill] sm:$0xff]  ;;  %vm1801_vm13 = vcmp.eq.s32.totalorder %v1576_v48, %v5563_v32  ;;  %v2055_v8 = vsel %vm1799_vm11, %v8431_v6, 0.0  ;;  %v1579_v0 = vadd.s32 744, %v5557_v7 }
 0x2e7   :  { %v2218_v17 = vadd.f32 %v2217_v2, %v2049_v40  ;;  %v2054_v46 = vsel %vm1798_vm8, %v8428_v63, 0.0  ;;  %vm1804_vm14 = vcmp.eq.s32.totalorder %v1577_v11, %v5565_v47  ;;  %vm1803_vm15 = vcmp.eq.s32.totalorder %v1577_v11, %v5563_v32  ;;  %v8433_v63 = vld [vmem:[#allocation115_spill] sm:$0xff] }
 0x2e8   :  { %v2351_v42 = vadd.f32 %v2350_v37, %v2050_v22  ;;  %v8430_v37 = vld [vmem:[#allocation110_spill] sm:$0xff]  ;;  %v2057_v15 = vsel %vm1801_vm13, %v8433_v63, 0.0  ;;  %vm1806_vm1 = vcmp.eq.s32.totalorder %v1578_v28, %v5565_v47  ;;  %vm1805_vm2 = vcmp.eq.s32.totalorder %v1578_v28, %v5563_v32 }
 0x2e9   :  { %v2219_v27 = vadd.f32 %v2218_v17, %v2051_v31  ;;  %v2056_v22 = vsel %vm1800_vm0, %v8430_v37, 0.0  ;;  %v1580_v48 = vadd.s32 752, %v5557_v7  ;;  %v8435_v37 = vld [vmem:[#allocation119_spill] sm:$0xff]  ;;  %vm1808_vm3 = vcmp.eq.s32.totalorder %v1579_v0, %v5565_v47 }
 0x2ea   :  { %v2352_v18 = vadd.f32 %v2351_v42, %v2052_v25  ;;  %v8432_v42 = vld [vmem:[#allocation114_spill] sm:$0xff]  ;;  %v2059_v6 = vsel %vm1803_vm15, %v8435_v37, 0.0  ;;  %vm1807_vm4 = vcmp.eq.s32.totalorder %v1579_v0, %v5563_v32  ;;  %v1581_v11 = vadd.s32 760, %v5557_v7 }
 0x2eb   :  { %v2220_v40 = vadd.f32 %v2219_v27, %v2053_v9  ;;  %v2058_v25 = vsel %vm1802_vm12, %v8432_v42, 0.0  ;;  %v8437_v42 = vld [vmem:[#allocation123_spill] sm:$0xff]  ;;  %v1582_v63 = vadd.s32 768, %v5557_v7  ;;  %vm1810_vm5 = vcmp.eq.s32.totalorder %v1580_v48, %v5565_v47 }
 0x2ec   :  { %v2353_v2 = vadd.f32 %v2352_v18, %v2054_v46  ;;  %v8434_v46 = vld [vmem:[#allocation118_spill] sm:$0xff]  ;;  %v2061_v28 = vsel %vm1805_vm2, %v8437_v42, 0.0  ;;  %vm1809_vm7 = vcmp.eq.s32.totalorder %v1580_v48, %v5563_v32  ;;  %v1583_v37 = vadd.s32 776, %v5557_v7 }
 0x2ed   :  { %v2221_v31 = vadd.f32 %v2220_v40, %v2055_v8  ;;  %v2060_v9 = vsel %vm1804_vm14, %v8434_v46, 0.0  ;;  %v8439_v46 = vld [vmem:[#allocation127_spill] sm:$0xff]  ;;  %vm1812_vm8 = vcmp.eq.s32.totalorder %v1581_v11, %v5565_v47  ;;  %vm1811_vm10 = vcmp.eq.s32.totalorder %v1581_v11, %v5563_v32 }
 0x2ee   :  { %v2354_v17 = vadd.f32 %v2353_v2, %v2056_v22  ;;  %v8436_v22 = vld [vmem:[#allocation122_spill] sm:$0xff]  ;;  %v2063_v0 = vsel %vm1807_vm4, %v8439_v46, 0.0  ;;  %vm1814_vm0 = vcmp.eq.s32.totalorder %v1582_v63, %v5565_v47  ;;  %vm1813_vm11 = vcmp.eq.s32.totalorder %v1582_v63, %v5563_v32 }
 0x2ef   :  { %v2222_v27 = vadd.f32 %v2221_v31, %v2057_v15  ;;  %v2062_v8 = vsel %vm1806_vm1, %v8436_v22, 0.0  ;;  %v8441_v22 = vld [vmem:[#allocation131_spill] sm:$0xff]  ;;  %v1584_v48 = vadd.s32 784, %v5557_v7  ;;  %vm1816_vm12 = vcmp.eq.s32.totalorder %v1583_v37, %v5565_v47 }
 0x2f0   :  { %v2355_v18 = vadd.f32 %v2354_v17, %v2058_v25  ;;  %v8438_v17 = vld [vmem:[#allocation126_spill] sm:$0xff]  ;;  %v2065_v42 = vsel %vm1809_vm7, %v8441_v22, 0.0  ;;  %vm1815_vm13 = vcmp.eq.s32.totalorder %v1583_v37, %v5563_v32  ;;  %v1585_v11 = vadd.s32 792, %v5557_v7 }
 0x2f1   :  { %v2223_v40 = vadd.f32 %v2222_v27, %v2059_v6  ;;  %v2064_v25 = vsel %vm1808_vm3, %v8438_v17, 0.0  ;;  %v8443_v17 = vld [vmem:[#allocation135_spill] sm:$0xff]  ;;  %v1586_v22 = vadd.s32 800, %v5557_v7  ;;  %vm1818_vm14 = vcmp.eq.s32.totalorder %v1584_v48, %v5565_v47 }
 0x2f2   :  { %v2356_v2 = vadd.f32 %v2355_v18, %v2060_v9  ;;  %v8440_v18 = vld [vmem:[#allocation130_spill] sm:$0xff]  ;;  %v2067_v46 = vsel %vm1811_vm10, %v8443_v17, 0.0  ;;  %vm1817_vm15 = vcmp.eq.s32.totalorder %v1584_v48, %v5563_v32  ;;  %v1587_v17 = vadd.s32 808, %v5557_v7 }
 0x2f3   :  { %v2224_v31 = vadd.f32 %v2223_v40, %v2061_v28  ;;  %v2066_v9 = vsel %vm1810_vm5, %v8440_v18, 0.0  ;;  %v8445_v18 = vld [vmem:[#allocation139_spill] sm:$0xff]  ;;  %vm1820_vm1 = vcmp.eq.s32.totalorder %v1585_v11, %v5565_v47  ;;  %vm1819_vm2 = vcmp.eq.s32.totalorder %v1585_v11, %v5563_v32 }
 0x2f4   :  { %v2357_v15 = vadd.f32 %v2356_v2, %v2062_v8  ;;  %v8442_v8 = vld [vmem:[#allocation134_spill] sm:$0xff]  ;;  %v2069_v63 = vsel %vm1813_vm11, %v8445_v18, 0.0  ;;  %vm1822_vm3 = vcmp.eq.s32.totalorder %v1586_v22, %v5565_v47  ;;  %vm1821_vm4 = vcmp.eq.s32.totalorder %v1586_v22, %v5563_v32 }
 0x2f5   :  { %v2225_v27 = vadd.f32 %v2224_v31, %v2063_v0  ;;  %v2068_v28 = vsel %vm1812_vm8, %v8442_v8, 0.0  ;;  %v8447_v8 = vld [vmem:[#allocation143_spill] sm:$0xff]  ;;  %v1588_v48 = vadd.s32 816, %v5557_v7  ;;  %vm1824_vm5 = vcmp.eq.s32.totalorder %v1587_v17, %v5565_v47 }
 0x2f6   :  { %v2358_v6 = vadd.f32 %v2357_v15, %v2064_v25  ;;  %v8444_v25 = vld [vmem:[#allocation138_spill] sm:$0xff]  ;;  %v2071_v37 = vsel %vm1815_vm13, %v8447_v8, 0.0  ;;  %vm1823_vm7 = vcmp.eq.s32.totalorder %v1587_v17, %v5563_v32  ;;  %v1589_v11 = vadd.s32 824, %v5557_v7 }
 0x2f7   :  { %v2226_v2 = vadd.f32 %v2225_v27, %v2065_v42  ;;  %v2070_v0 = vsel %vm1814_vm0, %v8444_v25, 0.0  ;;  %v8446_v27 = vld [vmem:[#allocation142_spill] sm:$0xff]  ;;  %v8449_v25 = vld [vmem:[#allocation147_spill] sm:$0xff]  ;;  %vm1826_vm8 = vcmp.eq.s32.totalorder %v1588_v48, %v5565_v47  ;;  %vm1825_vm10 = vcmp.eq.s32.totalorder %v1588_v48, %v5563_v32 }
 0x2f8   :  { %v2359_v40 = vadd.f32 %v2358_v6, %v2066_v9  ;;  %v2072_v9 = vsel %vm1816_vm12, %v8446_v27, 0.0  ;;  %v2073_v18 = vsel %vm1817_vm15, %v8449_v25, 0.0  ;;  %v8451_v27 = vld [vmem:[#allocation151_spill] sm:$0xff]  ;;  %v1590_v25 = vadd.s32 832, %v5557_v7 }
 0x2f9   :  { %v2227_v31 = vadd.f32 %v2226_v2, %v2067_v46  ;;  %v8448_v2 = vld [vmem:[#allocation146_spill] sm:$0xff]  ;;  %v2075_v8 = vsel %vm1819_vm2, %v8451_v27, 0.0  ;;  %v1591_v27 = vadd.s32 840, %v5557_v7  ;;  %vm1828_vm0 = vcmp.eq.s32.totalorder %v1589_v11, %v5565_v47 }
 0x2fa   :  { %v2360_v15 = vadd.f32 %v2359_v40, %v2068_v28  ;;  %v2074_v28 = vsel %vm1818_vm14, %v8448_v2, 0.0  ;;  %v8453_v2 = vld [vmem:[#allocation155_spill] sm:$0xff]  ;;  %vm1827_vm11 = vcmp.eq.s32.totalorder %v1589_v11, %v5563_v32  ;;  %vm1830_vm12 = vcmp.eq.s32.totalorder %v1590_v25, %v5565_v47 }
 0x2fb   :  { %v2228_v6 = vadd.f32 %v2227_v31, %v2069_v63  ;;  %v2077_v22 = vsel %vm1821_vm4, %v8453_v2, 0.0  ;;  %vm1829_vm13 = vcmp.eq.s32.totalorder %v1590_v25, %v5563_v32  ;;  %v1592_v48 = vadd.s32 848, %v5557_v7 }
 0x2fc   :  { %v2361_v42 = vadd.f32 %v2360_v15, %v2070_v0  ;;  %v8450_v0 = vld [vmem:[#allocation150_spill] sm:$0xff]  ;;  %vm1832_vm14 = vcmp.eq.s32.totalorder %v1591_v27, %v5565_v47  ;;  %vm1831_vm15 = vcmp.eq.s32.totalorder %v1591_v27, %v5563_v32  ;;  %v1593_v11 = vadd.s32 856, %v5557_v7 }
 0x2fd   :  { %v2229_v40 = vadd.f32 %v2228_v6, %v2071_v37  ;;  %v2076_v63 = vsel %vm1820_vm1, %v8450_v0, 0.0  ;;  %v8455_v0 = vld [vmem:[#allocation159_spill] sm:$0xff]  ;;  %vm1834_vm1 = vcmp.eq.s32.totalorder %v1592_v48, %v5565_v47  ;;  %vm1833_vm2 = vcmp.eq.s32.totalorder %v1592_v48, %v5563_v32 }
 0x2fe   :  { %v2362_v46 = vadd.f32 %v2361_v42, %v2072_v9  ;;  %v8452_v9 = vld [vmem:[#allocation154_spill] sm:$0xff]  ;;  %v2079_v17 = vsel %vm1823_vm7, %v8455_v0, 0.0  ;;  %v2087_v27 = vsel %vm1831_vm15, %v8323_v62, 0.0  ;;  %vm1835_vm4 = vcmp.eq.s32.totalorder %v1593_v11, %v5563_v32 }
 0x2ff   :  { %v2230_v31 = vadd.f32 %v2229_v40, %v2073_v18  ;;  %v2078_v37 = vsel %vm1822_vm3, %v8452_v9, 0.0  ;;  %v8454_v40 = vld [vmem:[#allocation158_spill] sm:$0xff]  ;;  %v8457_v9 = vld [vmem:[#allocation163_spill] sm:$0xff]  ;;  %vm1836_vm3 = vcmp.eq.s32.totalorder %v1593_v11, %v5565_v47  ;;  %v1596_v48 = vadd.s32 880, %v5557_v7 }
 0x300   :  { %v2363_v15 = vadd.f32 %v2362_v46, %v2074_v28  ;;  %v2080_v28 = vsel %vm1824_vm5, %v8454_v40, 0.0  ;;  %v2081_v2 = vsel %vm1825_vm10, %v8457_v9, 0.0  ;;  %v8459_v40 = vld [vmem:[#allocation167_spill] sm:$0xff]  ;;  %v1594_v9 = vadd.s32 864, %v5557_v7 }
 0x301   :  { %v2231_v6 = vadd.f32 %v2230_v31, %v2075_v8  ;;  %v8456_v31 = vld [vmem:[#allocation162_spill] sm:$0xff]  ;;  %v2083_v0 = vsel %vm1827_vm11, %v8459_v40, 0.0  ;;  %v1597_v11 = vadd.s32 888, %v5557_v7  ;;  %vm1841_vm11 = vcmp.eq.s32.totalorder %v1596_v48, %v5563_v32 }
 0x302   :  { %v2364_v42 = vadd.f32 %v2363_v15, %v2076_v63  ;;  %v2082_v63 = vsel %vm1826_vm8, %v8456_v31, 0.0  ;;  %v8461_v31 = vld [vmem:[#allocation171_spill] sm:$0xff]  ;;  %vm1838_vm5 = vcmp.eq.s32.totalorder %v1594_v9, %v5565_v47  ;;  %vm1837_vm7 = vcmp.eq.s32.totalorder %v1594_v9, %v5563_v32 }
 0x303   :  { %v2232_v46 = vadd.f32 %v2231_v6, %v2077_v22  ;;  %v2085_v25 = vsel %vm1829_vm13, %v8461_v31, 0.0  ;;  %v2093_v9 = vsel %vm1837_vm7, %v5802_v14, 0.0  ;;  %vm1843_vm13 = vcmp.eq.s32.totalorder %v1597_v11, %v5563_v32 }
 0x304   :  { %v2365_v18 = vadd.f32 %v2364_v42, %v2078_v37  ;;  %v8458_v37 = vld [vmem:[#allocation166_spill] sm:$0xff] }
 0x305   :  { %v2233_v15 = vadd.f32 %v2232_v46, %v2079_v17  ;;  %v2084_v22 = vsel %vm1828_vm0, %v8458_v37, 0.0  ;;  %vm1842_vm0 = vcmp.eq.s32.totalorder %v1596_v48, %v5565_v47  ;;  %v1600_v48 = vadd.s32 912, %v5557_v7 }
 0x306   :  { %v2366_v8 = vadd.f32 %v2365_v18, %v2080_v28  ;;  %v8460_v28 = vld [vmem:[#allocation170_spill] sm:$0xff] }
 0x307   :  { %v2234_v6 = vadd.f32 %v2233_v15, %v2081_v2  ;;  %v2086_v17 = vsel %vm1830_vm12, %v8460_v28, 0.0  ;;  %v2088_v15 = vsel %vm1832_vm14, %v8322_v13, 0.0  ;;  %vm1844_vm12 = vcmp.eq.s32.totalorder %v1597_v11, %v5565_v47 }
 0x308   :  { %v2367_v42 = vadd.f32 %v2366_v8, %v2082_v63  ;;  %v1595_v63 = vadd.s32 872, %v5557_v7  ;;  %v1601_v11 = vadd.s32 920, %v5557_v7 }
 0x309   :  { %v2235_v46 = vadd.f32 %v2234_v6, %v2083_v0  ;;  %v2090_v6 = vsel %vm1834_vm1, %v5688_v59, 0.0 }
 0x30a   :  { %v2368_v18 = vadd.f32 %v2367_v42, %v2084_v22  ;;  %v2089_v22 = vsel %vm1833_vm2, %v5690_v49, 0.0  ;;  %vm1840_vm8 = vcmp.eq.s32.totalorder %v1595_v63, %v5565_v47  ;;  %vm1839_vm10 = vcmp.eq.s32.totalorder %v1595_v63, %v5563_v32 }
 0x30b   :  { %v2236_v8 = vadd.f32 %v2235_v46, %v2085_v25  ;;  %v2091_v25 = vsel %vm1835_vm4, %v5746_v51, 0.0  ;;  %v2095_v63 = vsel %vm1839_vm10, %v5855_v5, 0.0  ;;  %vm1849_vm4 = vcmp.eq.s32.totalorder %v1600_v48, %v5563_v32 }
 0x30c   :  { %v2369_v2 = vadd.f32 %v2368_v18, %v2086_v17  ;;  %v2092_v17 = vsel %vm1836_vm3, %v5744_v55, 0.0  ;;  %vm1850_vm3 = vcmp.eq.s32.totalorder %v1600_v48, %v5565_v47  ;;  %vm1851_vm7 = vcmp.eq.s32.totalorder %v1601_v11, %v5563_v32 }
 0x30d   :  { %v2237_v42 = vadd.f32 %v2236_v8, %v2087_v27  ;;  %v1598_v27 = vadd.s32 896, %v5557_v7  ;;  %v1604_v48 = vadd.s32 944, %v5557_v7 }
 0x30e   :  { %v2370_v0 = vadd.f32 %v2369_v2, %v2088_v15  ;;  %v2094_v15 = vsel %vm1838_vm5, %v5800_v45, 0.0  ;;  %v1603_v45 = vadd.s32 936, %v5557_v7  ;;  %vm1852_vm5 = vcmp.eq.s32.totalorder %v1601_v11, %v5565_v47 }
 0x30f   :  { %v2238_v46 = vadd.f32 %v2237_v42, %v2089_v22  ;;  %v1599_v22 = vadd.s32 904, %v5557_v7  ;;  %vm1846_vm14 = vcmp.eq.s32.totalorder %v1598_v27, %v5565_v47  ;;  %vm1845_vm15 = vcmp.eq.s32.totalorder %v1598_v27, %v5563_v32 }
 0x310   :  { %v2371_v18 = vadd.f32 %v2370_v0, %v2090_v6  ;;  %v2096_v6 = vsel %vm1840_vm8, %v5853_v1, 0.0  ;;  %v1602_v1 = vadd.s32 928, %v5557_v7  ;;  %v1605_v11 = vadd.s32 952, %v5557_v7 }
 0x311   :  { %v2239_v8 = vadd.f32 %v2238_v46, %v2091_v25  ;;  %v2097_v25 = vsel %vm1841_vm11, %v5913_v43, 0.0  ;;  %vm1848_vm1 = vcmp.eq.s32.totalorder %v1599_v22, %v5565_v47  ;;  %vm1847_vm2 = vcmp.eq.s32.totalorder %v1599_v22, %v5563_v32 }
 0x312   :  { %v2372_v2 = vadd.f32 %v2371_v18, %v2092_v17  ;;  %v2098_v17 = vsel %vm1842_vm0, %v5911_v29, 0.0  ;;  %v8463_v29 = vld [vmem:[#allocation203_spill] sm:$0xff]  ;;  %vm1854_vm8 = vcmp.eq.s32.totalorder %v1602_v1, %v5565_v47  ;;  %vm1853_vm10 = vcmp.eq.s32.totalorder %v1602_v1, %v5563_v32 }
 0x313   :  { %v2240_v42 = vadd.f32 %v2239_v8, %v2093_v9  ;;  %v2099_v9 = vsel %vm1843_vm13, %v5960_v16, 0.0  ;;  %v2101_v27 = vsel %vm1845_vm15, %v8463_v29, 0.0  ;;  %vm1856_vm0 = vcmp.eq.s32.totalorder %v1603_v45, %v5565_v47 }
 0x314   :  { %v2373_v0 = vadd.f32 %v2372_v2, %v2094_v15  ;;  %v2100_v15 = vsel %vm1844_vm12, %v5958_v57, 0.0  ;;  %v8465_v57 = vld [vmem:[#allocation207_spill] sm:$0xff]  ;;  %vm1855_vm11 = vcmp.eq.s32.totalorder %v1603_v45, %v5563_v32  ;;  %vm1858_vm12 = vcmp.eq.s32.totalorder %v1604_v48, %v5565_v47 }
 0x315   :  { %v2241_v46 = vadd.f32 %v2240_v42, %v2095_v63  ;;  %v2103_v22 = vsel %vm1847_vm2, %v8465_v57, 0.0  ;;  %vm1857_vm13 = vcmp.eq.s32.totalorder %v1604_v48, %v5563_v32  ;;  %v2111_v45 = vsel %vm1855_vm11, %v8351_v33, 0.0 }
 0x316   :  { %v2374_v18 = vadd.f32 %v2373_v0, %v2096_v6  ;;  %v8462_v6 = vld [vmem:[#allocation202_spill] sm:$0xff]  ;;  %vm1859_vm15 = vcmp.eq.s32.totalorder %v1605_v11, %v5563_v32 }
 0x317   :  { %v2242_v8 = vadd.f32 %v2241_v46, %v2097_v25  ;;  %v2102_v63 = vsel %vm1846_vm14, %v8462_v6, 0.0  ;;  %v8467_v6 = vld [vmem:[#allocation211_spill] sm:$0xff]  ;;  %vm1860_vm14 = vcmp.eq.s32.totalorder %v1605_v11, %v5565_v47 }
 0x318   :  { %v2375_v2 = vadd.f32 %v2374_v18, %v2098_v17  ;;  %v8464_v17 = vld [vmem:[#allocation206_spill] sm:$0xff]  ;;  %v2105_v29 = vsel %vm1849_vm4, %v8467_v6, 0.0  ;;  %v1606_v6 = vadd.s32 960, %v5557_v7 }
 0x319   :  { %v2243_v42 = vadd.f32 %v2242_v8, %v2099_v9  ;;  %v2104_v25 = vsel %vm1848_vm1, %v8464_v17, 0.0  ;;  %v8469_v17 = vld [vmem:[#allocation215_spill] sm:$0xff] }
 0x31a   :  { %v2376_v0 = vadd.f32 %v2375_v2, %v2100_v15  ;;  %v8466_v15 = vld [vmem:[#allocation210_spill] sm:$0xff]  ;;  %v2107_v57 = vsel %vm1851_vm7, %v8469_v17, 0.0  ;;  %vm1862_vm1 = vcmp.eq.s32.totalorder %v1606_v6, %v5565_v47  ;;  %vm1861_vm2 = vcmp.eq.s32.totalorder %v1606_v6, %v5563_v32 }
 0x31b   :  { %v2244_v46 = vadd.f32 %v2243_v42, %v2101_v27  ;;  %v2106_v9 = vsel %vm1850_vm3, %v8466_v15, 0.0  ;;  %v8471_v15 = vld [vmem:[#allocation219_spill] sm:$0xff]  ;;  %v1610_v6 = vadd.s32 992, %v5557_v7 }
 0x31c   :  { %v2377_v18 = vadd.f32 %v2376_v0, %v2102_v63  ;;  %v8468_v63 = vld [vmem:[#allocation214_spill] sm:$0xff]  ;;  %v2109_v1 = vsel %vm1853_vm10, %v8471_v15, 0.0 }
 0x31d   :  { %v2245_v8 = vadd.f32 %v2244_v46, %v2103_v22  ;;  %v2108_v27 = vsel %vm1852_vm5, %v8468_v63, 0.0  ;;  %vm1869_vm11 = vcmp.eq.s32.totalorder %v1610_v6, %v5563_v32 }
 0x31e   :  { %v2378_v2 = vadd.f32 %v2377_v18, %v2104_v25  ;;  %v8470_v25 = vld [vmem:[#allocation218_spill] sm:$0xff] }
 0x31f   :  { %v2246_v42 = vadd.f32 %v2245_v8, %v2105_v29  ;;  %v2110_v22 = vsel %vm1854_vm8, %v8470_v25, 0.0  ;;  %v2112_v8 = vsel %vm1856_vm0, %v8350_v44, 0.0  ;;  %vm1870_vm0 = vcmp.eq.s32.totalorder %v1610_v6, %v5565_v47 }
 0x320   :  { %v2379_v0 = vadd.f32 %v2378_v2, %v2106_v9  ;;  %v1607_v9 = vadd.s32 968, %v5557_v7 }
 0x321   :  { %v2247_v46 = vadd.f32 %v2246_v42, %v2107_v57  ;;  %v2114_v42 = vsel %vm1858_vm12, %v8361_v20, 0.0 }
 0x322   :  { %v2380_v18 = vadd.f32 %v2379_v0, %v2108_v27  ;;  %v2113_v27 = vsel %vm1857_vm13, %v8353_v10, 0.0  ;;  %vm1864_vm3 = vcmp.eq.s32.totalorder %v1607_v9, %v5565_v47  ;;  %vm1863_vm4 = vcmp.eq.s32.totalorder %v1607_v9, %v5563_v32 }
 0x323   :  { %v2248_v2 = vadd.f32 %v2247_v46, %v2109_v1  ;;  %v1608_v46 = vadd.s32 976, %v5557_v7  ;;  %v2115_v1 = vsel %vm1859_vm15, %v8371_v23, 0.0  ;;  %v1611_v9 = vadd.s32 1000, %v5557_v7 }
 0x324   :  { %v2381_v29 = vadd.f32 %v2380_v18, %v2110_v22  ;;  %v2116_v22 = vsel %vm1860_vm14, %v8370_v60, 0.0 }
 0x325   :  { %v2249_v0 = vadd.f32 %v2248_v2, %v2111_v45  ;;  %v1609_v2 = vadd.s32 984, %v5557_v7  ;;  %v2117_v45 = vsel %vm1861_vm2, %v6371_v12, 0.0  ;;  %vm1866_vm5 = vcmp.eq.s32.totalorder %v1608_v46, %v5565_v47 }
 0x326   :  { %v2382_v57 = vadd.f32 %v2381_v29, %v2112_v8  ;;  %v2118_v8 = vsel %vm1862_vm1, %v6369_v19, 0.0  ;;  %vm1865_vm7 = vcmp.eq.s32.totalorder %v1608_v46, %v5563_v32  ;;  %vm1872_vm12 = vcmp.eq.s32.totalorder %v1611_v9, %v5565_v47 }
 0x327   :  { %v2250_v18 = vadd.f32 %v2249_v0, %v2113_v27  ;;  %v2119_v27 = vsel %vm1863_vm4, %v6417_v36, 0.0  ;;  %vm1868_vm8 = vcmp.eq.s32.totalorder %v1609_v2, %v5565_v47  ;;  %vm1867_vm10 = vcmp.eq.s32.totalorder %v1609_v2, %v5563_v32 }
 0x328   :  { %v2383_v48 = vadd.f32 %v2382_v57, %v2114_v42  ;;  %v2120_v42 = vsel %vm1864_vm3, %v6415_v52, 0.0  ;;  %vm1871_vm13 = vcmp.eq.s32.totalorder %v1611_v9, %v5563_v32 }
 0x329   :  { %v2251_v29 = vadd.f32 %v2250_v18, %v2115_v1  ;;  %v2121_v1 = vsel %vm1865_vm7, %v6464_v4, 0.0 }
 0x32a   :  { %v2384_v11 = vadd.f32 %v2383_v48, %v2116_v22  ;;  %v2122_v22 = vsel %vm1866_vm5, %v6462_v41, 0.0 }
 0x32b   :  { %v2252_v0 = vadd.f32 %v2251_v29, %v2117_v45  ;;  %v1612_v29 = vadd.s32 1008, %v5557_v7  ;;  %v2123_v45 = vsel %vm1867_vm10, %v6525_v35, 0.0 }
 0x32c   :  { %v2385_v57 = vadd.f32 %v2384_v11, %v2118_v8  ;;  %v2124_v8 = vsel %vm1868_vm8, %v6509_v21, 0.0 }
 0x32d   :  { %v2253_v18 = vadd.f32 %v2252_v0, %v2119_v27  ;;  %v1613_v0 = vadd.s32 1016, %v5557_v7  ;;  %v2125_v27 = vsel %vm1869_vm11, %v6588_v3, 0.0  ;;  %vm1874_vm14 = vcmp.eq.s32.totalorder %v1612_v29, %v5565_v47 }
 0x32e   :  { %v2386_v48 = vadd.f32 %v2385_v57, %v2120_v42  ;;  %v2126_v42 = vsel %vm1870_vm0, %v6576_v56, 0.0  ;;  %vm1873_vm15 = vcmp.eq.s32.totalorder %v1612_v29, %v5563_v32  ;;  %v2130_v7 = vsel %vm1874_vm14, %v6712_v53, 0.0 }
 0x32f   :  { %v2254_v46 = vadd.f32 %v2253_v18, %v2121_v1  ;;  %v2128_v18 = vsel %vm1872_vm12, %v6644_v24, 0.0  ;;  %vm1876_vm1 = vcmp.eq.s32.totalorder %v1613_v0, %v5565_v47  ;;  %vm1875_vm2 = vcmp.eq.s32.totalorder %v1613_v0, %v5563_v32 }
 0x330   :  { %v2387_v11 = vadd.f32 %v2386_v48, %v2122_v22  ;;  %v2127_v22 = vsel %vm1871_vm13, %v6659_v38, 0.0  ;;  %v2129_v9 = vsel %vm1873_vm15, %v6725_v54, 0.0  ;;  %v8493_v38 = vld [vmem:[#allocation52_spill] sm:$0xff] }
 0x331   :  { %v2255_v2 = vadd.f32 %v2254_v46, %v2123_v45  ;;  %v8472_v45 = vld [vmem:[#allocation195_spill] sm:$0xff] }
 0x332   :  { %v2388_v57 = vadd.f32 %v2387_v11, %v2124_v8 }
 0x333   :  { %v2256_v6 = vadd.f32 %v2255_v2, %v2125_v27  ;;  %v8473_v2 = vld [vmem:[#allocation183_spill] sm:$0xff] }
 0x334   :  { %v2389_v48 = vadd.f32 %v2388_v57, %v2126_v42  ;;  %v2132_v57 = vsel %vm1876_vm1, %v8472_v45, 0.0  ;;  %v2131_v29 = vsel %vm1875_vm2, %v8473_v2, 0.0 }
 0x335   :  { %v2257_v11 = vadd.f32 %v2256_v6, %v2127_v22 }
 0x336   :  { %v2390_v1 = vadd.f32 %v2389_v48, %v2128_v18 }
 0x337   :  { %v2258_v8 = vadd.f32 %v2257_v11, %v2129_v9 }
 0x338   :  { %v2391_v46 = vadd.f32 %v2390_v1, %v2130_v7  ;;  %v1618_v1 = vld [vmem:[#allocation4] sm:$0x3] }
 0x339   :  { %v2259_v27 = vadd.f32 %v2258_v8, %v2131_v29  ;;  %v8475_v8 = vld [vmem:[#allocation12_spill] sm:$0xff]  ;;  %v7102_v29 = vperm.slane %v6846_v34, 1 }
 0x33a   :  { %v2392_v42 = vadd.f32 %v2391_v46, %v2132_v57  ;;  %v7095_v46 = vperm.slane %v6846_v34, 0 }
 0x33b   :  { %v2260_v56 = vrot.slane %v2259_v27, 4 }
 0x33c   :  { %v2393_v24 = vrot.slane %v2392_v42, 4  ;;  %v2696_v57 = vsub.f32 %v8475_v8, %v7095_v46 }
 0x33d   :  { %v2261_v6 = vadd.f32 %v2260_v56, %v2259_v27  ;;  %v8474_v56 = vld [vmem:[#allocation8_spill] sm:$0xff]  ;;  %v8477_v27 = vld [vmem:[#allocation9_spill] sm:$0xff] }
 0x33e   :  { %v2394_v48 = vadd.f32 %v2393_v24, %v2392_v42  ;;  %v2694_v24 = vsub.f32 %v8474_v56, %v7095_v46  ;;  %v2954_v42 = vmul.f32 1.442695, %v2696_v57 }
 0x33f   :  { %v2262_v47 = vrot.slane %v2261_v6, 2 }
 0x340   :  { %v2395_v18 = vrot.slane %v2394_v48, 2 }
 0x341   :  { %v2263_v32 = vadd.f32 %v2262_v47, %v2261_v6  ;;  %v8478_v6 = vld [vmem:[#allocation20_spill] sm:$0xff]  ;;  %v8479_v47 = vld [vmem:[#allocation13_spill] sm:$0xff] }
 0x342   :  { %v2396_v22 = vadd.f32 %v2395_v18, %v2394_v48  ;;  %v2695_v48 = vsub.f32 %v8477_v27, %v7102_v29  ;;  %v2700_v18 = vsub.f32 %v8478_v6, %v7095_v46 }
 0x343   :  { %v2264_v53 = vrot.slane %v2263_v32, 1 }
 0x344   :  { %v2397_v0 = vrot.slane %v2396_v22, 1  ;;  %v2962_v56 = vmul.f32 1.442695, %v2700_v18 }
 0x345   :  { %v2265_v11 = vadd.f32 %v2264_v53, %v2263_v32  ;;  %v8476_v53 = vld [vmem:[#allocation16_spill] sm:$0xff] }
 0x346   :  { %v2398_v21 = vadd.f32 %v2397_v0, %v2396_v22  ;;  %v2697_v22 = vsub.f32 %v8479_v47, %v7102_v29  ;;  %v8480_v32 = vld [vmem:[#allocation24_spill] sm:$0xff]  ;;  %v8484_v47 = vld [vmem:[#allocation21_spill] sm:$0xff] }
 0x347   :  { %v2702_v0 = vsub.f32 %v8480_v32, %v7095_v46  ;;  %v2701_v32 = vsub.f32 %v8484_v47, %v7102_v29  ;;  %v2705_v47 = vsub.f32 %v8488_v39, %v7102_v29 }
 0x348   :  { %v2401_v54 = vrot.slane %v2398_v21, 7  ;;  %v2950_v21 = vmul.f32 1.442695, %v2694_v24  ;;  %v8482_v24 = vld [vmem:[#allocation17_spill] sm:$0xff]  ;;  %v2956_v57 = vmul.f32 1.442695, %v2697_v22 }
 0x349   :  { %v2699_v8 = vsub.f32 %v8482_v24, %v7102_v29  ;;  %v2966_v6 = vmul.f32 1.442695, %v2702_v0 }
 0x34a   :  { %v2403_v7 = vsel %vm2402_vm6, %v2265_v11, %v2401_v54  ;;  %v2698_v54 = vsub.f32 %v8476_v53, %v7095_v46  ;;  %4310 = vpow2.f32 %v2950_v21  ;;  %v2952_v11 = vmul.f32 1.442695, %v2695_v48  ;;  %v8483_v53 = vld [vmem:[#allocation32_spill] sm:$0xff] }
 0x34b   :  { %v2405_v9 = vadd.f32 %v2403_v7, %v1618_v1  ;;  %4312 = vpow2.f32 %v2954_v42  ;;  %v8481_v7 = vld [vmem:[#allocation28_spill] sm:$0xff]  ;;  %v2706_v27 = vsub.f32 %v8483_v53, %v7095_v46  ;;  %v2960_v22 = vmul.f32 1.442695, %v2699_v8 }
 0x34c   :  { %v2958_v1 = vmul.f32 1.442695, %v2698_v54  ;;  %v8485_v42 = vld [vmem:[#allocation36_spill] sm:$0xff] }
 0x34d   :  { %2410 = vst.msk [vmem:[#allocation4] sm:$0x3] %vm6628_vm9, %v2405_v9  ;;  %v2704_v9 = vsub.f32 %v8481_v7, %v7095_v46  ;;  %v2708_v48 = vsub.f32 %v8485_v42, %v7095_v46  ;;  %v8486_v7 = vld [vmem:[#allocation25_spill] sm:$0xff]  ;;  %v8487_v53 = vld [vmem:[#allocation40_spill] sm:$0xff]  ;;  %v2974_v0 = vmul.f32 1.442695, %v2706_v27 }
 0x34e   :  { %4314 = vpow2.f32 %v2958_v1  ;;  %v2703_v24 = vsub.f32 %v8486_v7, %v7102_v29  ;;  %v2710_v1 = vsub.f32 %v8487_v53, %v7095_v46  ;;  %v8489_v42 = vld [vmem:[#allocation44_spill] sm:$0xff] }
 0x34f   :  { %4316 = vpow2.f32 %v2952_v11  ;;  %v2970_v18 = vmul.f32 1.442695, %v2704_v9  ;;  %v2964_v11 = vmul.f32 1.442695, %v2701_v32  ;;  %v2978_v9 = vmul.f32 1.442695, %v2708_v48 }
 0x350   :  { %v4311_v21 = vpop.eup %4310  ;;  %4318 = vpow2.f32 %v2962_v56  ;;  %v2712_v56 = vsub.f32 %v8489_v42, %v7095_v46  ;;  %v2968_v7 = vmul.f32 1.442695, %v2703_v24  ;;  %v8491_v27 = vld [vmem:[#allocation48_spill] sm:$0xff]  ;;  %v2982_v39 = vmul.f32 1.442695, %v2710_v1  ;;  %v8492_v32 = vld [vmem:[#allocation37_spill] sm:$0xff] }
 0x351   :  { %v4313_v54 = vpop.eup %4312  ;;  %4320 = vpow2.f32 %v2956_v57  ;;  %v8490_v57 = vld [vmem:[#allocation33_spill] sm:$0xff]  ;;  %v2714_v41 = vsub.f32 %v8491_v27, %v7095_v46  ;;  %v8495_v27 = vld [vmem:[#allocation56_spill] sm:$0xff] }
 0x352   :  { %4322 = vpow2.f32 %v2966_v6  ;;  %v3462_v34 = vadd.f32 %v4313_v54, %v4311_v21  ;;  %v2707_v8 = vsub.f32 %v8490_v57, %v7102_v29  ;;  %v2709_v54 = vsub.f32 %v8492_v32, %v7102_v29 }
 0x353   :  { %4324 = vpow2.f32 %v2970_v18  ;;  %v2972_v18 = vmul.f32 1.442695, %v2705_v47  ;;  %v2716_v57 = vsub.f32 %v8493_v38, %v7095_v46  ;;  %v2986_v24 = vmul.f32 1.442695, %v2712_v56 }
 0x354   :  { %v4315_v45 = vpop.eup %4314  ;;  %4326 = vpow2.f32 %v2960_v22  ;;  %v2976_v22 = vmul.f32 1.442695, %v2707_v8  ;;  %v2718_v52 = vsub.f32 %v8495_v27, %v7095_v46  ;;  %v2980_v38 = vmul.f32 1.442695, %v2709_v54  ;;  %v8498_v27 = vld [vmem:[#allocation49_spill] sm:$0xff] }
 0x355   :  { %v4317_v2 = vpop.eup %4316  ;;  %v3463_v53 = vadd.f32 %v4315_v45, %v3462_v34  ;;  %4328 = vpow2.f32 %v2974_v0  ;;  %v8494_v34 = vld [vmem:[#allocation41_spill] sm:$0xff]  ;;  %v2994_v8 = vmul.f32 1.442695, %v2716_v57 }
 0x356   :  { %v4319_v6 = vpop.eup %4318  ;;  %4330 = vpow2.f32 %v2964_v11  ;;  %v2711_v45 = vsub.f32 %v8494_v34, %v7102_v29  ;;  %v2990_v11 = vmul.f32 1.442695, %v2714_v41  ;;  %v8497_v34 = vld [vmem:[#allocation60_spill] sm:$0xff]  ;;  %v2998_v54 = vmul.f32 1.442695, %v2718_v52 }
 0x357   :  { %v4321_v21 = vpop.eup %4320  ;;  %v3464_v48 = vadd.f32 %v4319_v6, %v3463_v53  ;;  %4332 = vpow2.f32 %v2978_v9  ;;  %v8496_v6 = vld [vmem:[#allocation45_spill] sm:$0xff] }
 0x358   :  { %v4323_v42 = vpop.eup %4322  ;;  %4334 = vpow2.f32 %v2968_v7  ;;  %v3595_v47 = vadd.f32 %v4321_v21, %v4317_v2  ;;  %v2713_v32 = vsub.f32 %v8496_v6, %v7102_v29  ;;  %v2720_v7 = vsub.f32 %v8497_v34, %v7095_v46  ;;  %v8499_v6 = vld [vmem:[#allocation64_spill] sm:$0xff]  ;;  %v8500_v34 = vld [vmem:[#allocation53_spill] sm:$0xff] }
 0x359   :  { %v3465_v0 = vadd.f32 %v4323_v42, %v3464_v48  ;;  %v4325_v1 = vpop.eup %4324  ;;  %4336 = vpow2.f32 %v2982_v39  ;;  %v2715_v39 = vsub.f32 %v8498_v27, %v7102_v29  ;;  %v2984_v41 = vmul.f32 1.442695, %v2711_v45  ;;  %v8501_v27 = vld [vmem:[#allocation68_spill] sm:$0xff] }
 0x35a   :  { %v4327_v53 = vpop.eup %4326  ;;  %4338 = vpow2.f32 %v2972_v18  ;;  %v2722_v18 = vsub.f32 %v8499_v6, %v7095_v46  ;;  %v2988_v57 = vmul.f32 1.442695, %v2713_v32  ;;  %v3002_v45 = vmul.f32 1.442695, %v2720_v7  ;;  %v8502_v6 = vld [vmem:[#allocation57_spill] sm:$0xff] }
 0x35b   :  { %v3466_v56 = vadd.f32 %v4325_v1, %v3465_v0  ;;  %v4329_v9 = vpop.eup %4328  ;;  %4340 = vpow2.f32 %v2986_v24  ;;  %v3596_v48 = vadd.f32 %v4327_v53, %v3595_v47  ;;  %v2717_v24 = vsub.f32 %v8500_v34, %v7102_v29  ;;  %v8503_v34 = vld [vmem:[#allocation72_spill] sm:$0xff] }
 0x35c   :  { %v4331_v42 = vpop.eup %4330  ;;  %4342 = vpow2.f32 %v2976_v22  ;;  %v2724_v22 = vsub.f32 %v8501_v27, %v7095_v46  ;;  %v2992_v52 = vmul.f32 1.442695, %v2715_v39  ;;  %v3006_v32 = vmul.f32 1.442695, %v2722_v18  ;;  %v8504_v27 = vld [vmem:[#allocation61_spill] sm:$0xff] }
 0x35d   :  { %v3467_v2 = vadd.f32 %v4329_v9, %v3466_v56  ;;  %v4333_v21 = vpop.eup %4332  ;;  %4344 = vpow2.f32 %v2990_v11  ;;  %v3597_v0 = vadd.f32 %v4331_v42, %v3596_v48  ;;  %v2719_v11 = vsub.f32 %v8502_v6, %v7102_v29  ;;  %v8505_v6 = vld [vmem:[#allocation76_spill] sm:$0xff] }
 0x35e   :  { %v4335_v1 = vpop.eup %4334  ;;  %4346 = vpow2.f32 %v2980_v38  ;;  %v2726_v38 = vsub.f32 %v8503_v34, %v7095_v46  ;;  %v2996_v7 = vmul.f32 1.442695, %v2717_v24  ;;  %v3010_v39 = vmul.f32 1.442695, %v2724_v22  ;;  %v8506_v34 = vld [vmem:[#allocation65_spill] sm:$0xff] }
 0x35f   :  { %v3468_v47 = vadd.f32 %v4333_v21, %v3467_v2  ;;  %v4337_v53 = vpop.eup %4336  ;;  %4348 = vpow2.f32 %v2994_v8  ;;  %v3598_v56 = vadd.f32 %v4335_v1, %v3597_v0  ;;  %v2721_v8 = vsub.f32 %v8504_v27, %v7102_v29  ;;  %v8507_v27 = vld [vmem:[#allocation80_spill] sm:$0xff] }
 0x360   :  { %v4339_v9 = vpop.eup %4338  ;;  %4350 = vpow2.f32 %v2984_v41  ;;  %v2728_v41 = vsub.f32 %v8505_v6, %v7095_v46  ;;  %v3000_v18 = vmul.f32 1.442695, %v2719_v11  ;;  %v3014_v24 = vmul.f32 1.442695, %v2726_v38  ;;  %v8508_v6 = vld [vmem:[#allocation69_spill] sm:$0xff] }
 0x361   :  { %v3469_v48 = vadd.f32 %v4337_v53, %v3468_v47  ;;  %v4341_v42 = vpop.eup %4340  ;;  %4352 = vpow2.f32 %v2998_v54  ;;  %v3599_v2 = vadd.f32 %v4339_v9, %v3598_v56  ;;  %v2723_v54 = vsub.f32 %v8506_v34, %v7102_v29  ;;  %v8509_v34 = vld [vmem:[#allocation84_spill] sm:$0xff] }
 0x362   :  { %v4343_v21 = vpop.eup %4342  ;;  %4354 = vpow2.f32 %v2988_v57  ;;  %v2730_v57 = vsub.f32 %v8507_v27, %v7095_v46  ;;  %v3004_v22 = vmul.f32 1.442695, %v2721_v8  ;;  %v3018_v11 = vmul.f32 1.442695, %v2728_v41  ;;  %v8510_v27 = vld [vmem:[#allocation73_spill] sm:$0xff] }
 0x363   :  { %v3470_v0 = vadd.f32 %v4341_v42, %v3469_v48  ;;  %v4345_v1 = vpop.eup %4344  ;;  %4356 = vpow2.f32 %v3002_v45  ;;  %v3600_v47 = vadd.f32 %v4343_v21, %v3599_v2  ;;  %v2725_v45 = vsub.f32 %v8508_v6, %v7102_v29  ;;  %v8511_v6 = vld [vmem:[#allocation88_spill] sm:$0xff] }
 0x364   :  { %v4347_v53 = vpop.eup %4346  ;;  %4358 = vpow2.f32 %v2992_v52  ;;  %v2732_v52 = vsub.f32 %v8509_v34, %v7095_v46  ;;  %v3008_v38 = vmul.f32 1.442695, %v2723_v54  ;;  %v3022_v8 = vmul.f32 1.442695, %v2730_v57  ;;  %v8512_v34 = vld [vmem:[#allocation77_spill] sm:$0xff] }
 0x365   :  { %v3471_v56 = vadd.f32 %v4345_v1, %v3470_v0  ;;  %v4349_v9 = vpop.eup %4348  ;;  %4360 = vpow2.f32 %v3006_v32  ;;  %v3601_v48 = vadd.f32 %v4347_v53, %v3600_v47  ;;  %v2727_v32 = vsub.f32 %v8510_v27, %v7102_v29  ;;  %v8513_v27 = vld [vmem:[#allocation92_spill] sm:$0xff] }
 0x366   :  { %v4351_v42 = vpop.eup %4350  ;;  %4362 = vpow2.f32 %v2996_v7  ;;  %v2734_v7 = vsub.f32 %v8511_v6, %v7095_v46  ;;  %v3012_v41 = vmul.f32 1.442695, %v2725_v45  ;;  %v3026_v54 = vmul.f32 1.442695, %v2732_v52  ;;  %v8514_v6 = vld [vmem:[#allocation81_spill] sm:$0xff] }
 0x367   :  { %v3472_v2 = vadd.f32 %v4349_v9, %v3471_v56  ;;  %v4353_v21 = vpop.eup %4352  ;;  %4364 = vpow2.f32 %v3010_v39  ;;  %v3602_v0 = vadd.f32 %v4351_v42, %v3601_v48  ;;  %v2729_v39 = vsub.f32 %v8512_v34, %v7102_v29  ;;  %v8515_v34 = vld [vmem:[#allocation96_spill] sm:$0xff] }
 0x368   :  { %v4355_v1 = vpop.eup %4354  ;;  %4366 = vpow2.f32 %v3000_v18  ;;  %v2736_v18 = vsub.f32 %v8513_v27, %v7095_v46  ;;  %v3016_v57 = vmul.f32 1.442695, %v2727_v32  ;;  %v3030_v45 = vmul.f32 1.442695, %v2734_v7  ;;  %v8516_v27 = vld [vmem:[#allocation85_spill] sm:$0xff] }
 0x369   :  { %v3473_v47 = vadd.f32 %v4353_v21, %v3472_v2  ;;  %v4357_v53 = vpop.eup %4356  ;;  %4368 = vpow2.f32 %v3014_v24  ;;  %v3603_v56 = vadd.f32 %v4355_v1, %v3602_v0  ;;  %v2731_v24 = vsub.f32 %v8514_v6, %v7102_v29  ;;  %v8517_v6 = vld [vmem:[#allocation100_spill] sm:$0xff] }
 0x36a   :  { %v4359_v9 = vpop.eup %4358  ;;  %4370 = vpow2.f32 %v3004_v22  ;;  %v2738_v22 = vsub.f32 %v8515_v34, %v7095_v46  ;;  %v3020_v52 = vmul.f32 1.442695, %v2729_v39  ;;  %v3034_v32 = vmul.f32 1.442695, %v2736_v18  ;;  %v8518_v34 = vld [vmem:[#allocation89_spill] sm:$0xff] }
 0x36b   :  { %v3474_v48 = vadd.f32 %v4357_v53, %v3473_v47  ;;  %v4361_v42 = vpop.eup %4360  ;;  %4372 = vpow2.f32 %v3018_v11  ;;  %v3604_v2 = vadd.f32 %v4359_v9, %v3603_v56  ;;  %v2733_v11 = vsub.f32 %v8516_v27, %v7102_v29  ;;  %v8519_v27 = vld [vmem:[#allocation104_spill] sm:$0xff] }
 0x36c   :  { %v4363_v21 = vpop.eup %4362  ;;  %4374 = vpow2.f32 %v3008_v38  ;;  %v2740_v38 = vsub.f32 %v8517_v6, %v7095_v46  ;;  %v3024_v7 = vmul.f32 1.442695, %v2731_v24  ;;  %v3038_v39 = vmul.f32 1.442695, %v2738_v22  ;;  %v8520_v6 = vld [vmem:[#allocation93_spill] sm:$0xff] }
 0x36d   :  { %v3475_v0 = vadd.f32 %v4361_v42, %v3474_v48  ;;  %v4365_v1 = vpop.eup %4364  ;;  %4376 = vpow2.f32 %v3022_v8  ;;  %v3605_v47 = vadd.f32 %v4363_v21, %v3604_v2  ;;  %v2735_v8 = vsub.f32 %v8518_v34, %v7102_v29  ;;  %v8521_v34 = vld [vmem:[#allocation108_spill] sm:$0xff] }
 0x36e   :  { %v4367_v53 = vpop.eup %4366  ;;  %4378 = vpow2.f32 %v3012_v41  ;;  %v2742_v41 = vsub.f32 %v8519_v27, %v7095_v46  ;;  %v3028_v18 = vmul.f32 1.442695, %v2733_v11  ;;  %v3042_v24 = vmul.f32 1.442695, %v2740_v38  ;;  %v8522_v27 = vld [vmem:[#allocation97_spill] sm:$0xff] }
 0x36f   :  { %v3476_v56 = vadd.f32 %v4365_v1, %v3475_v0  ;;  %v4369_v9 = vpop.eup %4368  ;;  %4380 = vpow2.f32 %v3026_v54  ;;  %v3606_v48 = vadd.f32 %v4367_v53, %v3605_v47  ;;  %v2737_v54 = vsub.f32 %v8520_v6, %v7102_v29  ;;  %v8523_v6 = vld [vmem:[#allocation112_spill] sm:$0xff] }
 0x370   :  { %v4371_v42 = vpop.eup %4370  ;;  %4382 = vpow2.f32 %v3016_v57  ;;  %v2744_v57 = vsub.f32 %v8521_v34, %v7095_v46  ;;  %v3032_v22 = vmul.f32 1.442695, %v2735_v8  ;;  %v3046_v11 = vmul.f32 1.442695, %v2742_v41  ;;  %v8524_v34 = vld [vmem:[#allocation101_spill] sm:$0xff] }
 0x371   :  { %v3477_v2 = vadd.f32 %v4369_v9, %v3476_v56  ;;  %v4373_v21 = vpop.eup %4372  ;;  %4384 = vpow2.f32 %v3030_v45  ;;  %v3607_v0 = vadd.f32 %v4371_v42, %v3606_v48  ;;  %v2739_v45 = vsub.f32 %v8522_v27, %v7102_v29  ;;  %v8525_v27 = vld [vmem:[#allocation116_spill] sm:$0xff] }
 0x372   :  { %v4375_v1 = vpop.eup %4374  ;;  %4386 = vpow2.f32 %v3020_v52  ;;  %v2746_v52 = vsub.f32 %v8523_v6, %v7095_v46  ;;  %v3036_v38 = vmul.f32 1.442695, %v2737_v54  ;;  %v3050_v8 = vmul.f32 1.442695, %v2744_v57  ;;  %v8526_v6 = vld [vmem:[#allocation105_spill] sm:$0xff] }
 0x373   :  { %v3478_v47 = vadd.f32 %v4373_v21, %v3477_v2  ;;  %v4377_v53 = vpop.eup %4376  ;;  %4388 = vpow2.f32 %v3034_v32  ;;  %v3608_v56 = vadd.f32 %v4375_v1, %v3607_v0  ;;  %v2741_v32 = vsub.f32 %v8524_v34, %v7102_v29  ;;  %v8527_v34 = vld [vmem:[#allocation120_spill] sm:$0xff] }
 0x374   :  { %v4379_v9 = vpop.eup %4378  ;;  %4390 = vpow2.f32 %v3024_v7  ;;  %v2748_v7 = vsub.f32 %v8525_v27, %v7095_v46  ;;  %v3040_v41 = vmul.f32 1.442695, %v2739_v45  ;;  %v3054_v54 = vmul.f32 1.442695, %v2746_v52  ;;  %v8528_v27 = vld [vmem:[#allocation109_spill] sm:$0xff] }
 0x375   :  { %v3479_v48 = vadd.f32 %v4377_v53, %v3478_v47  ;;  %v4381_v42 = vpop.eup %4380  ;;  %4392 = vpow2.f32 %v3038_v39  ;;  %v3609_v2 = vadd.f32 %v4379_v9, %v3608_v56  ;;  %v2743_v39 = vsub.f32 %v8526_v6, %v7102_v29  ;;  %v8529_v6 = vld [vmem:[#allocation124_spill] sm:$0xff] }
 0x376   :  { %v4383_v21 = vpop.eup %4382  ;;  %4394 = vpow2.f32 %v3028_v18  ;;  %v2750_v18 = vsub.f32 %v8527_v34, %v7095_v46  ;;  %v3044_v57 = vmul.f32 1.442695, %v2741_v32  ;;  %v3058_v45 = vmul.f32 1.442695, %v2748_v7  ;;  %v8530_v34 = vld [vmem:[#allocation113_spill] sm:$0xff] }
 0x377   :  { %v3480_v0 = vadd.f32 %v4381_v42, %v3479_v48  ;;  %v4385_v1 = vpop.eup %4384  ;;  %4396 = vpow2.f32 %v3042_v24  ;;  %v3610_v47 = vadd.f32 %v4383_v21, %v3609_v2  ;;  %v2745_v24 = vsub.f32 %v8528_v27, %v7102_v29  ;;  %v8531_v27 = vld [vmem:[#allocation128_spill] sm:$0xff] }
 0x378   :  { %v4387_v53 = vpop.eup %4386  ;;  %4398 = vpow2.f32 %v3032_v22  ;;  %v2752_v22 = vsub.f32 %v8529_v6, %v7095_v46  ;;  %v3048_v52 = vmul.f32 1.442695, %v2743_v39  ;;  %v3062_v32 = vmul.f32 1.442695, %v2750_v18  ;;  %v8532_v6 = vld [vmem:[#allocation117_spill] sm:$0xff] }
 0x379   :  { %v3481_v56 = vadd.f32 %v4385_v1, %v3480_v0  ;;  %v4389_v9 = vpop.eup %4388  ;;  %4400 = vpow2.f32 %v3046_v11  ;;  %v3611_v48 = vadd.f32 %v4387_v53, %v3610_v47  ;;  %v2747_v11 = vsub.f32 %v8530_v34, %v7102_v29  ;;  %v8533_v34 = vld [vmem:[#allocation132_spill] sm:$0xff] }
 0x37a   :  { %v4391_v42 = vpop.eup %4390  ;;  %4402 = vpow2.f32 %v3036_v38  ;;  %v2754_v38 = vsub.f32 %v8531_v27, %v7095_v46  ;;  %v3052_v7 = vmul.f32 1.442695, %v2745_v24  ;;  %v3066_v39 = vmul.f32 1.442695, %v2752_v22  ;;  %v8534_v27 = vld [vmem:[#allocation121_spill] sm:$0xff] }
 0x37b   :  { %v3482_v2 = vadd.f32 %v4389_v9, %v3481_v56  ;;  %v4393_v21 = vpop.eup %4392  ;;  %4404 = vpow2.f32 %v3050_v8  ;;  %v3612_v0 = vadd.f32 %v4391_v42, %v3611_v48  ;;  %v2749_v8 = vsub.f32 %v8532_v6, %v7102_v29  ;;  %v8535_v6 = vld [vmem:[#allocation136_spill] sm:$0xff] }
 0x37c   :  { %v4395_v1 = vpop.eup %4394  ;;  %4406 = vpow2.f32 %v3040_v41  ;;  %v2756_v41 = vsub.f32 %v8533_v34, %v7095_v46  ;;  %v3056_v18 = vmul.f32 1.442695, %v2747_v11  ;;  %v3070_v24 = vmul.f32 1.442695, %v2754_v38  ;;  %v8536_v34 = vld [vmem:[#allocation125_spill] sm:$0xff] }
 0x37d   :  { %v3483_v47 = vadd.f32 %v4393_v21, %v3482_v2  ;;  %v4397_v53 = vpop.eup %4396  ;;  %4408 = vpow2.f32 %v3054_v54  ;;  %v3613_v56 = vadd.f32 %v4395_v1, %v3612_v0  ;;  %v2751_v54 = vsub.f32 %v8534_v27, %v7102_v29  ;;  %v8537_v27 = vld [vmem:[#allocation140_spill] sm:$0xff] }
 0x37e   :  { %v4399_v9 = vpop.eup %4398  ;;  %4410 = vpow2.f32 %v3044_v57  ;;  %v2758_v57 = vsub.f32 %v8535_v6, %v7095_v46  ;;  %v3060_v22 = vmul.f32 1.442695, %v2749_v8  ;;  %v3074_v11 = vmul.f32 1.442695, %v2756_v41  ;;  %v8538_v6 = vld [vmem:[#allocation129_spill] sm:$0xff] }
 0x37f   :  { %v3484_v48 = vadd.f32 %v4397_v53, %v3483_v47  ;;  %v4401_v42 = vpop.eup %4400  ;;  %4412 = vpow2.f32 %v3058_v45  ;;  %v3614_v2 = vadd.f32 %v4399_v9, %v3613_v56  ;;  %v2753_v45 = vsub.f32 %v8536_v34, %v7102_v29  ;;  %v8539_v34 = vld [vmem:[#allocation144_spill] sm:$0xff] }
 0x380   :  { %v4403_v21 = vpop.eup %4402  ;;  %4414 = vpow2.f32 %v3048_v52  ;;  %v2760_v52 = vsub.f32 %v8537_v27, %v7095_v46  ;;  %v3064_v38 = vmul.f32 1.442695, %v2751_v54  ;;  %v3078_v8 = vmul.f32 1.442695, %v2758_v57  ;;  %v8540_v27 = vld [vmem:[#allocation133_spill] sm:$0xff] }
 0x381   :  { %v3485_v0 = vadd.f32 %v4401_v42, %v3484_v48  ;;  %v4405_v1 = vpop.eup %4404  ;;  %4416 = vpow2.f32 %v3062_v32  ;;  %v3615_v47 = vadd.f32 %v4403_v21, %v3614_v2  ;;  %v2755_v32 = vsub.f32 %v8538_v6, %v7102_v29  ;;  %v8541_v6 = vld [vmem:[#allocation148_spill] sm:$0xff] }
 0x382   :  { %v4407_v53 = vpop.eup %4406  ;;  %4418 = vpow2.f32 %v3052_v7  ;;  %v2762_v7 = vsub.f32 %v8539_v34, %v7095_v46  ;;  %v3068_v41 = vmul.f32 1.442695, %v2753_v45  ;;  %v3082_v54 = vmul.f32 1.442695, %v2760_v52  ;;  %v8542_v34 = vld [vmem:[#allocation137_spill] sm:$0xff] }
 0x383   :  { %v3486_v56 = vadd.f32 %v4405_v1, %v3485_v0  ;;  %v4409_v9 = vpop.eup %4408  ;;  %4420 = vpow2.f32 %v3066_v39  ;;  %v3616_v48 = vadd.f32 %v4407_v53, %v3615_v47  ;;  %v2757_v39 = vsub.f32 %v8540_v27, %v7102_v29  ;;  %v8543_v27 = vld [vmem:[#allocation152_spill] sm:$0xff] }
 0x384   :  { %v4411_v42 = vpop.eup %4410  ;;  %4422 = vpow2.f32 %v3056_v18  ;;  %v2764_v18 = vsub.f32 %v8541_v6, %v7095_v46  ;;  %v3072_v57 = vmul.f32 1.442695, %v2755_v32  ;;  %v3086_v45 = vmul.f32 1.442695, %v2762_v7  ;;  %v8544_v6 = vld [vmem:[#allocation141_spill] sm:$0xff] }
 0x385   :  { %v3487_v2 = vadd.f32 %v4409_v9, %v3486_v56  ;;  %v4413_v21 = vpop.eup %4412  ;;  %4424 = vpow2.f32 %v3070_v24  ;;  %v3617_v0 = vadd.f32 %v4411_v42, %v3616_v48  ;;  %v2759_v24 = vsub.f32 %v8542_v34, %v7102_v29  ;;  %v8545_v34 = vld [vmem:[#allocation156_spill] sm:$0xff] }
 0x386   :  { %v4415_v1 = vpop.eup %4414  ;;  %4426 = vpow2.f32 %v3060_v22  ;;  %v2766_v22 = vsub.f32 %v8543_v27, %v7095_v46  ;;  %v3076_v52 = vmul.f32 1.442695, %v2757_v39  ;;  %v3090_v32 = vmul.f32 1.442695, %v2764_v18  ;;  %v8546_v27 = vld [vmem:[#allocation145_spill] sm:$0xff] }
 0x387   :  { %v3488_v47 = vadd.f32 %v4413_v21, %v3487_v2  ;;  %v4417_v53 = vpop.eup %4416  ;;  %4428 = vpow2.f32 %v3074_v11  ;;  %v3618_v56 = vadd.f32 %v4415_v1, %v3617_v0  ;;  %v2761_v11 = vsub.f32 %v8544_v6, %v7102_v29  ;;  %v8547_v6 = vld [vmem:[#allocation160_spill] sm:$0xff] }
 0x388   :  { %v4419_v9 = vpop.eup %4418  ;;  %4430 = vpow2.f32 %v3064_v38  ;;  %v2768_v38 = vsub.f32 %v8545_v34, %v7095_v46  ;;  %v3080_v7 = vmul.f32 1.442695, %v2759_v24  ;;  %v3094_v39 = vmul.f32 1.442695, %v2766_v22  ;;  %v8548_v34 = vld [vmem:[#allocation149_spill] sm:$0xff] }
 0x389   :  { %v3489_v48 = vadd.f32 %v4417_v53, %v3488_v47  ;;  %v4421_v42 = vpop.eup %4420  ;;  %4432 = vpow2.f32 %v3078_v8  ;;  %v3619_v2 = vadd.f32 %v4419_v9, %v3618_v56  ;;  %v2763_v8 = vsub.f32 %v8546_v27, %v7102_v29  ;;  %v8549_v27 = vld [vmem:[#allocation164_spill] sm:$0xff] }
 0x38a   :  { %v4423_v21 = vpop.eup %4422  ;;  %4434 = vpow2.f32 %v3068_v41  ;;  %v2770_v41 = vsub.f32 %v8547_v6, %v7095_v46  ;;  %v3084_v18 = vmul.f32 1.442695, %v2761_v11  ;;  %v3098_v24 = vmul.f32 1.442695, %v2768_v38  ;;  %v8550_v6 = vld [vmem:[#allocation153_spill] sm:$0xff] }
 0x38b   :  { %v3490_v0 = vadd.f32 %v4421_v42, %v3489_v48  ;;  %v4425_v1 = vpop.eup %4424  ;;  %4436 = vpow2.f32 %v3082_v54  ;;  %v3620_v47 = vadd.f32 %v4423_v21, %v3619_v2  ;;  %v2765_v54 = vsub.f32 %v8548_v34, %v7102_v29  ;;  %v8551_v34 = vld [vmem:[#allocation168_spill] sm:$0xff] }
 0x38c   :  { %v4427_v53 = vpop.eup %4426  ;;  %4438 = vpow2.f32 %v3072_v57  ;;  %v2772_v57 = vsub.f32 %v8549_v27, %v7095_v46  ;;  %v3088_v22 = vmul.f32 1.442695, %v2763_v8  ;;  %v3102_v11 = vmul.f32 1.442695, %v2770_v41  ;;  %v8552_v27 = vld [vmem:[#allocation157_spill] sm:$0xff] }
 0x38d   :  { %v3491_v56 = vadd.f32 %v4425_v1, %v3490_v0  ;;  %v4429_v9 = vpop.eup %4428  ;;  %4440 = vpow2.f32 %v3086_v45  ;;  %v3621_v48 = vadd.f32 %v4427_v53, %v3620_v47  ;;  %v2767_v45 = vsub.f32 %v8550_v6, %v7102_v29  ;;  %v8553_v6 = vld [vmem:[#allocation172_spill] sm:$0xff] }
 0x38e   :  { %v4431_v42 = vpop.eup %4430  ;;  %4442 = vpow2.f32 %v3076_v52  ;;  %v2774_v52 = vsub.f32 %v8551_v34, %v7095_v46  ;;  %v3092_v38 = vmul.f32 1.442695, %v2765_v54  ;;  %v3106_v8 = vmul.f32 1.442695, %v2772_v57  ;;  %v8554_v34 = vld [vmem:[#allocation161_spill] sm:$0xff] }
 0x38f   :  { %v3492_v2 = vadd.f32 %v4429_v9, %v3491_v56  ;;  %v4433_v21 = vpop.eup %4432  ;;  %4444 = vpow2.f32 %v3090_v32  ;;  %v3622_v0 = vadd.f32 %v4431_v42, %v3621_v48  ;;  %v2769_v32 = vsub.f32 %v8552_v27, %v7102_v29  ;;  %v8555_v27 = vld [vmem:[#allocation178_spill] sm:$0xff] }
 0x390   :  { %v4435_v1 = vpop.eup %4434  ;;  %4446 = vpow2.f32 %v3080_v7  ;;  %v2776_v7 = vsub.f32 %v8553_v6, %v7095_v46  ;;  %v3096_v41 = vmul.f32 1.442695, %v2767_v45  ;;  %v3110_v54 = vmul.f32 1.442695, %v2774_v52  ;;  %v8556_v6 = vld [vmem:[#allocation165_spill] sm:$0xff] }
 0x391   :  { %v3493_v47 = vadd.f32 %v4433_v21, %v3492_v2  ;;  %v4437_v53 = vpop.eup %4436  ;;  %4448 = vpow2.f32 %v3094_v39  ;;  %v3623_v56 = vadd.f32 %v4435_v1, %v3622_v0  ;;  %v2771_v39 = vsub.f32 %v8554_v34, %v7102_v29  ;;  %v8557_v34 = vld [vmem:[#allocation185_spill] sm:$0xff] }
 0x392   :  { %v4439_v9 = vpop.eup %4438  ;;  %4450 = vpow2.f32 %v3084_v18  ;;  %v2778_v18 = vsub.f32 %v8555_v27, %v7095_v46  ;;  %v3100_v57 = vmul.f32 1.442695, %v2769_v32  ;;  %v3114_v45 = vmul.f32 1.442695, %v2776_v7  ;;  %v8558_v27 = vld [vmem:[#allocation169_spill] sm:$0xff] }
 0x393   :  { %v3494_v48 = vadd.f32 %v4437_v53, %v3493_v47  ;;  %v4441_v42 = vpop.eup %4440  ;;  %4452 = vpow2.f32 %v3098_v24  ;;  %v3624_v2 = vadd.f32 %v4439_v9, %v3623_v56  ;;  %v2773_v24 = vsub.f32 %v8556_v6, %v7102_v29  ;;  %v8559_v6 = vld [vmem:[#allocation187_spill] sm:$0xff] }
 0x394   :  { %v4443_v21 = vpop.eup %4442  ;;  %4454 = vpow2.f32 %v3088_v22  ;;  %v2780_v22 = vsub.f32 %v8557_v34, %v7095_v46  ;;  %v3104_v52 = vmul.f32 1.442695, %v2771_v39  ;;  %v3118_v32 = vmul.f32 1.442695, %v2778_v18  ;;  %v8560_v34 = vld [vmem:[#allocation173_spill] sm:$0xff] }
 0x395   :  { %v3495_v0 = vadd.f32 %v4441_v42, %v3494_v48  ;;  %v4445_v1 = vpop.eup %4444  ;;  %4456 = vpow2.f32 %v3102_v11  ;;  %v3625_v47 = vadd.f32 %v4443_v21, %v3624_v2  ;;  %v2775_v11 = vsub.f32 %v8558_v27, %v7102_v29  ;;  %v8561_v27 = vld [vmem:[#allocation190_spill] sm:$0xff] }
 0x396   :  { %v4447_v53 = vpop.eup %4446  ;;  %4458 = vpow2.f32 %v3092_v38  ;;  %v2782_v38 = vsub.f32 %v8559_v6, %v7095_v46  ;;  %v3108_v7 = vmul.f32 1.442695, %v2773_v24  ;;  %v3122_v39 = vmul.f32 1.442695, %v2780_v22  ;;  %v8562_v6 = vld [vmem:[#allocation179_spill] sm:$0xff] }
 0x397   :  { %v3496_v56 = vadd.f32 %v4445_v1, %v3495_v0  ;;  %v4449_v9 = vpop.eup %4448  ;;  %4460 = vpow2.f32 %v3106_v8  ;;  %v3626_v48 = vadd.f32 %v4447_v53, %v3625_v47  ;;  %v2777_v8 = vsub.f32 %v8560_v34, %v7102_v29  ;;  %v8563_v34 = vld [vmem:[#allocation193_spill] sm:$0xff] }
 0x398   :  { %v4451_v42 = vpop.eup %4450  ;;  %4462 = vpow2.f32 %v3096_v41  ;;  %v2784_v41 = vsub.f32 %v8561_v27, %v7095_v46  ;;  %v3112_v18 = vmul.f32 1.442695, %v2775_v11  ;;  %v3126_v24 = vmul.f32 1.442695, %v2782_v38  ;;  %v8564_v27 = vld [vmem:[#allocation186_spill] sm:$0xff] }
 0x399   :  { %v3497_v2 = vadd.f32 %v4449_v9, %v3496_v56  ;;  %v4453_v21 = vpop.eup %4452  ;;  %4464 = vpow2.f32 %v3110_v54  ;;  %v3627_v0 = vadd.f32 %v4451_v42, %v3626_v48  ;;  %v2779_v54 = vsub.f32 %v8562_v6, %v7102_v29  ;;  %v8565_v6 = vld [vmem:[#allocation197_spill] sm:$0xff] }
 0x39a   :  { %v4455_v1 = vpop.eup %4454  ;;  %4466 = vpow2.f32 %v3100_v57  ;;  %v2786_v57 = vsub.f32 %v8563_v34, %v7095_v46  ;;  %v3116_v22 = vmul.f32 1.442695, %v2777_v8  ;;  %v3130_v11 = vmul.f32 1.442695, %v2784_v41  ;;  %v8566_v34 = vld [vmem:[#allocation188_spill] sm:$0xff] }
 0x39b   :  { %v3498_v47 = vadd.f32 %v4453_v21, %v3497_v2  ;;  %v4457_v53 = vpop.eup %4456  ;;  %4468 = vpow2.f32 %v3114_v45  ;;  %v3628_v56 = vadd.f32 %v4455_v1, %v3627_v0  ;;  %v2781_v45 = vsub.f32 %v8564_v27, %v7102_v29  ;;  %v8567_v27 = vld [vmem:[#allocation200_spill] sm:$0xff] }
 0x39c   :  { %v4459_v9 = vpop.eup %4458  ;;  %4470 = vpow2.f32 %v3104_v52  ;;  %v2788_v52 = vsub.f32 %v8565_v6, %v7095_v46  ;;  %v3120_v38 = vmul.f32 1.442695, %v2779_v54  ;;  %v3134_v8 = vmul.f32 1.442695, %v2786_v57  ;;  %v8568_v6 = vld [vmem:[#allocation191_spill] sm:$0xff] }
 0x39d   :  { %v3499_v48 = vadd.f32 %v4457_v53, %v3498_v47  ;;  %v4461_v42 = vpop.eup %4460  ;;  %4472 = vpow2.f32 %v3118_v32  ;;  %v3629_v2 = vadd.f32 %v4459_v9, %v3628_v56  ;;  %v2783_v32 = vsub.f32 %v8566_v34, %v7102_v29  ;;  %v8569_v34 = vld [vmem:[#allocation204_spill] sm:$0xff] }
 0x39e   :  { %v4463_v21 = vpop.eup %4462  ;;  %4474 = vpow2.f32 %v3108_v7  ;;  %v2790_v7 = vsub.f32 %v8567_v27, %v7095_v46  ;;  %v3124_v41 = vmul.f32 1.442695, %v2781_v45  ;;  %v3138_v54 = vmul.f32 1.442695, %v2788_v52  ;;  %v8570_v27 = vld [vmem:[#allocation194_spill] sm:$0xff] }
 0x39f   :  { %v3500_v0 = vadd.f32 %v4461_v42, %v3499_v48  ;;  %v4465_v1 = vpop.eup %4464  ;;  %4476 = vpow2.f32 %v3122_v39  ;;  %v3630_v47 = vadd.f32 %v4463_v21, %v3629_v2  ;;  %v2785_v39 = vsub.f32 %v8568_v6, %v7102_v29  ;;  %v8571_v6 = vld [vmem:[#allocation208_spill] sm:$0xff] }
 0x3a0   :  { %v4467_v53 = vpop.eup %4466  ;;  %4478 = vpow2.f32 %v3112_v18  ;;  %v2792_v18 = vsub.f32 %v8569_v34, %v7095_v46  ;;  %v3128_v57 = vmul.f32 1.442695, %v2783_v32  ;;  %v3142_v45 = vmul.f32 1.442695, %v2790_v7  ;;  %v8572_v34 = vld [vmem:[#allocation198_spill] sm:$0xff] }
 0x3a1   :  { %v3501_v56 = vadd.f32 %v4465_v1, %v3500_v0  ;;  %v4469_v9 = vpop.eup %4468  ;;  %4480 = vpow2.f32 %v3126_v24  ;;  %v3631_v48 = vadd.f32 %v4467_v53, %v3630_v47  ;;  %v2787_v24 = vsub.f32 %v8570_v27, %v7102_v29  ;;  %v8573_v27 = vld [vmem:[#allocation212_spill] sm:$0xff] }
 0x3a2   :  { %v4471_v42 = vpop.eup %4470  ;;  %4482 = vpow2.f32 %v3116_v22  ;;  %v2794_v22 = vsub.f32 %v8571_v6, %v7095_v46  ;;  %v3132_v52 = vmul.f32 1.442695, %v2785_v39  ;;  %v3146_v32 = vmul.f32 1.442695, %v2792_v18  ;;  %v8574_v6 = vld [vmem:[#allocation201_spill] sm:$0xff] }
 0x3a3   :  { %v3502_v2 = vadd.f32 %v4469_v9, %v3501_v56  ;;  %v4473_v21 = vpop.eup %4472  ;;  %4484 = vpow2.f32 %v3130_v11  ;;  %v3632_v0 = vadd.f32 %v4471_v42, %v3631_v48  ;;  %v2789_v11 = vsub.f32 %v8572_v34, %v7102_v29  ;;  %v8575_v34 = vld [vmem:[#allocation216_spill] sm:$0xff] }
 0x3a4   :  { %v4475_v1 = vpop.eup %4474  ;;  %4486 = vpow2.f32 %v3120_v38  ;;  %v2796_v38 = vsub.f32 %v8573_v27, %v7095_v46  ;;  %v3136_v7 = vmul.f32 1.442695, %v2787_v24  ;;  %v3150_v39 = vmul.f32 1.442695, %v2794_v22  ;;  %v8576_v27 = vld [vmem:[#allocation205_spill] sm:$0xff] }
 0x3a5   :  { %v3503_v47 = vadd.f32 %v4473_v21, %v3502_v2  ;;  %v4477_v53 = vpop.eup %4476  ;;  %4488 = vpow2.f32 %v3134_v8  ;;  %v3633_v56 = vadd.f32 %v4475_v1, %v3632_v0  ;;  %v2791_v8 = vsub.f32 %v8574_v6, %v7102_v29  ;;  %v8577_v6 = vld [vmem:[#allocation220_spill] sm:$0xff] }
 0x3a6   :  { %v4479_v9 = vpop.eup %4478  ;;  %4490 = vpow2.f32 %v3124_v41  ;;  %v2798_v41 = vsub.f32 %v8575_v34, %v7095_v46  ;;  %v3140_v18 = vmul.f32 1.442695, %v2789_v11  ;;  %v3154_v24 = vmul.f32 1.442695, %v2796_v38  ;;  %v8578_v34 = vld [vmem:[#allocation209_spill] sm:$0xff] }
 0x3a7   :  { %v3504_v48 = vadd.f32 %v4477_v53, %v3503_v47  ;;  %v4481_v42 = vpop.eup %4480  ;;  %4492 = vpow2.f32 %v3138_v54  ;;  %v3634_v2 = vadd.f32 %v4479_v9, %v3633_v56  ;;  %v2793_v54 = vsub.f32 %v8576_v27, %v7102_v29  ;;  %v8579_v27 = vld [vmem:[#allocation224_spill] sm:$0xff] }
 0x3a8   :  { %v4483_v21 = vpop.eup %4482  ;;  %4494 = vpow2.f32 %v3128_v57  ;;  %v2800_v57 = vsub.f32 %v8577_v6, %v7095_v46  ;;  %v3144_v22 = vmul.f32 1.442695, %v2791_v8  ;;  %v3158_v11 = vmul.f32 1.442695, %v2798_v41  ;;  %v8580_v6 = vld [vmem:[#allocation213_spill] sm:$0xff] }
 0x3a9   :  { %v3505_v0 = vadd.f32 %v4481_v42, %v3504_v48  ;;  %v4485_v1 = vpop.eup %4484  ;;  %4496 = vpow2.f32 %v3142_v45  ;;  %v3635_v47 = vadd.f32 %v4483_v21, %v3634_v2  ;;  %v2795_v45 = vsub.f32 %v8578_v34, %v7102_v29  ;;  %v8581_v34 = vld [vmem:[#allocation228_spill] sm:$0xff] }
 0x3aa   :  { %v4487_v53 = vpop.eup %4486  ;;  %4498 = vpow2.f32 %v3132_v52  ;;  %v2802_v52 = vsub.f32 %v8579_v27, %v7095_v46  ;;  %v3148_v38 = vmul.f32 1.442695, %v2793_v54  ;;  %v3162_v8 = vmul.f32 1.442695, %v2800_v57  ;;  %v8582_v27 = vld [vmem:[#allocation217_spill] sm:$0xff] }
 0x3ab   :  { %v3506_v56 = vadd.f32 %v4485_v1, %v3505_v0  ;;  %v4489_v9 = vpop.eup %4488  ;;  %4500 = vpow2.f32 %v3146_v32  ;;  %v3636_v48 = vadd.f32 %v4487_v53, %v3635_v47  ;;  %v2797_v32 = vsub.f32 %v8580_v6, %v7102_v29  ;;  %v8583_v6 = vld [vmem:[#allocation232_spill] sm:$0xff] }
 0x3ac   :  { %v4491_v42 = vpop.eup %4490  ;;  %4502 = vpow2.f32 %v3136_v7  ;;  %v2804_v7 = vsub.f32 %v8581_v34, %v7095_v46  ;;  %v3152_v41 = vmul.f32 1.442695, %v2795_v45  ;;  %v3166_v54 = vmul.f32 1.442695, %v2802_v52  ;;  %v8584_v34 = vld [vmem:[#allocation221_spill] sm:$0xff] }
 0x3ad   :  { %v3507_v2 = vadd.f32 %v4489_v9, %v3506_v56  ;;  %v4493_v21 = vpop.eup %4492  ;;  %4504 = vpow2.f32 %v3150_v39  ;;  %v3637_v0 = vadd.f32 %v4491_v42, %v3636_v48  ;;  %v2799_v39 = vsub.f32 %v8582_v27, %v7102_v29  ;;  %v8585_v27 = vld [vmem:[#allocation175_spill] sm:$0xff] }
 0x3ae   :  { %v4495_v1 = vpop.eup %4494  ;;  %4506 = vpow2.f32 %v3140_v18  ;;  %v2806_v18 = vsub.f32 %v8583_v6, %v7095_v46  ;;  %v3156_v57 = vmul.f32 1.442695, %v2797_v32  ;;  %v3170_v45 = vmul.f32 1.442695, %v2804_v7  ;;  %v8586_v6 = vld [vmem:[#allocation225_spill] sm:$0xff] }
 0x3af   :  { %v3508_v47 = vadd.f32 %v4493_v21, %v3507_v2  ;;  %v4497_v53 = vpop.eup %4496  ;;  %4508 = vpow2.f32 %v3154_v24  ;;  %v3638_v56 = vadd.f32 %v4495_v1, %v3637_v0  ;;  %v2801_v24 = vsub.f32 %v8584_v34, %v7102_v29  ;;  %v8587_v34 = vld [vmem:[#allocation235_spill] sm:$0xff] }
 0x3b0   :  { %v4499_v9 = vpop.eup %4498  ;;  %4510 = vpow2.f32 %v3144_v22  ;;  %v2808_v22 = vsub.f32 %v8585_v27, %v7095_v46  ;;  %v3160_v52 = vmul.f32 1.442695, %v2799_v39  ;;  %v3174_v32 = vmul.f32 1.442695, %v2806_v18  ;;  %v8588_v27 = vld [vmem:[#allocation229_spill] sm:$0xff] }
 0x3b1   :  { %v3509_v48 = vadd.f32 %v4497_v53, %v3508_v47  ;;  %v4501_v42 = vpop.eup %4500  ;;  %4512 = vpow2.f32 %v3158_v11  ;;  %v3639_v2 = vadd.f32 %v4499_v9, %v3638_v56  ;;  %v2803_v11 = vsub.f32 %v8586_v6, %v7102_v29  ;;  %v8589_v6 = vld [vmem:[#allocation238_spill] sm:$0xff] }
 0x3b2   :  { %v4503_v21 = vpop.eup %4502  ;;  %4514 = vpow2.f32 %v3148_v38  ;;  %v2810_v38 = vsub.f32 %v8587_v34, %v7095_v46  ;;  %v3164_v7 = vmul.f32 1.442695, %v2801_v24  ;;  %v3178_v39 = vmul.f32 1.442695, %v2808_v22  ;;  %v8590_v34 = vld [vmem:[#allocation233_spill] sm:$0xff] }
 0x3b3   :  { %v3510_v0 = vadd.f32 %v4501_v42, %v3509_v48  ;;  %v4505_v1 = vpop.eup %4504  ;;  %4516 = vpow2.f32 %v3162_v8  ;;  %v3640_v47 = vadd.f32 %v4503_v21, %v3639_v2  ;;  %v2805_v8 = vsub.f32 %v8588_v27, %v7102_v29  ;;  %v8591_v27 = vld [vmem:[#allocation241_spill] sm:$0xff] }
 0x3b4   :  { %v4507_v53 = vpop.eup %4506  ;;  %4518 = vpow2.f32 %v3152_v41  ;;  %v2812_v41 = vsub.f32 %v8589_v6, %v7095_v46  ;;  %v3168_v18 = vmul.f32 1.442695, %v2803_v11  ;;  %v3182_v24 = vmul.f32 1.442695, %v2810_v38  ;;  %v8592_v6 = vld [vmem:[#allocation176_spill] sm:$0xff] }
 0x3b5   :  { %v3511_v56 = vadd.f32 %v4505_v1, %v3510_v0  ;;  %v4509_v9 = vpop.eup %4508  ;;  %4520 = vpow2.f32 %v3166_v54  ;;  %v3641_v48 = vadd.f32 %v4507_v53, %v3640_v47  ;;  %v2807_v54 = vsub.f32 %v8590_v34, %v7102_v29  ;;  %v8593_v34 = vld [vmem:[#allocation222_spill] sm:$0xff] }
 0x3b6   :  { %v4511_v42 = vpop.eup %4510  ;;  %4522 = vpow2.f32 %v3156_v57  ;;  %v2814_v57 = vsub.f32 %v8591_v27, %v7095_v46  ;;  %v3172_v22 = vmul.f32 1.442695, %v2805_v8  ;;  %v3186_v11 = vmul.f32 1.442695, %v2812_v41  ;;  %v8594_v27 = vld [vmem:[#allocation236_spill] sm:$0xff] }
 0x3b7   :  { %v3512_v2 = vadd.f32 %v4509_v9, %v3511_v56  ;;  %v4513_v21 = vpop.eup %4512  ;;  %4524 = vpow2.f32 %v3170_v45  ;;  %v3642_v0 = vadd.f32 %v4511_v42, %v3641_v48  ;;  %v2809_v45 = vsub.f32 %v8592_v6, %v7102_v29  ;;  %v8595_v6 = vld [vmem:[#allocation174_spill] sm:$0xff] }
 0x3b8   :  { %v4515_v1 = vpop.eup %4514  ;;  %4526 = vpow2.f32 %v3160_v52  ;;  %v2816_v52 = vsub.f32 %v8593_v34, %v7095_v46  ;;  %v3176_v38 = vmul.f32 1.442695, %v2807_v54  ;;  %v3190_v8 = vmul.f32 1.442695, %v2814_v57  ;;  %v8596_v34 = vld [vmem:[#allocation239_spill] sm:$0xff] }
 0x3b9   :  { %v3513_v47 = vadd.f32 %v4513_v21, %v3512_v2  ;;  %v4517_v53 = vpop.eup %4516  ;;  %4528 = vpow2.f32 %v3174_v32  ;;  %v3643_v56 = vadd.f32 %v4515_v1, %v3642_v0  ;;  %v2811_v32 = vsub.f32 %v8594_v27, %v7102_v29  ;;  %v8597_v27 = vld [vmem:[#allocation230_spill] sm:$0xff] }
 0x3ba   :  { %v4519_v9 = vpop.eup %4518  ;;  %4530 = vpow2.f32 %v3164_v7  ;;  %v2818_v7 = vsub.f32 %v8595_v6, %v7095_v46  ;;  %v3180_v41 = vmul.f32 1.442695, %v2809_v45  ;;  %v3194_v54 = vmul.f32 1.442695, %v2816_v52  ;;  %v8598_v6 = vld [vmem:[#allocation242_spill] sm:$0xff] }
 0x3bb   :  { %v3514_v48 = vadd.f32 %v4517_v53, %v3513_v47  ;;  %v4521_v42 = vpop.eup %4520  ;;  %4532 = vpow2.f32 %v3178_v39  ;;  %v3644_v2 = vadd.f32 %v4519_v9, %v3643_v56  ;;  %v2813_v39 = vsub.f32 %v8596_v34, %v7102_v29  ;;  %v8599_v34 = vld [vmem:[#allocation11_spill] sm:$0xff] }
 0x3bc   :  { %v4523_v21 = vpop.eup %4522  ;;  %4534 = vpow2.f32 %v3168_v18  ;;  %v2820_v18 = vsub.f32 %v8597_v27, %v7095_v46  ;;  %v3184_v57 = vmul.f32 1.442695, %v2811_v32  ;;  %v3198_v45 = vmul.f32 1.442695, %v2818_v7  ;;  %v8600_v27 = vld [vmem:[#allocation223_spill] sm:$0xff] }
 0x3bd   :  { %v3515_v0 = vadd.f32 %v4521_v42, %v3514_v48  ;;  %v4525_v1 = vpop.eup %4524  ;;  %4536 = vpow2.f32 %v3182_v24  ;;  %v3645_v47 = vadd.f32 %v4523_v21, %v3644_v2  ;;  %v2815_v24 = vsub.f32 %v8598_v6, %v7102_v29  ;;  %v8601_v6 = vld [vmem:[#allocation15_spill] sm:$0xff] }
 0x3be   :  { %v4527_v53 = vpop.eup %4526  ;;  %4538 = vpow2.f32 %v3172_v22  ;;  %v2822_v22 = vsub.f32 %v8599_v34, %v7095_v46  ;;  %v3188_v52 = vmul.f32 1.442695, %v2813_v39  ;;  %v3202_v32 = vmul.f32 1.442695, %v2820_v18  ;;  %v8602_v34 = vld [vmem:[#allocation177_spill] sm:$0xff] }
 0x3bf   :  { %v3516_v56 = vadd.f32 %v4525_v1, %v3515_v0  ;;  %v4529_v9 = vpop.eup %4528  ;;  %4540 = vpow2.f32 %v3186_v11  ;;  %v3646_v48 = vadd.f32 %v4527_v53, %v3645_v47  ;;  %v2817_v11 = vsub.f32 %v8600_v27, %v7102_v29  ;;  %v8603_v27 = vld [vmem:[#allocation19_spill] sm:$0xff] }
 0x3c0   :  { %v4531_v42 = vpop.eup %4530  ;;  %4542 = vpow2.f32 %v3176_v38  ;;  %v2824_v38 = vsub.f32 %v8601_v6, %v7095_v46  ;;  %v3192_v7 = vmul.f32 1.442695, %v2815_v24  ;;  %v3206_v39 = vmul.f32 1.442695, %v2822_v22  ;;  %v8604_v6 = vld [vmem:[#allocation231_spill] sm:$0xff] }
 0x3c1   :  { %v3517_v2 = vadd.f32 %v4529_v9, %v3516_v56  ;;  %v4533_v21 = vpop.eup %4532  ;;  %4544 = vpow2.f32 %v3190_v8  ;;  %v3647_v0 = vadd.f32 %v4531_v42, %v3646_v48  ;;  %v2819_v8 = vsub.f32 %v8602_v34, %v7102_v29  ;;  %v8605_v34 = vld [vmem:[#allocation23_spill] sm:$0xff] }
 0x3c2   :  { %v4535_v1 = vpop.eup %4534  ;;  %4546 = vpow2.f32 %v3180_v41  ;;  %v2826_v41 = vsub.f32 %v8603_v27, %v7095_v46  ;;  %v3196_v18 = vmul.f32 1.442695, %v2817_v11  ;;  %v3210_v24 = vmul.f32 1.442695, %v2824_v38  ;;  %v8606_v27 = vld [vmem:[#allocation10_spill] sm:$0xff] }
 0x3c3   :  { %v3518_v47 = vadd.f32 %v4533_v21, %v3517_v2  ;;  %v4537_v53 = vpop.eup %4536  ;;  %4548 = vpow2.f32 %v3194_v54  ;;  %v3648_v56 = vadd.f32 %v4535_v1, %v3647_v0  ;;  %v2821_v54 = vsub.f32 %v8604_v6, %v7102_v29  ;;  %v8607_v6 = vld [vmem:[#allocation27_spill] sm:$0xff] }
 0x3c4   :  { %v4539_v9 = vpop.eup %4538  ;;  %4550 = vpow2.f32 %v3184_v57  ;;  %v2828_v57 = vsub.f32 %v8605_v34, %v7095_v46  ;;  %v3200_v22 = vmul.f32 1.442695, %v2819_v8  ;;  %v3214_v11 = vmul.f32 1.442695, %v2826_v41  ;;  %v8608_v34 = vld [vmem:[#allocation14_spill] sm:$0xff] }
 0x3c5   :  { %v3519_v48 = vadd.f32 %v4537_v53, %v3518_v47  ;;  %v4541_v42 = vpop.eup %4540  ;;  %4552 = vpow2.f32 %v3198_v45  ;;  %v3649_v2 = vadd.f32 %v4539_v9, %v3648_v56  ;;  %v2823_v45 = vsub.f32 %v8606_v27, %v7102_v29  ;;  %v8609_v27 = vld [vmem:[#allocation31_spill] sm:$0xff] }
 0x3c6   :  { %v4543_v21 = vpop.eup %4542  ;;  %4554 = vpow2.f32 %v3188_v52  ;;  %v2830_v52 = vsub.f32 %v8607_v6, %v7095_v46  ;;  %v3204_v38 = vmul.f32 1.442695, %v2821_v54  ;;  %v3218_v8 = vmul.f32 1.442695, %v2828_v57  ;;  %v8610_v6 = vld [vmem:[#allocation18_spill] sm:$0xff] }
 0x3c7   :  { %v3520_v0 = vadd.f32 %v4541_v42, %v3519_v48  ;;  %v4545_v1 = vpop.eup %4544  ;;  %4556 = vpow2.f32 %v3202_v32  ;;  %v3650_v47 = vadd.f32 %v4543_v21, %v3649_v2  ;;  %v2825_v32 = vsub.f32 %v8608_v34, %v7102_v29  ;;  %v8611_v34 = vld [vmem:[#allocation35_spill] sm:$0xff] }
 0x3c8   :  { %v4547_v53 = vpop.eup %4546  ;;  %4558 = vpow2.f32 %v3192_v7  ;;  %v2832_v7 = vsub.f32 %v8609_v27, %v7095_v46  ;;  %v3208_v41 = vmul.f32 1.442695, %v2823_v45  ;;  %v3222_v54 = vmul.f32 1.442695, %v2830_v52  ;;  %v8612_v27 = vld [vmem:[#allocation22_spill] sm:$0xff] }
 0x3c9   :  { %v3521_v56 = vadd.f32 %v4545_v1, %v3520_v0  ;;  %v4549_v9 = vpop.eup %4548  ;;  %4560 = vpow2.f32 %v3206_v39  ;;  %v3651_v48 = vadd.f32 %v4547_v53, %v3650_v47  ;;  %v2827_v39 = vsub.f32 %v8610_v6, %v7102_v29  ;;  %v8613_v6 = vld [vmem:[#allocation39_spill] sm:$0xff] }
 0x3ca   :  { %v4551_v42 = vpop.eup %4550  ;;  %4562 = vpow2.f32 %v3196_v18  ;;  %v2834_v18 = vsub.f32 %v8611_v34, %v7095_v46  ;;  %v3212_v57 = vmul.f32 1.442695, %v2825_v32  ;;  %v3226_v45 = vmul.f32 1.442695, %v2832_v7  ;;  %v8614_v34 = vld [vmem:[#allocation26_spill] sm:$0xff] }
 0x3cb   :  { %v3522_v2 = vadd.f32 %v4549_v9, %v3521_v56  ;;  %v4553_v21 = vpop.eup %4552  ;;  %4564 = vpow2.f32 %v3210_v24  ;;  %v3652_v0 = vadd.f32 %v4551_v42, %v3651_v48  ;;  %v2829_v24 = vsub.f32 %v8612_v27, %v7102_v29  ;;  %v8615_v27 = vld [vmem:[#allocation43_spill] sm:$0xff] }
 0x3cc   :  { %v4555_v1 = vpop.eup %4554  ;;  %4566 = vpow2.f32 %v3200_v22  ;;  %v2836_v22 = vsub.f32 %v8613_v6, %v7095_v46  ;;  %v3216_v52 = vmul.f32 1.442695, %v2827_v39  ;;  %v3230_v32 = vmul.f32 1.442695, %v2834_v18  ;;  %v8616_v6 = vld [vmem:[#allocation30_spill] sm:$0xff] }
 0x3cd   :  { %v3523_v47 = vadd.f32 %v4553_v21, %v3522_v2  ;;  %v4557_v53 = vpop.eup %4556  ;;  %4568 = vpow2.f32 %v3214_v11  ;;  %v3653_v56 = vadd.f32 %v4555_v1, %v3652_v0  ;;  %v2831_v11 = vsub.f32 %v8614_v34, %v7102_v29  ;;  %v8617_v34 = vld [vmem:[#allocation47_spill] sm:$0xff] }
 0x3ce   :  { %v4559_v9 = vpop.eup %4558  ;;  %4570 = vpow2.f32 %v3204_v38  ;;  %v2838_v38 = vsub.f32 %v8615_v27, %v7095_v46  ;;  %v3220_v7 = vmul.f32 1.442695, %v2829_v24  ;;  %v3234_v39 = vmul.f32 1.442695, %v2836_v22  ;;  %v8618_v27 = vld [vmem:[#allocation34_spill] sm:$0xff] }
 0x3cf   :  { %v3524_v48 = vadd.f32 %v4557_v53, %v3523_v47  ;;  %v4561_v42 = vpop.eup %4560  ;;  %4572 = vpow2.f32 %v3218_v8  ;;  %v3654_v2 = vadd.f32 %v4559_v9, %v3653_v56  ;;  %v2833_v8 = vsub.f32 %v8616_v6, %v7102_v29  ;;  %v8619_v6 = vld [vmem:[#allocation38_spill] sm:$0xff] }
 0x3d0   :  { %v4563_v21 = vpop.eup %4562  ;;  %4574 = vpow2.f32 %v3208_v41  ;;  %v2840_v41 = vsub.f32 %v8617_v34, %v7095_v46  ;;  %v3224_v18 = vmul.f32 1.442695, %v2831_v11  ;;  %v3238_v24 = vmul.f32 1.442695, %v2838_v38  ;;  %v8620_v34 = vld [vmem:[#allocation55_spill] sm:$0xff] }
 0x3d1   :  { %v3525_v0 = vadd.f32 %v4561_v42, %v3524_v48  ;;  %v4565_v1 = vpop.eup %4564  ;;  %4576 = vpow2.f32 %v3222_v54  ;;  %v3655_v47 = vadd.f32 %v4563_v21, %v3654_v2  ;;  %v2835_v54 = vsub.f32 %v8618_v27, %v7102_v29 }
 0x3d2   :  { %v4567_v53 = vpop.eup %4566  ;;  %4578 = vpow2.f32 %v3212_v57  ;;  %v2842_v57 = vsub.f32 %v8399_v58, %v7095_v46  ;;  %v3228_v22 = vmul.f32 1.442695, %v2833_v8  ;;  %v3242_v11 = vmul.f32 1.442695, %v2840_v41  ;;  %v8621_v58 = vld [vmem:[#allocation42_spill] sm:$0xff] }
 0x3d3   :  { %v3526_v56 = vadd.f32 %v4565_v1, %v3525_v0  ;;  %v4569_v9 = vpop.eup %4568  ;;  %4580 = vpow2.f32 %v3226_v45  ;;  %v3656_v48 = vadd.f32 %v4567_v53, %v3655_v47  ;;  %v2837_v45 = vsub.f32 %v8619_v6, %v7102_v29 }
 0x3d4   :  { %v4571_v42 = vpop.eup %4570  ;;  %4582 = vpow2.f32 %v3216_v52  ;;  %v2844_v52 = vsub.f32 %v8620_v34, %v7095_v46  ;;  %v3232_v38 = vmul.f32 1.442695, %v2835_v54  ;;  %v3246_v8 = vmul.f32 1.442695, %v2842_v57 }
 0x3d5   :  { %v3527_v2 = vadd.f32 %v4569_v9, %v3526_v56  ;;  %v4573_v21 = vpop.eup %4572  ;;  %4584 = vpow2.f32 %v3230_v32  ;;  %v3657_v0 = vadd.f32 %v4571_v42, %v3656_v48  ;;  %v2839_v32 = vsub.f32 %v8621_v58, %v7102_v29 }
 0x3d6   :  { %v4575_v1 = vpop.eup %4574  ;;  %4586 = vpow2.f32 %v3220_v7  ;;  %v2846_v7 = vsub.f32 %v8403_v26, %v7095_v46  ;;  %v3236_v41 = vmul.f32 1.442695, %v2837_v45  ;;  %v3250_v54 = vmul.f32 1.442695, %v2844_v52  ;;  %v8623_v26 = vld [vmem:[#allocation50_spill] sm:$0xff] }
 0x3d7   :  { %v3528_v47 = vadd.f32 %v4573_v21, %v3527_v2  ;;  %v4577_v53 = vpop.eup %4576  ;;  %4588 = vpow2.f32 %v3234_v39  ;;  %v3658_v56 = vadd.f32 %v4575_v1, %v3657_v0  ;;  %v8622_v21 = vld [vmem:[#allocation46_spill] sm:$0xff]  ;;  %v3240_v57 = vmul.f32 1.442695, %v2839_v32 }
 0x3d8   :  { %v4579_v9 = vpop.eup %4578  ;;  %4590 = vpow2.f32 %v3224_v18  ;;  %v2841_v39 = vsub.f32 %v8622_v21, %v7102_v29  ;;  %v2848_v18 = vsub.f32 %v8405_v50, %v7095_v46  ;;  %v3254_v45 = vmul.f32 1.442695, %v2846_v7  ;;  %v8624_v50 = vld [vmem:[#allocation54_spill] sm:$0xff] }
 0x3d9   :  { %v3529_v48 = vadd.f32 %v4577_v53, %v3528_v47  ;;  %v4581_v42 = vpop.eup %4580  ;;  %4592 = vpow2.f32 %v3238_v24  ;;  %v3659_v27 = vadd.f32 %v4579_v9, %v3658_v56  ;;  %v2843_v24 = vsub.f32 %v8623_v26, %v7102_v29 }
 0x3da   :  { %v4583_v2 = vpop.eup %4582  ;;  %4594 = vpow2.f32 %v3228_v22  ;;  %v2850_v22 = vsub.f32 %v8407_v61, %v7095_v46  ;;  %v3244_v52 = vmul.f32 1.442695, %v2841_v39  ;;  %v3258_v32 = vmul.f32 1.442695, %v2848_v18  ;;  %v8625_v61 = vld [vmem:[#allocation58_spill] sm:$0xff] }
 0x3db   :  { %v3530_v0 = vadd.f32 %v4581_v42, %v3529_v48  ;;  %v4585_v1 = vpop.eup %4584  ;;  %4596 = vpow2.f32 %v3242_v11  ;;  %v3660_v6 = vadd.f32 %v4583_v2, %v3659_v27  ;;  %v2845_v11 = vsub.f32 %v8624_v50, %v7102_v29 }
 0x3dc   :  { %v4587_v47 = vpop.eup %4586  ;;  %4598 = vpow2.f32 %v3232_v38  ;;  %v2852_v38 = vsub.f32 %v8410_v30, %v7095_v46  ;;  %v3248_v7 = vmul.f32 1.442695, %v2843_v24  ;;  %v3262_v39 = vmul.f32 1.442695, %v2850_v22  ;;  %v8627_v30 = vld [vmem:[#allocation62_spill] sm:$0xff] }
 0x3dd   :  { %v3531_v53 = vadd.f32 %v4585_v1, %v3530_v0  ;;  %v4589_v34 = vpop.eup %4588  ;;  %4600 = vpow2.f32 %v3246_v8  ;;  %v3661_v56 = vadd.f32 %v4587_v47, %v3660_v6  ;;  %v2847_v8 = vsub.f32 %v8625_v61, %v7102_v29  ;;  %v8626_v0 = vld [vmem:[#allocation75_spill] sm:$0xff]  ;;  %v8631_v61 = vld [vmem:[#allocation70_spill] sm:$0xff] }
 0x3de   :  { %v4591_v9 = vpop.eup %4590  ;;  %4602 = vpow2.f32 %v3236_v41  ;;  %v2854_v41 = vsub.f32 %v8626_v0, %v7095_v46  ;;  %v3252_v18 = vmul.f32 1.442695, %v2845_v11  ;;  %v3266_v24 = vmul.f32 1.442695, %v2852_v38  ;;  %v8632_v0 = vld [vmem:[#allocation87_spill] sm:$0xff] }
 0x3df   :  { %v3532_v58 = vadd.f32 %v4589_v34, %v3531_v53  ;;  %v4593_v48 = vpop.eup %4592  ;;  %4604 = vpow2.f32 %v3250_v54  ;;  %v3662_v42 = vadd.f32 %v4591_v9, %v3661_v56  ;;  %v2849_v54 = vsub.f32 %v8627_v30, %v7102_v29  ;;  %v8628_v53 = vld [vmem:[#allocation79_spill] sm:$0xff]  ;;  %v8629_v9 = vld [vmem:[#allocation66_spill] sm:$0xff] }
 0x3e0   :  { %v4595_v27 = vpop.eup %4594  ;;  %4606 = vpow2.f32 %v3240_v57  ;;  %v2856_v57 = vsub.f32 %v8628_v53, %v7095_v46  ;;  %v3256_v22 = vmul.f32 1.442695, %v2847_v8  ;;  %v3270_v11 = vmul.f32 1.442695, %v2854_v41  ;;  %v8633_v30 = vld [vmem:[#allocation74_spill] sm:$0xff]  ;;  %v8634_v53 = vld [vmem:[#allocation91_spill] sm:$0xff] }
 0x3e1   :  { %v3533_v2 = vadd.f32 %v4593_v48, %v3532_v58  ;;  %v4597_v21 = vpop.eup %4596  ;;  %4608 = vpow2.f32 %v3254_v45  ;;  %v3663_v1 = vadd.f32 %v4595_v27, %v3662_v42  ;;  %v2851_v45 = vsub.f32 %v8629_v9, %v7102_v29  ;;  %v8630_v48 = vld [vmem:[#allocation83_spill] sm:$0xff]  ;;  %v8635_v9 = vld [vmem:[#allocation78_spill] sm:$0xff] }
 0x3e2   :  { %v4599_v6 = vpop.eup %4598  ;;  %4610 = vpow2.f32 %v3244_v52  ;;  %v2858_v52 = vsub.f32 %v8630_v48, %v7095_v46  ;;  %v3260_v38 = vmul.f32 1.442695, %v2849_v54  ;;  %v3274_v8 = vmul.f32 1.442695, %v2856_v57  ;;  %v8636_v48 = vld [vmem:[#allocation95_spill] sm:$0xff] }
 0x3e3   :  { %v3534_v47 = vadd.f32 %v4597_v21, %v3533_v2  ;;  %v4601_v26 = vpop.eup %4600  ;;  %4612 = vpow2.f32 %v3258_v32  ;;  %v3664_v34 = vadd.f32 %v4599_v6, %v3663_v1  ;;  %v2853_v32 = vsub.f32 %v8631_v61, %v7102_v29  ;;  %v8637_v61 = vld [vmem:[#allocation82_spill] sm:$0xff] }
 0x3e4   :  { %v4603_v56 = vpop.eup %4602  ;;  %4614 = vpow2.f32 %v3248_v7  ;;  %v2860_v7 = vsub.f32 %v8632_v0, %v7095_v46  ;;  %v3264_v41 = vmul.f32 1.442695, %v2851_v45  ;;  %v3278_v54 = vmul.f32 1.442695, %v2858_v52  ;;  %v8638_v0 = vld [vmem:[#allocation99_spill] sm:$0xff] }
 0x3e5   :  { %v3535_v50 = vadd.f32 %v4601_v26, %v3534_v47  ;;  %v4605_v58 = vpop.eup %4604  ;;  %4616 = vpow2.f32 %v3262_v39  ;;  %v3665_v42 = vadd.f32 %v4603_v56, %v3664_v34  ;;  %v2855_v39 = vsub.f32 %v8633_v30, %v7102_v29  ;;  %v8639_v30 = vld [vmem:[#allocation86_spill] sm:$0xff] }
 0x3e6   :  { %v4607_v27 = vpop.eup %4606  ;;  %4618 = vpow2.f32 %v3252_v18  ;;  %v2862_v18 = vsub.f32 %v8634_v53, %v7095_v46  ;;  %v3268_v57 = vmul.f32 1.442695, %v2853_v32  ;;  %v3282_v45 = vmul.f32 1.442695, %v2860_v7  ;;  %v8640_v53 = vld [vmem:[#allocation103_spill] sm:$0xff] }
 0x3e7   :  { %v3536_v2 = vadd.f32 %v4605_v58, %v3535_v50  ;;  %v4609_v21 = vpop.eup %4608  ;;  %4620 = vpow2.f32 %v3266_v24  ;;  %v3666_v1 = vadd.f32 %v4607_v27, %v3665_v42  ;;  %v2857_v24 = vsub.f32 %v8635_v9, %v7102_v29  ;;  %v8641_v9 = vld [vmem:[#allocation90_spill] sm:$0xff] }
 0x3e8   :  { %v4611_v6 = vpop.eup %4610  ;;  %4622 = vpow2.f32 %v3256_v22  ;;  %v2864_v22 = vsub.f32 %v8636_v48, %v7095_v46  ;;  %v3272_v52 = vmul.f32 1.442695, %v2855_v39  ;;  %v3286_v32 = vmul.f32 1.442695, %v2862_v18  ;;  %v8642_v48 = vld [vmem:[#allocation107_spill] sm:$0xff] }
 0x3e9   :  { %v3537_v47 = vadd.f32 %v4609_v21, %v3536_v2  ;;  %v4613_v26 = vpop.eup %4612  ;;  %4624 = vpow2.f32 %v3270_v11  ;;  %v3667_v34 = vadd.f32 %v4611_v6, %v3666_v1  ;;  %v2859_v11 = vsub.f32 %v8637_v61, %v7102_v29  ;;  %v8643_v61 = vld [vmem:[#allocation94_spill] sm:$0xff] }
 0x3ea   :  { %v4615_v56 = vpop.eup %4614  ;;  %4626 = vpow2.f32 %v3260_v38  ;;  %v2866_v38 = vsub.f32 %v8638_v0, %v7095_v46  ;;  %v3276_v7 = vmul.f32 1.442695, %v2857_v24  ;;  %v3290_v39 = vmul.f32 1.442695, %v2864_v22  ;;  %v8644_v0 = vld [vmem:[#allocation111_spill] sm:$0xff] }
 0x3eb   :  { %v3538_v50 = vadd.f32 %v4613_v26, %v3537_v47  ;;  %v4617_v58 = vpop.eup %4616  ;;  %4628 = vpow2.f32 %v3274_v8  ;;  %v3668_v42 = vadd.f32 %v4615_v56, %v3667_v34  ;;  %v2861_v8 = vsub.f32 %v8639_v30, %v7102_v29  ;;  %v8645_v30 = vld [vmem:[#allocation98_spill] sm:$0xff] }
 0x3ec   :  { %v4619_v27 = vpop.eup %4618  ;;  %4630 = vpow2.f32 %v3264_v41  ;;  %v2868_v41 = vsub.f32 %v8640_v53, %v7095_v46  ;;  %v3280_v18 = vmul.f32 1.442695, %v2859_v11  ;;  %v3294_v24 = vmul.f32 1.442695, %v2866_v38  ;;  %v8646_v53 = vld [vmem:[#allocation115_spill] sm:$0xff] }
 0x3ed   :  { %v3539_v2 = vadd.f32 %v4617_v58, %v3538_v50  ;;  %v4621_v21 = vpop.eup %4620  ;;  %4632 = vpow2.f32 %v3278_v54  ;;  %v3669_v1 = vadd.f32 %v4619_v27, %v3668_v42  ;;  %v2863_v54 = vsub.f32 %v8641_v9, %v7102_v29  ;;  %v8647_v9 = vld [vmem:[#allocation102_spill] sm:$0xff] }
 0x3ee   :  { %v4623_v6 = vpop.eup %4622  ;;  %4634 = vpow2.f32 %v3268_v57  ;;  %v2870_v57 = vsub.f32 %v8642_v48, %v7095_v46  ;;  %v3284_v22 = vmul.f32 1.442695, %v2861_v8  ;;  %v3298_v11 = vmul.f32 1.442695, %v2868_v41  ;;  %v8648_v48 = vld [vmem:[#allocation119_spill] sm:$0xff] }
 0x3ef   :  { %v3540_v47 = vadd.f32 %v4621_v21, %v3539_v2  ;;  %v4625_v26 = vpop.eup %4624  ;;  %4636 = vpow2.f32 %v3282_v45  ;;  %v3670_v34 = vadd.f32 %v4623_v6, %v3669_v1  ;;  %v2865_v45 = vsub.f32 %v8643_v61, %v7102_v29  ;;  %v8649_v61 = vld [vmem:[#allocation106_spill] sm:$0xff] }
 0x3f0   :  { %v4627_v56 = vpop.eup %4626  ;;  %4638 = vpow2.f32 %v3272_v52  ;;  %v2872_v52 = vsub.f32 %v8644_v0, %v7095_v46  ;;  %v3288_v38 = vmul.f32 1.442695, %v2863_v54  ;;  %v3302_v8 = vmul.f32 1.442695, %v2870_v57  ;;  %v8650_v0 = vld [vmem:[#allocation123_spill] sm:$0xff] }
 0x3f1   :  { %v3541_v50 = vadd.f32 %v4625_v26, %v3540_v47  ;;  %v4629_v58 = vpop.eup %4628  ;;  %4640 = vpow2.f32 %v3286_v32  ;;  %v3671_v42 = vadd.f32 %v4627_v56, %v3670_v34  ;;  %v2867_v32 = vsub.f32 %v8645_v30, %v7102_v29  ;;  %v8651_v30 = vld [vmem:[#allocation110_spill] sm:$0xff] }
 0x3f2   :  { %v4631_v27 = vpop.eup %4630  ;;  %4642 = vpow2.f32 %v3276_v7  ;;  %v2874_v7 = vsub.f32 %v8646_v53, %v7095_v46  ;;  %v3292_v41 = vmul.f32 1.442695, %v2865_v45  ;;  %v3306_v54 = vmul.f32 1.442695, %v2872_v52  ;;  %v8652_v53 = vld [vmem:[#allocation127_spill] sm:$0xff] }
 0x3f3   :  { %v3542_v2 = vadd.f32 %v4629_v58, %v3541_v50  ;;  %v4633_v21 = vpop.eup %4632  ;;  %4644 = vpow2.f32 %v3290_v39  ;;  %v3672_v1 = vadd.f32 %v4631_v27, %v3671_v42  ;;  %v2869_v39 = vsub.f32 %v8647_v9, %v7102_v29  ;;  %v8653_v9 = vld [vmem:[#allocation114_spill] sm:$0xff] }
 0x3f4   :  { %v4635_v6 = vpop.eup %4634  ;;  %4646 = vpow2.f32 %v3280_v18  ;;  %v2876_v18 = vsub.f32 %v8648_v48, %v7095_v46  ;;  %v3296_v57 = vmul.f32 1.442695, %v2867_v32  ;;  %v3310_v45 = vmul.f32 1.442695, %v2874_v7  ;;  %v8654_v48 = vld [vmem:[#allocation131_spill] sm:$0xff] }
 0x3f5   :  { %v3543_v47 = vadd.f32 %v4633_v21, %v3542_v2  ;;  %v4637_v26 = vpop.eup %4636  ;;  %4648 = vpow2.f32 %v3294_v24  ;;  %v3673_v34 = vadd.f32 %v4635_v6, %v3672_v1  ;;  %v2871_v24 = vsub.f32 %v8649_v61, %v7102_v29  ;;  %v8655_v61 = vld [vmem:[#allocation118_spill] sm:$0xff] }
 0x3f6   :  { %v4639_v56 = vpop.eup %4638  ;;  %4650 = vpow2.f32 %v3284_v22  ;;  %v2878_v22 = vsub.f32 %v8650_v0, %v7095_v46  ;;  %v3300_v52 = vmul.f32 1.442695, %v2869_v39  ;;  %v3314_v32 = vmul.f32 1.442695, %v2876_v18  ;;  %v8656_v0 = vld [vmem:[#allocation135_spill] sm:$0xff] }
 0x3f7   :  { %v3544_v50 = vadd.f32 %v4637_v26, %v3543_v47  ;;  %v4641_v58 = vpop.eup %4640  ;;  %4652 = vpow2.f32 %v3298_v11  ;;  %v3674_v42 = vadd.f32 %v4639_v56, %v3673_v34  ;;  %v2873_v11 = vsub.f32 %v8651_v30, %v7102_v29  ;;  %v8657_v30 = vld [vmem:[#allocation122_spill] sm:$0xff] }
 0x3f8   :  { %v4643_v27 = vpop.eup %4642  ;;  %4654 = vpow2.f32 %v3288_v38  ;;  %v2880_v38 = vsub.f32 %v8652_v53, %v7095_v46  ;;  %v3304_v7 = vmul.f32 1.442695, %v2871_v24  ;;  %v3318_v39 = vmul.f32 1.442695, %v2878_v22  ;;  %v8658_v53 = vld [vmem:[#allocation139_spill] sm:$0xff] }
 0x3f9   :  { %v3545_v2 = vadd.f32 %v4641_v58, %v3544_v50  ;;  %v4645_v21 = vpop.eup %4644  ;;  %4656 = vpow2.f32 %v3302_v8  ;;  %v3675_v1 = vadd.f32 %v4643_v27, %v3674_v42  ;;  %v2875_v8 = vsub.f32 %v8653_v9, %v7102_v29  ;;  %v8659_v9 = vld [vmem:[#allocation126_spill] sm:$0xff] }
 0x3fa   :  { %v4647_v6 = vpop.eup %4646  ;;  %4658 = vpow2.f32 %v3292_v41  ;;  %v2882_v41 = vsub.f32 %v8654_v48, %v7095_v46  ;;  %v3308_v18 = vmul.f32 1.442695, %v2873_v11  ;;  %v3322_v24 = vmul.f32 1.442695, %v2880_v38  ;;  %v8660_v48 = vld [vmem:[#allocation143_spill] sm:$0xff] }
 0x3fb   :  { %v3546_v47 = vadd.f32 %v4645_v21, %v3545_v2  ;;  %v4649_v26 = vpop.eup %4648  ;;  %4660 = vpow2.f32 %v3306_v54  ;;  %v3676_v34 = vadd.f32 %v4647_v6, %v3675_v1  ;;  %v2877_v54 = vsub.f32 %v8655_v61, %v7102_v29  ;;  %v8661_v61 = vld [vmem:[#allocation130_spill] sm:$0xff] }
 0x3fc   :  { %v4651_v56 = vpop.eup %4650  ;;  %4662 = vpow2.f32 %v3296_v57  ;;  %v2884_v57 = vsub.f32 %v8656_v0, %v7095_v46  ;;  %v3312_v22 = vmul.f32 1.442695, %v2875_v8  ;;  %v3326_v11 = vmul.f32 1.442695, %v2882_v41  ;;  %v8662_v0 = vld [vmem:[#allocation147_spill] sm:$0xff] }
 0x3fd   :  { %v3547_v50 = vadd.f32 %v4649_v26, %v3546_v47  ;;  %v4653_v58 = vpop.eup %4652  ;;  %4664 = vpow2.f32 %v3310_v45  ;;  %v3677_v42 = vadd.f32 %v4651_v56, %v3676_v34  ;;  %v2879_v45 = vsub.f32 %v8657_v30, %v7102_v29  ;;  %v8663_v30 = vld [vmem:[#allocation134_spill] sm:$0xff] }
 0x3fe   :  { %v4655_v27 = vpop.eup %4654  ;;  %4666 = vpow2.f32 %v3300_v52  ;;  %v2886_v52 = vsub.f32 %v8658_v53, %v7095_v46  ;;  %v3316_v38 = vmul.f32 1.442695, %v2877_v54  ;;  %v3330_v8 = vmul.f32 1.442695, %v2884_v57  ;;  %v8664_v53 = vld [vmem:[#allocation151_spill] sm:$0xff] }
 0x3ff   :  { %v3548_v2 = vadd.f32 %v4653_v58, %v3547_v50  ;;  %v4657_v21 = vpop.eup %4656  ;;  %4668 = vpow2.f32 %v3314_v32  ;;  %v3678_v1 = vadd.f32 %v4655_v27, %v3677_v42  ;;  %v2881_v32 = vsub.f32 %v8659_v9, %v7102_v29  ;;  %v8665_v9 = vld [vmem:[#allocation138_spill] sm:$0xff] }
 0x400   :  { %v4659_v6 = vpop.eup %4658  ;;  %4670 = vpow2.f32 %v3304_v7  ;;  %v2888_v7 = vsub.f32 %v8660_v48, %v7095_v46  ;;  %v3320_v41 = vmul.f32 1.442695, %v2879_v45  ;;  %v3334_v54 = vmul.f32 1.442695, %v2886_v52  ;;  %v8666_v48 = vld [vmem:[#allocation155_spill] sm:$0xff] }
 0x401   :  { %v3549_v47 = vadd.f32 %v4657_v21, %v3548_v2  ;;  %v4661_v26 = vpop.eup %4660  ;;  %4672 = vpow2.f32 %v3318_v39  ;;  %v3679_v34 = vadd.f32 %v4659_v6, %v3678_v1  ;;  %v2883_v39 = vsub.f32 %v8661_v61, %v7102_v29  ;;  %v8667_v61 = vld [vmem:[#allocation142_spill] sm:$0xff] }
 0x402   :  { %v4663_v56 = vpop.eup %4662  ;;  %4674 = vpow2.f32 %v3308_v18  ;;  %v2890_v18 = vsub.f32 %v8662_v0, %v7095_v46  ;;  %v3324_v57 = vmul.f32 1.442695, %v2881_v32  ;;  %v3338_v45 = vmul.f32 1.442695, %v2888_v7  ;;  %v8668_v0 = vld [vmem:[#allocation159_spill] sm:$0xff] }
 0x403   :  { %v3550_v50 = vadd.f32 %v4661_v26, %v3549_v47  ;;  %v4665_v58 = vpop.eup %4664  ;;  %4676 = vpow2.f32 %v3322_v24  ;;  %v3680_v42 = vadd.f32 %v4663_v56, %v3679_v34  ;;  %v2885_v24 = vsub.f32 %v8663_v30, %v7102_v29  ;;  %v8669_v30 = vld [vmem:[#allocation146_spill] sm:$0xff] }
 0x404   :  { %v4667_v27 = vpop.eup %4666  ;;  %4678 = vpow2.f32 %v3312_v22  ;;  %v2892_v22 = vsub.f32 %v8664_v53, %v7095_v46  ;;  %v3328_v52 = vmul.f32 1.442695, %v2883_v39  ;;  %v3342_v32 = vmul.f32 1.442695, %v2890_v18  ;;  %v8670_v53 = vld [vmem:[#allocation163_spill] sm:$0xff] }
 0x405   :  { %v3551_v2 = vadd.f32 %v4665_v58, %v3550_v50  ;;  %v4669_v21 = vpop.eup %4668  ;;  %4680 = vpow2.f32 %v3326_v11  ;;  %v3681_v1 = vadd.f32 %v4667_v27, %v3680_v42  ;;  %v2887_v11 = vsub.f32 %v8665_v9, %v7102_v29  ;;  %v8671_v9 = vld [vmem:[#allocation150_spill] sm:$0xff] }
 0x406   :  { %v4671_v6 = vpop.eup %4670  ;;  %4682 = vpow2.f32 %v3316_v38  ;;  %v2894_v38 = vsub.f32 %v8666_v48, %v7095_v46  ;;  %v3332_v7 = vmul.f32 1.442695, %v2885_v24  ;;  %v3346_v39 = vmul.f32 1.442695, %v2892_v22 }
 0x407   :  { %v3552_v47 = vadd.f32 %v4669_v21, %v3551_v2  ;;  %v4673_v26 = vpop.eup %4672  ;;  %4684 = vpow2.f32 %v3330_v8  ;;  %v3682_v34 = vadd.f32 %v4671_v6, %v3681_v1  ;;  %v2889_v8 = vsub.f32 %v8667_v61, %v7102_v29 }
 0x408   :  { %v4675_v56 = vpop.eup %4674  ;;  %4686 = vpow2.f32 %v3320_v41  ;;  %v2896_v41 = vsub.f32 %v8668_v0, %v7095_v46  ;;  %v3336_v18 = vmul.f32 1.442695, %v2887_v11  ;;  %v3350_v24 = vmul.f32 1.442695, %v2894_v38 }
 0x409   :  { %v3553_v50 = vadd.f32 %v4673_v26, %v3552_v47  ;;  %v4677_v58 = vpop.eup %4676  ;;  %4688 = vpow2.f32 %v3334_v54  ;;  %v3683_v42 = vadd.f32 %v4675_v56, %v3682_v34  ;;  %v2891_v54 = vsub.f32 %v8669_v30, %v7102_v29 }
 0x40a   :  { %v4679_v27 = vpop.eup %4678  ;;  %4690 = vpow2.f32 %v3324_v57  ;;  %v2898_v57 = vsub.f32 %v8670_v53, %v7095_v46  ;;  %v3340_v22 = vmul.f32 1.442695, %v2889_v8  ;;  %v3354_v11 = vmul.f32 1.442695, %v2896_v41 }
 0x40b   :  { %v3554_v2 = vadd.f32 %v4677_v58, %v3553_v50  ;;  %v4681_v21 = vpop.eup %4680  ;;  %4692 = vpow2.f32 %v3338_v45  ;;  %v3684_v1 = vadd.f32 %v4679_v27, %v3683_v42  ;;  %v2893_v45 = vsub.f32 %v8671_v9, %v7102_v29  ;;  %v8672_v27 = vld [vmem:[#allocation154_spill] sm:$0xff] }
 0x40c   :  { %v4683_v6 = vpop.eup %4682  ;;  %4694 = vpow2.f32 %v3328_v52  ;;  %v2900_v52 = vsub.f32 %v8459_v40, %v7095_v46  ;;  %v3344_v38 = vmul.f32 1.442695, %v2891_v54  ;;  %v3358_v8 = vmul.f32 1.442695, %v2898_v57  ;;  %v8673_v40 = vld [vmem:[#allocation158_spill] sm:$0xff] }
 0x40d   :  { %v3555_v47 = vadd.f32 %v4681_v21, %v3554_v2  ;;  %v4685_v26 = vpop.eup %4684  ;;  %4696 = vpow2.f32 %v3342_v32  ;;  %v3685_v34 = vadd.f32 %v4683_v6, %v3684_v1  ;;  %v2895_v32 = vsub.f32 %v8672_v27, %v7102_v29 }
 0x40e   :  { %v4687_v56 = vpop.eup %4686  ;;  %4698 = vpow2.f32 %v3332_v7  ;;  %v2902_v7 = vsub.f32 %v8461_v31, %v7095_v46  ;;  %v3348_v41 = vmul.f32 1.442695, %v2893_v45  ;;  %v2904_v30 = vsub.f32 %v8323_v62, %v7095_v46  ;;  %v8674_v31 = vld [vmem:[#allocation162_spill] sm:$0xff] }
 0x40f   :  { %v3556_v50 = vadd.f32 %v4685_v26, %v3555_v47  ;;  %v4689_v58 = vpop.eup %4688  ;;  %4700 = vpow2.f32 %v3346_v39  ;;  %v3686_v48 = vadd.f32 %v4687_v56, %v3685_v34  ;;  %v2897_v39 = vsub.f32 %v8673_v40, %v7102_v29 }
 0x410   :  { %v4691_v42 = vpop.eup %4690  ;;  %4702 = vpow2.f32 %v3336_v18  ;;  %v3362_v54 = vmul.f32 1.442695, %v2900_v52  ;;  %v2899_v26 = vsub.f32 %v8674_v31, %v7102_v29  ;;  %v3352_v53 = vmul.f32 1.442695, %v2895_v32 }
 0x411   :  { %v3557_v61 = vadd.f32 %v4689_v58, %v3556_v50  ;;  %v4693_v2 = vpop.eup %4692  ;;  %4704 = vpow2.f32 %v3350_v24  ;;  %v3687_v21 = vadd.f32 %v4691_v42, %v3686_v48  ;;  %v2906_v34 = vsub.f32 %v5690_v49, %v7095_v46 }
 0x412   :  { %v4695_v0 = vpop.eup %4694  ;;  %4706 = vpow2.f32 %v3340_v22  ;;  %v3366_v56 = vmul.f32 1.442695, %v2902_v7  ;;  %v2901_v62 = vsub.f32 %v8458_v37, %v7102_v29  ;;  %v3356_v22 = vmul.f32 1.442695, %v2897_v39 }
 0x413   :  { %v3558_v1 = vadd.f32 %v4693_v2, %v3557_v61  ;;  %v4697_v6 = vpop.eup %4696  ;;  %4708 = vpow2.f32 %v3354_v11  ;;  %v3688_v18 = vadd.f32 %v4695_v0, %v3687_v21  ;;  %v2908_v52 = vsub.f32 %v5746_v51, %v7095_v46 }
 0x414   :  { %v4699_v47 = vpop.eup %4698  ;;  %4710 = vpow2.f32 %v3344_v38  ;;  %v3370_v11 = vmul.f32 1.442695, %v2904_v30  ;;  %v2903_v49 = vsub.f32 %v8460_v28, %v7102_v29  ;;  %v3360_v27 = vmul.f32 1.442695, %v2899_v26 }
 0x415   :  { %v3559_v57 = vadd.f32 %v4697_v6, %v3558_v1  ;;  %v4701_v24 = vpop.eup %4700  ;;  %4712 = vpow2.f32 %v3358_v8  ;;  %v3689_v9 = vadd.f32 %v4699_v47, %v3688_v18  ;;  %v2910_v37 = vsub.f32 %v5802_v14, %v7095_v46 }
 0x416   :  { %v4703_v45 = vpop.eup %4702  ;;  %4714 = vpow2.f32 %v3348_v41  ;;  %v3374_v61 = vmul.f32 1.442695, %v2906_v34  ;;  %v2905_v51 = vsub.f32 %v8322_v13, %v7102_v29  ;;  %v3364_v8 = vmul.f32 1.442695, %v2901_v62 }
 0x417   :  { %v3560_v50 = vadd.f32 %v4701_v24, %v3559_v57  ;;  %v4705_v58 = vpop.eup %4704  ;;  %4716 = vpow2.f32 %v3362_v54  ;;  %v3690_v48 = vadd.f32 %v4703_v45, %v3689_v9  ;;  %v2912_v28 = vsub.f32 %v5855_v5, %v7095_v46 }
 0x418   :  { %v4707_v42 = vpop.eup %4706  ;;  %4718 = vpow2.f32 %v3352_v53  ;;  %v3378_v40 = vmul.f32 1.442695, %v2908_v52  ;;  %v2907_v14 = vsub.f32 %v5688_v59, %v7102_v29  ;;  %v3368_v1 = vmul.f32 1.442695, %v2903_v49 }
 0x419   :  { %v3561_v32 = vadd.f32 %v4705_v58, %v3560_v50  ;;  %v4709_v38 = vpop.eup %4708  ;;  %4720 = vpow2.f32 %v3366_v56  ;;  %v3691_v2 = vadd.f32 %v4707_v42, %v3690_v48  ;;  %v2914_v13 = vsub.f32 %v5913_v43, %v7095_v46  ;;  %v8675_v43 = vld [vmem:[#allocation189_spill] sm:$0xff] }
 0x41a   :  { %v4711_v7 = vpop.eup %4710  ;;  %4722 = vpow2.f32 %v3356_v22  ;;  %v3382_v54 = vmul.f32 1.442695, %v2910_v37  ;;  %v2909_v5 = vsub.f32 %v5744_v55, %v7102_v29  ;;  %v3372_v31 = vmul.f32 1.442695, %v2905_v51  ;;  %v8676_v55 = vld [vmem:[#allocation203_spill] sm:$0xff] }
 0x41b   :  { %v3562_v21 = vadd.f32 %v4709_v38, %v3561_v32  ;;  %v4713_v0 = vpop.eup %4712  ;;  %4724 = vpow2.f32 %v3370_v11  ;;  %v3692_v39 = vadd.f32 %v4711_v7, %v3691_v2  ;;  %v2916_v59 = vsub.f32 %v5960_v16, %v7095_v46  ;;  %v8677_v16 = vld [vmem:[#allocation192_spill] sm:$0xff] }
 0x41c   :  { %v4715_v41 = vpop.eup %4714  ;;  %4726 = vpow2.f32 %v3360_v27  ;;  %v3386_v57 = vmul.f32 1.442695, %v2912_v28  ;;  %v2911_v56 = vsub.f32 %v8675_v43, %v7102_v29  ;;  %v3376_v9 = vmul.f32 1.442695, %v2907_v14  ;;  %v8678_v27 = vld [vmem:[#allocation207_spill] sm:$0xff]  ;;  %v8679_v2 = vld [vmem:[#allocation196_spill] sm:$0xff] }
 0x41d   :  { %v3563_v6 = vadd.f32 %v4713_v0, %v3562_v21  ;;  %v4717_v30 = vpop.eup %4716  ;;  %4728 = vpow2.f32 %v3374_v61  ;;  %v3693_v18 = vadd.f32 %v4715_v41, %v3692_v39  ;;  %v2918_v22 = vsub.f32 %v8676_v55, %v7095_v46  ;;  %v8680_v0 = vld [vmem:[#allocation211_spill] sm:$0xff] }
 0x41e   :  { %v4719_v47 = vpop.eup %4718  ;;  %4730 = vpow2.f32 %v3364_v8  ;;  %v3390_v50 = vmul.f32 1.442695, %v2914_v13  ;;  %v2913_v11 = vsub.f32 %v8677_v16, %v7102_v29  ;;  %v3380_v48 = vmul.f32 1.442695, %v2909_v5  ;;  %v8681_v14 = vld [vmem:[#allocation199_spill] sm:$0xff] }
 0x41f   :  { %v3564_v26 = vadd.f32 %v4717_v30, %v3563_v6  ;;  %v4721_v53 = vpop.eup %4720  ;;  %4732 = vpow2.f32 %v3378_v40  ;;  %v3694_v24 = vadd.f32 %v4719_v47, %v3693_v18  ;;  %v2920_v32 = vsub.f32 %v8678_v27, %v7095_v46 }
 0x420   :  { %v4723_v34 = vpop.eup %4722  ;;  %4734 = vpow2.f32 %v3368_v1  ;;  %v3394_v38 = vmul.f32 1.442695, %v2916_v59  ;;  %v2915_v7 = vsub.f32 %v8679_v2, %v7102_v29  ;;  %v3384_v51 = vmul.f32 1.442695, %v2911_v56 }
 0x421   :  { %v3565_v45 = vadd.f32 %v4721_v53, %v3564_v26  ;;  %v4725_v62 = vpop.eup %4724  ;;  %4736 = vpow2.f32 %v3382_v54  ;;  %v3695_v58 = vadd.f32 %v4723_v34, %v3694_v24  ;;  %v2922_v28 = vsub.f32 %v8680_v0, %v7095_v46 }
 0x422   :  { %v4727_v52 = vpop.eup %4726  ;;  %4738 = vpow2.f32 %v3372_v31  ;;  %v3398_v40 = vmul.f32 1.442695, %v2918_v22  ;;  %v2917_v1 = vsub.f32 %v8681_v14, %v7102_v29  ;;  %v3388_v6 = vmul.f32 1.442695, %v2913_v11  ;;  %v8682_v31 = vld [vmem:[#allocation202_spill] sm:$0xff] }
 0x423   :  { %v3566_v42 = vadd.f32 %v4725_v62, %v3565_v45  ;;  %v4729_v49 = vpop.eup %4728  ;;  %4740 = vpow2.f32 %v3386_v57  ;;  %v3696_v37 = vadd.f32 %v4727_v52, %v3695_v58  ;;  %v2924_v54 = vsub.f32 %v8469_v17, %v7095_v46  ;;  %v8683_v17 = vld [vmem:[#allocation206_spill] sm:$0xff] }
 0x424   :  { %v4731_v61 = vpop.eup %4730  ;;  %4742 = vpow2.f32 %v3376_v9  ;;  %v3402_v18 = vmul.f32 1.442695, %v2920_v32  ;;  %v2919_v26 = vsub.f32 %v8682_v31, %v7102_v29  ;;  %v3392_v53 = vmul.f32 1.442695, %v2915_v7 }
 0x425   :  { %v3567_v8 = vadd.f32 %v4729_v49, %v3566_v42  ;;  %v4733_v21 = vpop.eup %4732  ;;  %4744 = vpow2.f32 %v3390_v50  ;;  %v3697_v39 = vadd.f32 %v4731_v61, %v3696_v37  ;;  %v2926_v24 = vsub.f32 %v8471_v15, %v7095_v46  ;;  %v8684_v15 = vld [vmem:[#allocation210_spill] sm:$0xff] }
 0x426   :  { %v4735_v41 = vpop.eup %4734  ;;  %4746 = vpow2.f32 %v3380_v48  ;;  %v3406_v34 = vmul.f32 1.442695, %v2922_v28  ;;  %v2921_v9 = vsub.f32 %v8683_v17, %v7102_v29  ;;  %v3396_v45 = vmul.f32 1.442695, %v2917_v1 }
 0x427   :  { %v3568_v30 = vadd.f32 %v4733_v21, %v3567_v8  ;;  %v4737_v13 = vpop.eup %4736  ;;  %4748 = vpow2.f32 %v3394_v38  ;;  %v3698_v47 = vadd.f32 %v4735_v41, %v3697_v39  ;;  %v2928_v22 = vsub.f32 %v8351_v33, %v7095_v46 }
 0x428   :  { %v4739_v5 = vpop.eup %4738  ;;  %4750 = vpow2.f32 %v3384_v51  ;;  %v3410_v50 = vmul.f32 1.442695, %v2924_v54  ;;  %v2923_v16 = vsub.f32 %v8684_v15, %v7102_v29  ;;  %v3400_v11 = vmul.f32 1.442695, %v2919_v26 }
 0x429   :  { %v3569_v59 = vadd.f32 %v4737_v13, %v3568_v30  ;;  %v4741_v57 = vpop.eup %4740  ;;  %4752 = vpow2.f32 %v3398_v40  ;;  %v3699_v43 = vadd.f32 %v4739_v5, %v3698_v47  ;;  %v2930_v49 = vsub.f32 %v8353_v10, %v7095_v46 }
 0x42a   :  { %v4743_v56 = vpop.eup %4742  ;;  %4754 = vpow2.f32 %v3388_v6  ;;  %v3414_v27 = vmul.f32 1.442695, %v2926_v24  ;;  %v2925_v33 = vsub.f32 %v8468_v63, %v7102_v29  ;;  %v3404_v37 = vmul.f32 1.442695, %v2921_v9 }
 0x42b   :  { %v3570_v62 = vadd.f32 %v4741_v57, %v3569_v59  ;;  %v4745_v55 = vpop.eup %4744  ;;  %4756 = vpow2.f32 %v3402_v18  ;;  %v3700_v58 = vadd.f32 %v4743_v56, %v3699_v43  ;;  %v2932_v7 = vsub.f32 %v8371_v23, %v7095_v46 }
 0x42c   :  { %v4747_v52 = vpop.eup %4746  ;;  %4758 = vpow2.f32 %v3392_v53  ;;  %v3418_v51 = vmul.f32 1.442695, %v2928_v22  ;;  %v2927_v10 = vsub.f32 %v8470_v25, %v7102_v29  ;;  %v3408_v0 = vmul.f32 1.442695, %v2923_v16 }
 0x42d   :  { %v3571_v48 = vadd.f32 %v4745_v55, %v3570_v62  ;;  %v4749_v42 = vpop.eup %4748  ;;  %4760 = vpow2.f32 %v3406_v34  ;;  %v3701_v32 = vadd.f32 %v4747_v52, %v3700_v58  ;;  %v2934_v63 = vsub.f32 %v6371_v12, %v7095_v46 }
 0x42e   :  { %v4751_v38 = vpop.eup %4750  ;;  %4762 = vpow2.f32 %v3396_v45  ;;  %v3422_v39 = vmul.f32 1.442695, %v2930_v49  ;;  %v2929_v23 = vsub.f32 %v8350_v44, %v7102_v29  ;;  %v3412_v1 = vmul.f32 1.442695, %v2925_v33 }
 0x42f   :  { %v3572_v61 = vadd.f32 %v4749_v42, %v3571_v48  ;;  %v4753_v2 = vpop.eup %4752  ;;  %4764 = vpow2.f32 %v3410_v50  ;;  %v3702_v8 = vadd.f32 %v4751_v38, %v3701_v32  ;;  %v2936_v25 = vsub.f32 %v6417_v36, %v7095_v46 }
 0x430   :  { %v4755_v21 = vpop.eup %4754  ;;  %4766 = vpow2.f32 %v3400_v11  ;;  %v3426_v13 = vmul.f32 1.442695, %v2932_v7  ;;  %v2931_v12 = vsub.f32 %v8361_v20, %v7102_v29  ;;  %v3416_v47 = vmul.f32 1.442695, %v2927_v10 }
 0x431   :  { %v3573_v28 = vadd.f32 %v4753_v2, %v3572_v61  ;;  %v4757_v40 = vpop.eup %4756  ;;  %4768 = vpow2.f32 %v3414_v27  ;;  %v3703_v41 = vadd.f32 %v4755_v21, %v3702_v8  ;;  %v2938_v44 = vsub.f32 %v6464_v4, %v7095_v46  ;;  %v8689_v8 = vld [vmem:[#allocation240_spill] sm:$0xff] }
 0x432   :  { %v4759_v14 = vpop.eup %4758  ;;  %4770 = vpow2.f32 %v3404_v37  ;;  %v3430_v26 = vmul.f32 1.442695, %v2934_v63  ;;  %v2933_v36 = vsub.f32 %v8370_v60, %v7102_v29  ;;  %v3420_v57 = vmul.f32 1.442695, %v2929_v23  ;;  %v8688_v37 = vld [vmem:[#allocation180_spill] sm:$0xff]  ;;  %v8691_v23 = vld [vmem:[#allocation227_spill] sm:$0xff] }
 0x433   :  { %v3574_v6 = vadd.f32 %v4757_v40, %v3573_v28  ;;  %v4761_v30 = vpop.eup %4760  ;;  %4772 = vpow2.f32 %v3418_v51  ;;  %v3704_v54 = vadd.f32 %v4759_v14, %v3703_v41  ;;  %v2940_v20 = vsub.f32 %v6525_v35, %v7095_v46  ;;  %v8685_v35 = vld [vmem:[#allocation234_spill] sm:$0xff]  ;;  %v8690_v40 = vld [vmem:[#allocation183_spill] sm:$0xff] }
 0x434   :  { %v4763_v18 = vpop.eup %4762  ;;  %4774 = vpow2.f32 %v3408_v0  ;;  %v3434_v43 = vmul.f32 1.442695, %v2936_v25  ;;  %v2935_v4 = vsub.f32 %v6369_v19, %v7102_v29  ;;  %v3424_v9 = vmul.f32 1.442695, %v2931_v12  ;;  %v8686_v19 = vld [vmem:[#allocation184_spill] sm:$0xff]  ;;  %v8692_v12 = vld [vmem:[#allocation182_spill] sm:$0xff] }
 0x435   :  { %v3575_v5 = vadd.f32 %v4761_v30, %v3574_v6  ;;  %v4765_v31 = vpop.eup %4764  ;;  %4776 = vpow2.f32 %v3422_v39  ;;  %v3705_v53 = vadd.f32 %v4763_v18, %v3704_v54  ;;  %v2942_v60 = vsub.f32 %v6588_v3, %v7095_v46  ;;  %v8687_v3 = vld [vmem:[#allocation237_spill] sm:$0xff] }
 0x436   :  { %v4767_v59 = vpop.eup %4766  ;;  %4778 = vpow2.f32 %v3412_v1  ;;  %v3438_v55 = vmul.f32 1.442695, %v2938_v44  ;;  %v2937_v58 = vsub.f32 %v8685_v35, %v7102_v29  ;;  %v3428_v52 = vmul.f32 1.442695, %v2933_v36 }
 0x437   :  { %v3576_v24 = vadd.f32 %v4765_v31, %v3575_v5  ;;  %v4769_v34 = vpop.eup %4768  ;;  %4780 = vpow2.f32 %v3426_v13  ;;  %v3706_v56 = vadd.f32 %v4767_v59, %v3705_v53  ;;  %v2944_v11 = vsub.f32 %v8686_v19, %v7095_v46  ;;  %v8693_v59 = vld [vmem:[#allocation181_spill] sm:$0xff] }
 0x438   :  { %v4771_v17 = vpop.eup %4770  ;;  %4782 = vpow2.f32 %v3416_v47  ;;  %v3442_v48 = vmul.f32 1.442695, %v2940_v20  ;;  %v2939_v27 = vsub.f32 %v8687_v3, %v7102_v29  ;;  %v3432_v32 = vmul.f32 1.442695, %v2935_v4 }
 0x439   :  { %v3577_v45 = vadd.f32 %v4769_v34, %v3576_v24  ;;  %v4773_v62 = vpop.eup %4772  ;;  %4784 = vpow2.f32 %v3430_v26  ;;  %v3707_v22 = vadd.f32 %v4771_v17, %v3706_v56  ;;  %v2946_v61 = vsub.f32 %v8688_v37, %v7095_v46  ;;  %v8694_v56 = vld [vmem:[#allocation195_spill] sm:$0xff] }
 0x43a   :  { %v4775_v50 = vpop.eup %4774  ;;  %4786 = vpow2.f32 %v3420_v57  ;;  %v3446_v2 = vmul.f32 1.442695, %v2942_v60  ;;  %v2941_v21 = vsub.f32 %v8689_v8, %v7102_v29  ;;  %v3436_v10 = vmul.f32 1.442695, %v2937_v58  ;;  %v8695_v8 = vld [vmem:[#allocation51_spill] sm:$0xff] }
 0x43b   :  { %v3578_v15 = vadd.f32 %v4773_v62, %v3577_v45  ;;  %v4777_v16 = vpop.eup %4776  ;;  %4788 = vpow2.f32 %v3434_v43  ;;  %v3708_v42 = vadd.f32 %v4775_v50, %v3707_v22  ;;  %v2948_v63 = vsub.f32 %v8690_v40, %v7095_v46 }
 0x43c   :  { %v4779_v49 = vpop.eup %4778  ;;  %4790 = vpow2.f32 %v3424_v9  ;;  %v3450_v39 = vmul.f32 1.442695, %v2944_v11  ;;  %v2943_v1 = vsub.f32 %v8691_v23, %v7102_v29  ;;  %v3440_v6 = vmul.f32 1.442695, %v2939_v27 }
 0x43d   :  { %v3579_v38 = vadd.f32 %v4777_v16, %v3578_v15  ;;  %v4781_v33 = vpop.eup %4780  ;;  %4792 = vpow2.f32 %v3438_v55  ;;  %v3709_v7 = vadd.f32 %v4779_v49, %v3708_v42  ;;  %v3454_v13 = vmul.f32 1.442695, %v2946_v61 }
 0x43e   :  { %v4783_v51 = vpop.eup %4782  ;;  %4794 = vpow2.f32 %v3428_v52  ;;  %v2945_v47 = vsub.f32 %v8692_v12, %v7102_v29  ;;  %v3444_v46 = vmul.f32 1.442695, %v2941_v21  ;;  %v3458_v44 = vmul.f32 1.442695, %v2948_v63  ;;  %v8696_v21 = vld [vmem:[#allocation59_spill] sm:$0xff] }
 0x43f   :  { %v3580_v0 = vadd.f32 %v4781_v33, %v3579_v38  ;;  %v4785_v28 = vpop.eup %4784  ;;  %4796 = vpow2.f32 %v3442_v48  ;;  %v3710_v41 = vadd.f32 %v4783_v51, %v3709_v7  ;;  %v2947_v36 = vsub.f32 %v8693_v59, %v7102_v29  ;;  %v3744_v59 = vld [vmem:[#allocation4] sm:$0x3] }
 0x440   :  { %v4787_v14 = vpop.eup %4786  ;;  %4798 = vpow2.f32 %v3432_v32  ;;  %v3448_v57 = vmul.f32 1.442695, %v2943_v1  ;;  %v2949_v17 = vsub.f32 %v8694_v56, %v7102_v29  ;;  %v3452_v4 = vmul.f32 1.442695, %v2945_v47 }
 0x441   :  { %v3581_v30 = vadd.f32 %v4785_v28, %v3580_v0  ;;  %v4789_v25 = vpop.eup %4788  ;;  %4800 = vpow2.f32 %v3446_v2  ;;  %v3711_v54 = vadd.f32 %v4787_v14, %v3710_v41  ;;  %v3456_v55 = vmul.f32 1.442695, %v2947_v36 }
 0x442   :  { %v4791_v18 = vpop.eup %4790  ;;  %4802 = vpow2.f32 %v3436_v10  ;;  %v3460_v52 = vmul.f32 1.442695, %v2949_v17  ;;  %v8697_v10 = vsub.f32 %v8695_v8, %v8696_v21 }
 0x443   :  { %v3582_v5 = vadd.f32 %v4789_v25, %v3581_v30  ;;  %v4793_v31 = vpop.eup %4792  ;;  %4804 = vpow2.f32 %v3450_v39  ;;  %v3712_v26 = vadd.f32 %v4791_v18, %v3711_v54  ;;  %v2684_v30 = vld [vmem:[#allocation3] sm:$0x3] }
 0x444   :  { %v4795_v53 = vpop.eup %4794  ;;  %4806 = vpow2.f32 %v3440_v6  ;;  %v2686_v0 = vmul.f32 1.442695, %v8697_v10 }
 0x445   :  { %v3583_v24 = vadd.f32 %v4793_v31, %v3582_v5  ;;  %v4797_v34 = vpop.eup %4796  ;;  %4808 = vpow2.f32 %v3454_v13  ;;  %v3713_v20 = vadd.f32 %v4795_v53, %v3712_v26  ;;  %v3739_v26 = vld [vmem:[#allocation2] sm:$0x3] }
 0x446   :  { %v4799_v43 = vpop.eup %4798  ;;  %4810 = vpow2.f32 %v3444_v46 }
 0x447   :  { %v3584_v9 = vadd.f32 %v4797_v34, %v3583_v24  ;;  %v4801_v45 = vpop.eup %4800  ;;  %4812 = vpow2.f32 %v3458_v44  ;;  %v3714_v62 = vadd.f32 %v4799_v43, %v3713_v20 }
 0x448   :  { %v4803_v60 = vpop.eup %4802  ;;  %4814 = vpow2.f32 %v3448_v57 }
 0x449   :  { %v3585_v22 = vadd.f32 %v4801_v45, %v3584_v9  ;;  %v4805_v50 = vpop.eup %4804  ;;  %v3715_v35 = vadd.f32 %v4803_v60, %v3714_v62  ;;  %4816 = vpow2.f32 %v3452_v4 }
 0x44a   :  { %v4807_v58 = vpop.eup %4806  ;;  %4818 = vpow2.f32 %v3456_v55 }
 0x44b   :  { %v3586_v15 = vadd.f32 %v4805_v50, %v3585_v22  ;;  %v4809_v16 = vpop.eup %4808  ;;  %v3716_v19 = vadd.f32 %v4807_v58, %v3715_v35  ;;  %4820 = vpow2.f32 %v3460_v52 }
 0x44c   :  { %v4811_v11 = vpop.eup %4810  ;;  %4822 = vpow2.f32 %v2686_v0 }
 0x44d   :  { %v3587_v29 = vadd.f32 %v4809_v16, %v3586_v15  ;;  %v4813_v48 = vpop.eup %4812  ;;  %v3717_v42 = vadd.f32 %v4811_v11, %v3716_v19 }
 0x44e   :  { %v4815_v49 = vpop.eup %4814 }
 0x44f   :  { %v3588_v3 = vadd.f32 %v4813_v48, %v3587_v29  ;;  %v3718_v27 = vadd.f32 %v4815_v49, %v3717_v42  ;;  %v4817_v32 = vpop.eup %4816 }
 0x450   :  { %v4819_v37 = vpop.eup %4818 }
 0x451   :  { %v3589_v38 = vrot.slane %v3588_v3, 4  ;;  %v3719_v33 = vadd.f32 %v4817_v32, %v3718_v27  ;;  %v4821_v7 = vpop.eup %4820 }
 0x452   :  { %v4823_v6 = vpop.eup %4822 }
 0x453   :  { %v3590_v61 = vadd.f32 %v3589_v38, %v3588_v3  ;;  %v3720_v2 = vadd.f32 %v4819_v37, %v3719_v33  ;;  %v2688_v18 = vmul.f32 %v4823_v6, %v2684_v30 }
 0x455   :  { %v3721_v51 = vadd.f32 %v4821_v7, %v3720_v2  ;;  %v3591_v28 = vrot.slane %v3590_v61, 2 }
 0x457   :  { %v3722_v40 = vrot.slane %v3721_v51, 4  ;;  %v3592_v39 = vadd.f32 %v3591_v28, %v3590_v61 }
 0x459   :  { %v3723_v63 = vadd.f32 %v3722_v40, %v3721_v51  ;;  %v3593_v23 = vrot.slane %v3592_v39, 1 }
 0x45b   :  { %v3724_v41 = vrot.slane %v3723_v63, 2  ;;  %v3594_v13 = vadd.f32 %v3593_v23, %v3592_v39 }
 0x45d   :  { %v3725_v14 = vadd.f32 %v3724_v41, %v3723_v63 }
 0x45f   :  { %v3726_v1 = vrot.slane %v3725_v14, 1 }
 0x461   :  { %v3727_v25 = vadd.f32 %v3726_v1, %v3725_v14 }
 0x463   :  { %v3730_v54 = vrot.slane %v3727_v25, 7 }
 0x465   :  { %v3731_v12 = vsel %vm2402_vm6, %v3594_v13, %v3730_v54 }
 0x466   :  { %v3733_v47 = vadd.f32 %v3731_v12, %v2688_v18 }
 0x468   :  { %3734 = vst.msk [vmem:[#allocation3] sm:$0x3] %vm6628_vm9, %v3733_v47 }
 0x46f   :  { %v3740_v5 = vld [vmem:[#allocation3] sm:$0x3] }
 0x470   :  { %4824 = vlog2.f32 %v3740_v5 }
 0x476   :  { %v4825_v31 = vpop.eup %4824 }
 0x477   :  { %v3742_v44 = vmul.f32 0.6931472, %v4825_v31 }
 0x479   :  { %v3743_v53 = vadd.f32 %v3742_v44, %v3739_v26 }
 0x47b   :  { %v3745_v36 = vsub.f32 %v3743_v53, %v3744_v59 }
 0x47d   :  { %3746 = vst.msk [vmem:[#allocation5] sm:$0x3] %vm6628_vm9, %v3745_v36 }
 0x47e   :  { %3757 = dma.vmem_to_hbm [thread:$0]  %s3753_s6, 32, %s3755_s9, [#allocation6]  }
 0x47f   :  { %4850 = dma.done.wait [#allocation6], 32  }
 0x480   :  { %4851 = vsyncadd [#allocation6], 4294967264 }
 0x481   :  { %3762 = vsyncpa [#allocation6], 1 }

</bundles_post_ra>
